<compile_context>
chip_gen: v7x
topology: tpu7x:2x2x1
jax: 0.10.0
libtpu: 0.0.40
codegen_flags: <defaults>
</compile_context>

<pallas_src>
import jax
import jax.numpy as jnp
from jax.experimental import pallas as pl
from jax.experimental.pallas import tpu as pltpu

Z_DIM = 100
NUM_CLASSES = 10
IMG_SHAPE = (1, 28, 28)
IMG_DIM = IMG_SHAPE[0] * IMG_SHAPE[1] * IMG_SHAPE[2]          # 784

IN_DIM = Z_DIM + NUM_CLASSES                                  # 110
IN_DIM_PAD = 128                                              # lane-aligned
OUT_DIM_PAD = 896                                             # 7 * 128

H1, H2, H3 = 256, 512, 1024

BN_EPS = 1e-5
LEAKY_SLOPE = 0.2


def generator_kernel(x_ref,
                     w1_ref, b1_ref,
                     w2_ref, b2_ref, g2_ref, be2_ref,
                     w3_ref, b3_ref, g3_ref, be3_ref,
                     w4_ref, b4_ref,
                     out_ref):
    """Fused forward pass: 4 matmuls, 2 batch-norms, 3 LeakyReLUs, tanh."""

    def leaky_relu(h):
        return jnp.where(h >= 0, h, LEAKY_SLOPE * h)

    def batch_norm(h, gamma, beta):
        # training-mode BatchNorm1d: batch mean + biased batch variance,
        # single pass via E[h^2] - mean^2.
        mean = jnp.mean(h, axis=0, keepdims=True)
        msq = jnp.mean(h * h, axis=0, keepdims=True)
        var = jnp.maximum(msq - mean * mean, 0.0)
        return (h - mean) * jax.lax.rsqrt(var + BN_EPS) * gamma + beta

    def dot_bf16(h, w_ref):
        # bf16 x bf16 -> f32 accumulate: native MXU path on v5e/v6e/v7x.
        return jnp.dot(h.astype(jnp.bfloat16), w_ref[...],
                       preferred_element_type=jnp.float32)

    x = x_ref[...]                                            # (B, 128) f32

    # Linear(110 -> 256) + LeakyReLU(0.2)   (padded input cols hit zero rows)
    h = dot_bf16(x, w1_ref) + b1_ref[...]
    h = leaky_relu(h)

    # Linear(256 -> 512) + BatchNorm1d(512) + LeakyReLU(0.2)
    h = dot_bf16(h, w2_ref) + b2_ref[...]
    h = leaky_relu(batch_norm(h, g2_ref[...], be2_ref[...]))

    # Linear(512 -> 1024) + BatchNorm1d(1024) + LeakyReLU(0.2)
    h = dot_bf16(h, w3_ref) + b3_ref[...]
    h = leaky_relu(batch_norm(h, g3_ref[...], be3_ref[...]))

    # Linear(1024 -> 784 [padded 896]) + Tanh
    h = dot_bf16(h, w4_ref) + b4_ref[...]
    out_ref[...] = jnp.tanh(h)


def init_params(key):
    """Parameter init matching the PyTorch module's shapes / distributions.

    Weights are returned padded + cast to bf16; biases / BN params f32.
    """
    ks = jax.random.split(key, 16)

    def linear(kw, kb, fan_in, fan_out, pad_in=None, pad_out=None):
        bound = 1.0 / (fan_in ** 0.5)
        w = jax.random.uniform(kw, (fan_in, fan_out), jnp.float32, -bound, bound)
        b = jax.random.uniform(kb, (1, fan_out), jnp.float32, -bound, bound)
        if pad_in is not None and pad_in > fan_in:
            w = jnp.pad(w, ((0, pad_in - fan_in), (0, 0)))      # zero rows
        if pad_out is not None and pad_out > fan_out:
            w = jnp.pad(w, ((0, 0), (0, pad_out - fan_out)))    # zero cols
            b = jnp.pad(b, ((0, 0), (0, pad_out - fan_out)))
        return w.astype(jnp.bfloat16), b

    params = {}
    # nn.Embedding(num_classes, num_classes): N(0, 1) init
    params["emb"] = jax.random.normal(ks[0], (NUM_CLASSES, NUM_CLASSES),
                                      jnp.float32)

    params["w1"], params["b1"] = linear(ks[1], ks[2], IN_DIM, H1,
                                        pad_in=IN_DIM_PAD)
    params["w2"], params["b2"] = linear(ks[3], ks[4], H1, H2)
    params["w3"], params["b3"] = linear(ks[5], ks[6], H2, H3)
    params["w4"], params["b4"] = linear(ks[7], ks[8], H3, IMG_DIM,
                                        pad_out=OUT_DIM_PAD)

    # BatchNorm affine params: PyTorch default gamma=1, beta=0
    params["g2"] = jnp.ones((1, H2), jnp.float32)
    params["be2"] = jnp.zeros((1, H2), jnp.float32)
    params["g3"] = jnp.ones((1, H3), jnp.float32)
    params["be3"] = jnp.zeros((1, H3), jnp.float32)
    return params


@jax.jit
def generator_forward(noise, labels, params):
    """noise: (B, z_dim) f32, labels: (B,) int32 -> (B, 1, 28, 28) f32."""
    batch = noise.shape[0]

    # Glue: embedding gather + concat + lane padding (stays in JAX).
    emb = jnp.take(params["emb"], labels, axis=0)             # (B, num_classes)
    gen_input = jnp.concatenate([noise, emb], axis=-1)        # (B, 110)
    gen_input = jnp.pad(gen_input, ((0, 0), (0, IN_DIM_PAD - IN_DIM)))

    args = (gen_input,
            params["w1"], params["b1"],
            params["w2"], params["b2"], params["g2"], params["be2"],
            params["w3"], params["b3"], params["g3"], params["be3"],
            params["w4"], params["b4"])

    # Whole-array blocks: bf16 weights ~3.2 MB + small activations -> VMEM-safe.
    in_specs = [
        pl.BlockSpec(a.shape, lambda *_, n=a.ndim: (0,) * n) for a in args
    ]
    out_specs = pl.BlockSpec((batch, OUT_DIM_PAD), lambda *_: (0, 0))

    # Advisory cost estimate so XLA overlaps the surrounding glue ops with the
    # kernel's weight DMA.
    flops = 2 * batch * (IN_DIM_PAD * H1 + H1 * H2 + H2 * H3 + H3 * OUT_DIM_PAD)
    transcendentals = batch * OUT_DIM_PAD + 2 * (H2 + H3)      # tanh + rsqrt
    weight_bytes = 2 * (IN_DIM_PAD * H1 + H1 * H2 + H2 * H3 + H3 * OUT_DIM_PAD)
    param_bytes = 4 * (H1 + 3 * H2 + 3 * H3 + OUT_DIM_PAD)
    act_bytes = 4 * batch * (IN_DIM_PAD + OUT_DIM_PAD)
    cost = pl.CostEstimate(flops=flops,
                           transcendentals=transcendentals,
                           bytes_accessed=weight_bytes + param_bytes + act_bytes)

    img_flat = pl.pallas_call(
        generator_kernel,
        out_shape=jax.ShapeDtypeStruct((batch, OUT_DIM_PAD), jnp.float32),
        grid=(1,),
        in_specs=in_specs,
        out_specs=out_specs,
        compiler_params=pltpu.CompilerParams(
            dimension_semantics=("arbitrary",)),
        cost_estimate=cost,
    )(*args)

    # Glue: drop the lane padding, reshape to PyTorch NCHW image layout.
    return img_flat[:, :IMG_DIM].reshape(batch, *IMG_SHAPE)


if __name__ == "__main__":
    key = jax.random.PRNGKey(0)
    k_params, k_noise, k_labels = jax.random.split(key, 3)

    batch = 8
    params = init_params(k_params)
    noise = jax.random.normal(k_noise, (batch, Z_DIM), jnp.float32)
    labels = jax.random.randint(k_labels, (batch,), 0, NUM_CLASSES, jnp.int32)

    img = generator_forward(noise, labels, params)
    jax.block_until_ready(img)

    assert img.shape == (batch, *IMG_SHAPE), img.shape
    assert bool(jnp.all(jnp.isfinite(img)))
    assert bool(jnp.all(jnp.abs(img) <= 1.0))  # tanh output range

    print("KERNEL_OK")
</pallas_src>

<mosaic_0001>
module attributes {stable_mosaic.version = 11 : i64} {
  func.func @generator_kernel(%arg0: i32, %arg1: memref<8x128xf32, #tpu.memory_space<vmem>>, %arg2: memref<128x256xbf16, #tpu.memory_space<vmem>>, %arg3: memref<1x256xf32, #tpu.memory_space<vmem>>, %arg4: memref<256x512xbf16, #tpu.memory_space<vmem>>, %arg5: memref<1x512xf32, #tpu.memory_space<vmem>>, %arg6: memref<1x512xf32, #tpu.memory_space<vmem>>, %arg7: memref<1x512xf32, #tpu.memory_space<vmem>>, %arg8: memref<512x1024xbf16, #tpu.memory_space<vmem>>, %arg9: memref<1x1024xf32, #tpu.memory_space<vmem>>, %arg10: memref<1x1024xf32, #tpu.memory_space<vmem>>, %arg11: memref<1x1024xf32, #tpu.memory_space<vmem>>, %arg12: memref<1024x896xbf16, #tpu.memory_space<vmem>>, %arg13: memref<1x896xf32, #tpu.memory_space<vmem>>, %arg14: memref<8x896xf32, #tpu.memory_space<vmem>>) attributes {dimension_semantics = [#tpu.dimension_semantics<arbitrary>], iteration_bounds = array<i64: 1>, scalar_prefetch = 0 : i64, scratch_operands = 0 : i64, tpu.core_type = #tpu.core_type<tc>, window_params = [{pipeline_mode = #tpu.pipeline_mode<synchronous>, transform_indices = @transform_0, window_bounds = array<i64: 8, 128>}, {pipeline_mode = #tpu.pipeline_mode<synchronous>, transform_indices = @transform_1, window_bounds = array<i64: 128, 256>}, {pipeline_mode = #tpu.pipeline_mode<synchronous>, transform_indices = @transform_2, window_bounds = array<i64: 1, 256>}, {pipeline_mode = #tpu.pipeline_mode<synchronous>, transform_indices = @transform_3, window_bounds = array<i64: 256, 512>}, {pipeline_mode = #tpu.pipeline_mode<synchronous>, transform_indices = @transform_4, window_bounds = array<i64: 1, 512>}, {pipeline_mode = #tpu.pipeline_mode<synchronous>, transform_indices = @transform_5, window_bounds = array<i64: 1, 512>}, {pipeline_mode = #tpu.pipeline_mode<synchronous>, transform_indices = @transform_6, window_bounds = array<i64: 1, 512>}, {pipeline_mode = #tpu.pipeline_mode<synchronous>, transform_indices = @transform_7, window_bounds = array<i64: 512, 1024>}, {pipeline_mode = #tpu.pipeline_mode<synchronous>, transform_indices = @transform_8, window_bounds = array<i64: 1, 1024>}, {pipeline_mode = #tpu.pipeline_mode<synchronous>, transform_indices = @transform_9, window_bounds = array<i64: 1, 1024>}, {pipeline_mode = #tpu.pipeline_mode<synchronous>, transform_indices = @transform_10, window_bounds = array<i64: 1, 1024>}, {pipeline_mode = #tpu.pipeline_mode<synchronous>, transform_indices = @transform_11, window_bounds = array<i64: 1024, 896>}, {pipeline_mode = #tpu.pipeline_mode<synchronous>, transform_indices = @transform_12, window_bounds = array<i64: 1, 896>}, {pipeline_mode = #tpu.pipeline_mode<synchronous>, transform_indices = @transform_13, window_bounds = array<i64: 8, 896>}]} {
    %c0 = arith.constant 0 : index
    %c0_0 = arith.constant 0 : index
    %0 = vector.load %arg1[%c0, %c0_0] : memref<8x128xf32, #tpu.memory_space<vmem>>, vector<8x128xf32>
    %1 = arith.truncf %0 : vector<8x128xf32> to vector<8x128xbf16>
    %c0_1 = arith.constant 0 : index
    %c0_2 = arith.constant 0 : index
    %2 = vector.load %arg2[%c0_1, %c0_2] : memref<128x256xbf16, #tpu.memory_space<vmem>>, vector<128x256xbf16>
    %cst = arith.constant dense<0.000000e+00> : vector<8x256xf32>
    %3 = tpu.matmul %1, %2, %cst {dimension_numbers = #tpu.dot_dimension_numbers<[1], [0], [0], [1], [0, 0, 1, 1], [], []>} : vector<8x128xbf16>, vector<128x256xbf16>, vector<8x256xf32> -> vector<8x256xf32>
    %c0_3 = arith.constant 0 : index
    %c0_4 = arith.constant 0 : index
    %4 = vector.load %arg3[%c0_3, %c0_4] : memref<1x256xf32, #tpu.memory_space<vmem>>, vector<1x256xf32>
    %5 = vector.broadcast %4 : vector<1x256xf32> to vector<8x256xf32>
    %6 = arith.addf %3, %5 : vector<8x256xf32>
    %cst_5 = arith.constant 0.000000e+00 : f32
    %7 = vector.broadcast %cst_5 : f32 to vector<8x256xf32>
    %8 = arith.cmpf oge, %6, %7 : vector<8x256xf32>
    %cst_6 = arith.constant 2.000000e-01 : f32
    %9 = vector.broadcast %cst_6 : f32 to vector<8x256xf32>
    %10 = arith.mulf %9, %6 : vector<8x256xf32>
    %11 = arith.select %8, %6, %10 : vector<8x256xi1>, vector<8x256xf32>
    %12 = arith.truncf %11 : vector<8x256xf32> to vector<8x256xbf16>
    %c0_7 = arith.constant 0 : index
    %c0_8 = arith.constant 0 : index
    %13 = vector.load %arg4[%c0_7, %c0_8] : memref<256x512xbf16, #tpu.memory_space<vmem>>, vector<256x512xbf16>
    %cst_9 = arith.constant dense<0.000000e+00> : vector<8x512xf32>
    %14 = tpu.matmul %12, %13, %cst_9 {dimension_numbers = #tpu.dot_dimension_numbers<[1], [0], [0], [1], [0, 0, 1, 1], [], []>} : vector<8x256xbf16>, vector<256x512xbf16>, vector<8x512xf32> -> vector<8x512xf32>
    %c0_10 = arith.constant 0 : index
    %c0_11 = arith.constant 0 : index
    %15 = vector.load %arg5[%c0_10, %c0_11] : memref<1x512xf32, #tpu.memory_space<vmem>>, vector<1x512xf32>
    %16 = vector.broadcast %15 : vector<1x512xf32> to vector<8x512xf32>
    %17 = arith.addf %14, %16 : vector<8x512xf32>
    %c0_12 = arith.constant 0 : index
    %c0_13 = arith.constant 0 : index
    %18 = vector.load %arg6[%c0_12, %c0_13] : memref<1x512xf32, #tpu.memory_space<vmem>>, vector<1x512xf32>
    %c0_14 = arith.constant 0 : index
    %c0_15 = arith.constant 0 : index
    %19 = vector.load %arg7[%c0_14, %c0_15] : memref<1x512xf32, #tpu.memory_space<vmem>>, vector<1x512xf32>
    %cst_16 = arith.constant dense<0.000000e+00> : vector<512xf32>
    %20 = vector.multi_reduction <add>, %17, %cst_16 [0] : vector<8x512xf32> to vector<512xf32>
    %21 = vector.shape_cast %20 : vector<512xf32> to vector<1x512xf32>
    %cst_17 = arith.constant 8.000000e+00 : f32
    %22 = vector.broadcast %cst_17 : f32 to vector<1x512xf32>
    %23 = arith.divf %21, %22 : vector<1x512xf32>
    %24 = arith.mulf %17, %17 : vector<8x512xf32>
    %cst_18 = arith.constant dense<0.000000e+00> : vector<512xf32>
    %25 = vector.multi_reduction <add>, %24, %cst_18 [0] : vector<8x512xf32> to vector<512xf32>
    %26 = vector.shape_cast %25 : vector<512xf32> to vector<1x512xf32>
    %cst_19 = arith.constant 8.000000e+00 : f32
    %27 = vector.broadcast %cst_19 : f32 to vector<1x512xf32>
    %28 = arith.divf %26, %27 : vector<1x512xf32>
    %29 = arith.mulf %23, %23 : vector<1x512xf32>
    %30 = arith.subf %28, %29 : vector<1x512xf32>
    %cst_20 = arith.constant 0.000000e+00 : f32
    %31 = vector.broadcast %cst_20 : f32 to vector<1x512xf32>
    %32 = arith.maximumf %30, %31 : vector<1x512xf32>
    %33 = vector.broadcast %23 : vector<1x512xf32> to vector<8x512xf32>
    %34 = arith.subf %17, %33 : vector<8x512xf32>
    %cst_21 = arith.constant 9.99999974E-6 : f32
    %35 = vector.broadcast %cst_21 : f32 to vector<1x512xf32>
    %36 = arith.addf %32, %35 : vector<1x512xf32>
    %37 = math.rsqrt %36 : vector<1x512xf32>
    %38 = vector.broadcast %37 : vector<1x512xf32> to vector<8x512xf32>
    %39 = arith.mulf %34, %38 : vector<8x512xf32>
    %40 = vector.broadcast %18 : vector<1x512xf32> to vector<8x512xf32>
    %41 = arith.mulf %39, %40 : vector<8x512xf32>
    %42 = vector.broadcast %19 : vector<1x512xf32> to vector<8x512xf32>
    %43 = arith.addf %41, %42 : vector<8x512xf32>
    %cst_22 = arith.constant 0.000000e+00 : f32
    %44 = vector.broadcast %cst_22 : f32 to vector<8x512xf32>
    %45 = arith.cmpf oge, %43, %44 : vector<8x512xf32>
    %cst_23 = arith.constant 2.000000e-01 : f32
    %46 = vector.broadcast %cst_23 : f32 to vector<8x512xf32>
    %47 = arith.mulf %46, %43 : vector<8x512xf32>
    %48 = arith.select %45, %43, %47 : vector<8x512xi1>, vector<8x512xf32>
    %49 = arith.truncf %48 : vector<8x512xf32> to vector<8x512xbf16>
    %c0_24 = arith.constant 0 : index
    %c0_25 = arith.constant 0 : index
    %50 = vector.load %arg8[%c0_24, %c0_25] : memref<512x1024xbf16, #tpu.memory_space<vmem>>, vector<512x1024xbf16>
    %cst_26 = arith.constant dense<0.000000e+00> : vector<8x1024xf32>
    %51 = tpu.matmul %49, %50, %cst_26 {dimension_numbers = #tpu.dot_dimension_numbers<[1], [0], [0], [1], [0, 0, 1, 1], [], []>} : vector<8x512xbf16>, vector<512x1024xbf16>, vector<8x1024xf32> -> vector<8x1024xf32>
    %c0_27 = arith.constant 0 : index
    %c0_28 = arith.constant 0 : index
    %52 = vector.load %arg9[%c0_27, %c0_28] : memref<1x1024xf32, #tpu.memory_space<vmem>>, vector<1x1024xf32>
    %53 = vector.broadcast %52 : vector<1x1024xf32> to vector<8x1024xf32>
    %54 = arith.addf %51, %53 : vector<8x1024xf32>
    %c0_29 = arith.constant 0 : index
    %c0_30 = arith.constant 0 : index
    %55 = vector.load %arg10[%c0_29, %c0_30] : memref<1x1024xf32, #tpu.memory_space<vmem>>, vector<1x1024xf32>
    %c0_31 = arith.constant 0 : index
    %c0_32 = arith.constant 0 : index
    %56 = vector.load %arg11[%c0_31, %c0_32] : memref<1x1024xf32, #tpu.memory_space<vmem>>, vector<1x1024xf32>
    %cst_33 = arith.constant dense<0.000000e+00> : vector<1024xf32>
    %57 = vector.multi_reduction <add>, %54, %cst_33 [0] : vector<8x1024xf32> to vector<1024xf32>
    %58 = vector.shape_cast %57 : vector<1024xf32> to vector<1x1024xf32>
    %cst_34 = arith.constant 8.000000e+00 : f32
    %59 = vector.broadcast %cst_34 : f32 to vector<1x1024xf32>
    %60 = arith.divf %58, %59 : vector<1x1024xf32>
    %61 = arith.mulf %54, %54 : vector<8x1024xf32>
    %cst_35 = arith.constant dense<0.000000e+00> : vector<1024xf32>
    %62 = vector.multi_reduction <add>, %61, %cst_35 [0] : vector<8x1024xf32> to vector<1024xf32>
    %63 = vector.shape_cast %62 : vector<1024xf32> to vector<1x1024xf32>
    %cst_36 = arith.constant 8.000000e+00 : f32
    %64 = vector.broadcast %cst_36 : f32 to vector<1x1024xf32>
    %65 = arith.divf %63, %64 : vector<1x1024xf32>
    %66 = arith.mulf %60, %60 : vector<1x1024xf32>
    %67 = arith.subf %65, %66 : vector<1x1024xf32>
    %cst_37 = arith.constant 0.000000e+00 : f32
    %68 = vector.broadcast %cst_37 : f32 to vector<1x1024xf32>
    %69 = arith.maximumf %67, %68 : vector<1x1024xf32>
    %70 = vector.broadcast %60 : vector<1x1024xf32> to vector<8x1024xf32>
    %71 = arith.subf %54, %70 : vector<8x1024xf32>
    %cst_38 = arith.constant 9.99999974E-6 : f32
    %72 = vector.broadcast %cst_38 : f32 to vector<1x1024xf32>
    %73 = arith.addf %69, %72 : vector<1x1024xf32>
    %74 = math.rsqrt %73 : vector<1x1024xf32>
    %75 = vector.broadcast %74 : vector<1x1024xf32> to vector<8x1024xf32>
    %76 = arith.mulf %71, %75 : vector<8x1024xf32>
    %77 = vector.broadcast %55 : vector<1x1024xf32> to vector<8x1024xf32>
    %78 = arith.mulf %76, %77 : vector<8x1024xf32>
    %79 = vector.broadcast %56 : vector<1x1024xf32> to vector<8x1024xf32>
    %80 = arith.addf %78, %79 : vector<8x1024xf32>
    %cst_39 = arith.constant 0.000000e+00 : f32
    %81 = vector.broadcast %cst_39 : f32 to vector<8x1024xf32>
    %82 = arith.cmpf oge, %80, %81 : vector<8x1024xf32>
    %cst_40 = arith.constant 2.000000e-01 : f32
    %83 = vector.broadcast %cst_40 : f32 to vector<8x1024xf32>
    %84 = arith.mulf %83, %80 : vector<8x1024xf32>
    %85 = arith.select %82, %80, %84 : vector<8x1024xi1>, vector<8x1024xf32>
    %86 = arith.truncf %85 : vector<8x1024xf32> to vector<8x1024xbf16>
    %c0_41 = arith.constant 0 : index
    %c0_42 = arith.constant 0 : index
    %87 = vector.load %arg12[%c0_41, %c0_42] : memref<1024x896xbf16, #tpu.memory_space<vmem>>, vector<1024x896xbf16>
    %cst_43 = arith.constant dense<0.000000e+00> : vector<8x896xf32>
    %88 = tpu.matmul %86, %87, %cst_43 {dimension_numbers = #tpu.dot_dimension_numbers<[1], [0], [0], [1], [0, 0, 1, 1], [], []>} : vector<8x1024xbf16>, vector<1024x896xbf16>, vector<8x896xf32> -> vector<8x896xf32>
    %c0_44 = arith.constant 0 : index
    %c0_45 = arith.constant 0 : index
    %89 = vector.load %arg13[%c0_44, %c0_45] : memref<1x896xf32, #tpu.memory_space<vmem>>, vector<1x896xf32>
    %90 = vector.broadcast %89 : vector<1x896xf32> to vector<8x896xf32>
    %91 = arith.addf %88, %90 : vector<8x896xf32>
    %92 = math.tanh %91 : vector<8x896xf32>
    %c0_46 = arith.constant 0 : index
    %c0_47 = arith.constant 0 : index
    %93 = vector.load %arg14[%c0_46, %c0_47] : memref<8x896xf32, #tpu.memory_space<vmem>>, vector<8x896xf32>
    tpu.vector_store %arg14[%c0_46, %c0_47], %92 {strides = array<i32>} : memref<8x896xf32, #tpu.memory_space<vmem>>, vector<8x896xf32>,
    return
  }
  func.func @transform_0(%arg0: i32) -> (i32, i32) {
    %c0_i32 = arith.constant 0 : i32
    %c0_i32_0 = arith.constant 0 : i32
    %c0_i32_1 = arith.constant 0 : i32
    return %c0_i32, %c0_i32_0 : i32, i32
  }
  func.func @transform_1(%arg0: i32) -> (i32, i32) {
    %c0_i32 = arith.constant 0 : i32
    %c0_i32_0 = arith.constant 0 : i32
    %c0_i32_1 = arith.constant 0 : i32
    return %c0_i32, %c0_i32_0 : i32, i32
  }
  func.func @transform_2(%arg0: i32) -> (i32, i32) {
    %c0_i32 = arith.constant 0 : i32
    %c0_i32_0 = arith.constant 0 : i32
    %c0_i32_1 = arith.constant 0 : i32
    return %c0_i32, %c0_i32_0 : i32, i32
  }
  func.func @transform_3(%arg0: i32) -> (i32, i32) {
    %c0_i32 = arith.constant 0 : i32
    %c0_i32_0 = arith.constant 0 : i32
    %c0_i32_1 = arith.constant 0 : i32
    return %c0_i32, %c0_i32_0 : i32, i32
  }
  func.func @transform_4(%arg0: i32) -> (i32, i32) {
    %c0_i32 = arith.constant 0 : i32
    %c0_i32_0 = arith.constant 0 : i32
    %c0_i32_1 = arith.constant 0 : i32
    return %c0_i32, %c0_i32_0 : i32, i32
  }
  func.func @transform_5(%arg0: i32) -> (i32, i32) {
    %c0_i32 = arith.constant 0 : i32
    %c0_i32_0 = arith.constant 0 : i32
    %c0_i32_1 = arith.constant 0 : i32
    return %c0_i32, %c0_i32_0 : i32, i32
  }
  func.func @transform_6(%arg0: i32) -> (i32, i32) {
    %c0_i32 = arith.constant 0 : i32
    %c0_i32_0 = arith.constant 0 : i32
    %c0_i32_1 = arith.constant 0 : i32
    return %c0_i32, %c0_i32_0 : i32, i32
  }
  func.func @transform_7(%arg0: i32) -> (i32, i32) {
    %c0_i32 = arith.constant 0 : i32
    %c0_i32_0 = arith.constant 0 : i32
    %c0_i32_1 = arith.constant 0 : i32
    return %c0_i32, %c0_i32_0 : i32, i32
  }
  func.func @transform_8(%arg0: i32) -> (i32, i32) {
    %c0_i32 = arith.constant 0 : i32
    %c0_i32_0 = arith.constant 0 : i32
    %c0_i32_1 = arith.constant 0 : i32
    return %c0_i32, %c0_i32_0 : i32, i32
  }
  func.func @transform_9(%arg0: i32) -> (i32, i32) {
    %c0_i32 = arith.constant 0 : i32
    %c0_i32_0 = arith.constant 0 : i32
    %c0_i32_1 = arith.constant 0 : i32
    return %c0_i32, %c0_i32_0 : i32, i32
  }
  func.func @transform_10(%arg0: i32) -> (i32, i32) {
    %c0_i32 = arith.constant 0 : i32
    %c0_i32_0 = arith.constant 0 : i32
    %c0_i32_1 = arith.constant 0 : i32
    return %c0_i32, %c0_i32_0 : i32, i32
  }
  func.func @transform_11(%arg0: i32) -> (i32, i32) {
    %c0_i32 = arith.constant 0 : i32
    %c0_i32_0 = arith.constant 0 : i32
    %c0_i32_1 = arith.constant 0 : i32
    return %c0_i32, %c0_i32_0 : i32, i32
  }
  func.func @transform_12(%arg0: i32) -> (i32, i32) {
    %c0_i32 = arith.constant 0 : i32
    %c0_i32_0 = arith.constant 0 : i32
    %c0_i32_1 = arith.constant 0 : i32
    return %c0_i32, %c0_i32_0 : i32, i32
  }
  func.func @transform_13(%arg0: i32) -> (i32, i32) {
    %c0_i32 = arith.constant 0 : i32
    %c0_i32_0 = arith.constant 0 : i32
    %c0_i32_1 = arith.constant 0 : i32
    return %c0_i32, %c0_i32_0 : i32, i32
  }
}

</mosaic_0001>

<bundles_post_ra>
// kernel: generator_forward.1
= control target key start
LH: loop header
LB: loop body
LE: loop exit
PB: predicated region body
PF: predicated region fallthrough
CT: control target
= control target key end

     0   :  { %18 = vsyncpa [#allocation3], 0  ;;  %s9378_s0 = inlined_call_operand.vmem [shape: f32[8,128], index: 0, kind: input, shape index: {}]   ;;  %s9379_s1 = inlined_call_operand.hbm [shape: bf16[128,256], index: 1, kind: input, shape index: {}]   ;;  %s9380_s2 = inlined_call_operand.hbm [shape: f32[1,256], index: 2, kind: input, shape index: {}]   ;;  %s9381_s3 = inlined_call_operand.hbm [shape: bf16[256,512], index: 3, kind: input, shape index: {}]   ;;  %s9382_s4 = inlined_call_operand.hbm [shape: f32[1,512], index: 4, kind: input, shape index: {}]   ;;  %s9383_s5 = inlined_call_operand.hbm [shape: f32[1,512], index: 5, kind: input, shape index: {}]   ;;  %s9384_s6 = inlined_call_operand.hbm [shape: f32[1,512], index: 6, kind: input, shape index: {}]   ;;  %s9385_s7 = inlined_call_operand.hbm [shape: bf16[512,1024], index: 7, kind: input, shape index: {}]   ;;  %s9386_s8 = inlined_call_operand.hbm [shape: f32[1,1024], index: 8, kind: input, shape index: {}]   ;;  %s9387_s9 = inlined_call_operand.hbm [shape: f32[1,1024], index: 9, kind: input, shape index: {}]   ;;  %s9388_s10 = inlined_call_operand.hbm [shape: f32[1,1024], index: 10, kind: input, shape index: {}]   ;;  %s9389_s11 = inlined_call_operand.hbm [shape: bf16[1024,896], index: 11, kind: input, shape index: {}]   ;;  %s9390_s12 = inlined_call_operand.hbm [shape: f32[1,896], index: 12, kind: input, shape index: {}]   ;;  %s9391_s13 = inlined_call_operand.vmem [shape: f32[8,896], index: 13, kind: output, shape index: {}]  }
   0x1   :  { %19 = vsyncpa [#allocation5], 0 }
   0x2   :  { %20 = vsyncpa [#allocation8], 0 }
   0x3   :  { %21 = vsyncpa [#allocation11], 0 }
   0x4   :  { %22 = vsyncpa [#allocation14], 0 }
   0x5   :  { %23 = vsyncpa [#allocation17], 0 }
   0x6   :  { %24 = vsyncpa [#allocation20], 0  ;;  %s8777_s25 = smov [#allocation4]   ;;  %s8778_s27 = smov [#allocation7]  }
   0x7   :  { %s45_s26 = sshll.u32 %s8777_s25, 4  ;;  %s67_s28 = sshll.u32 %s8778_s27, 4  ;;  %s46_s26 = int_to_ptr.vmem [resolvable:$true] %s45_s26  ;;  %s68_s28 = int_to_ptr.vmem [resolvable:$true] %s67_s28 }
   0x8   :  { %s8499_s14 = scalar_lea.hbm %s9380_s2, 32 }
   0x9   :  { %p8500_p0 = scmp.ne.s32.totalorder %s9380_s2, %s8499_s14  ;;  %p8503_p1 = scmp.lt.u32.totalorder %s8499_s14, %s9380_s2 }
   0xb   :  { %p8505_p2 = pnand %p8503_p1, %p8500_p0 }
   0xd   :  { %8508 = shalt.err (!%p8505_p2)
}
   0xe   :  { %s8509_s19 = scalar_lea.vmem %s46_s26, 32  ;;  %p8514_p4 = scmp.lt.s32.totalorder %s46_s26, %s46_s26 }
   0xf   :  { %p8510_p3 = scmp.ne.s32.totalorder %s46_s26, %s8509_s19  ;;  %p8515_p5 = scmp.lt.s32.totalorder %s8509_s19, %s8509_s19 }
  0x11   :  { %p8516_p6 = por %p8515_p5, %p8514_p4 }
  0x13   :  { %p8517_p7 = pnand %p8516_p6, %p8510_p3 }
  0x15   :  { %8520 = shalt.err (!%p8517_p7)
}
  0x16   :  { %48 = dma.hbm_to_vmem [thread:$0]  %s9380_s2, 32, %s46_s26, [#allocation5]  }
  0x17   :  { %s8521_s24 = scalar_lea.hbm %s9382_s4, 64 }
  0x18   :  { %p8522_p8 = scmp.ne.s32.totalorder %s9382_s4, %s8521_s24  ;;  %p8525_p9 = scmp.lt.u32.totalorder %s8521_s24, %s9382_s4 }
  0x1a   :  { %p8527_p10 = pnand %p8525_p9, %p8522_p8 }
  0x1c   :  { %8530 = shalt.err (!%p8527_p10)
}
  0x1d   :  { %s8531_s14 = scalar_lea.vmem %s68_s28, 64  ;;  %p8536_p12 = scmp.lt.s32.totalorder %s68_s28, %s68_s28 }
  0x1e   :  { %p8532_p11 = scmp.ne.s32.totalorder %s68_s28, %s8531_s14  ;;  %p8537_p13 = scmp.lt.s32.totalorder %s8531_s14, %s8531_s14 }
  0x20   :  { %p8538_p0 = por %p8537_p13, %p8536_p12 }
  0x22   :  { %p8539_p1 = pnand %p8538_p0, %p8532_p11 }
  0x24   :  { %8542 = shalt.err (!%p8539_p1)
}
  0x25   :  { %70 = dma.hbm_to_vmem [thread:$0]  %s9382_s4, 64, %s68_s28, [#allocation8]  }
  0x26   :  { %s8779_s15 = smov [#allocation10]   ;;  %s8780_s17 = smov [#allocation13]  }
  0x27   :  { %s87_s16 = sshll.u32 %s8779_s15, 4  ;;  %s109_s18 = sshll.u32 %s8780_s17, 4  ;;  %s88_s16 = int_to_ptr.vmem [resolvable:$true] %s87_s16  ;;  %s110_s18 = int_to_ptr.vmem [resolvable:$true] %s109_s18 }
  0x28   :  { %s8543_s21 = scalar_lea.hbm %s9384_s6, 64 }
  0x29   :  { %p8544_p2 = scmp.ne.s32.totalorder %s9384_s6, %s8543_s21  ;;  %p8547_p3 = scmp.lt.u32.totalorder %s8543_s21, %s9384_s6 }
  0x2b   :  { %p8549_p4 = pnand %p8547_p3, %p8544_p2 }
  0x2d   :  { %8552 = shalt.err (!%p8549_p4)
}
  0x2e   :  { %s8553_s4 = scalar_lea.vmem %s88_s16, 64  ;;  %p8558_p6 = scmp.lt.s32.totalorder %s88_s16, %s88_s16 }
  0x2f   :  { %p8554_p5 = scmp.ne.s32.totalorder %s88_s16, %s8553_s4  ;;  %p8559_p7 = scmp.lt.s32.totalorder %s8553_s4, %s8553_s4 }
  0x31   :  { %p8560_p8 = por %p8559_p7, %p8558_p6 }
  0x33   :  { %p8561_p9 = pnand %p8560_p8, %p8554_p5 }
  0x35   :  { %8564 = shalt.err (!%p8561_p9)
}
  0x36   :  { %90 = dma.hbm_to_vmem [thread:$0]  %s9384_s6, 64, %s88_s16, [#allocation11]  }
  0x37   :  { %s8565_s14 = scalar_lea.hbm %s9386_s8, 128 }
  0x38   :  { %p8566_p10 = scmp.ne.s32.totalorder %s9386_s8, %s8565_s14  ;;  %p8569_p11 = scmp.lt.u32.totalorder %s8565_s14, %s9386_s8 }
  0x3a   :  { %p8571_p12 = pnand %p8569_p11, %p8566_p10 }
  0x3c   :  { %8574 = shalt.err (!%p8571_p12)
}
  0x3d   :  { %s8575_s19 = scalar_lea.vmem %s110_s18, 128  ;;  %p8580_p0 = scmp.lt.s32.totalorder %s110_s18, %s110_s18 }
  0x3e   :  { %p8576_p13 = scmp.ne.s32.totalorder %s110_s18, %s8575_s19  ;;  %p8581_p1 = scmp.lt.s32.totalorder %s8575_s19, %s8575_s19 }
  0x40   :  { %p8582_p2 = por %p8581_p1, %p8580_p0 }
  0x42   :  { %p8583_p3 = pnand %p8582_p2, %p8576_p13 }
  0x44   :  { %8586 = shalt.err (!%p8583_p3)
}
  0x45   :  { %112 = dma.hbm_to_vmem [thread:$0]  %s9386_s8, 128, %s110_s18, [#allocation14]  }
  0x46   :  { %s8781_s20 = smov [#allocation16]   ;;  %s8782_s22 = smov [#allocation2]  }
  0x47   :  { %s129_s21 = sshll.u32 %s8781_s20, 4  ;;  %s32_s23 = sshll.u32 %s8782_s22, 4  ;;  %s130_s21 = int_to_ptr.vmem [resolvable:$true] %s129_s21  ;;  %s8916_s23 = int_to_ptr.vmem [resolvable:$true] %s32_s23 }
  0x48   :  { %s8587_s4 = scalar_lea.hbm %s9388_s10, 128 }
  0x49   :  { %p8588_p4 = scmp.ne.s32.totalorder %s9388_s10, %s8587_s4  ;;  %p8591_p5 = scmp.lt.u32.totalorder %s8587_s4, %s9388_s10 }
  0x4b   :  { %p8593_p6 = pnand %p8591_p5, %p8588_p4 }
  0x4d   :  { %8596 = shalt.err (!%p8593_p6)
}
  0x4e   :  { %s8597_s8 = scalar_lea.vmem %s130_s21, 128  ;;  %p8602_p8 = scmp.lt.s32.totalorder %s130_s21, %s130_s21 }
  0x4f   :  { %p8598_p7 = scmp.ne.s32.totalorder %s130_s21, %s8597_s8  ;;  %p8603_p9 = scmp.lt.s32.totalorder %s8597_s8, %s8597_s8 }
  0x51   :  { %p8604_p10 = por %p8603_p9, %p8602_p8 }
  0x53   :  { %p8605_p11 = pnand %p8604_p10, %p8598_p7 }
  0x55   :  { %8608 = shalt.err (!%p8605_p11)
}
  0x56   :  { %132 = dma.hbm_to_vmem [thread:$0]  %s9388_s10, 128, %s130_s21, [#allocation17]  }
  0x57   :  { %s8609_s15 = scalar_lea.hbm %s9379_s1, 2048 }
  0x58   :  { %p8610_p12 = scmp.ne.s32.totalorder %s9379_s1, %s8609_s15  ;;  %p8613_p13 = scmp.lt.u32.totalorder %s8609_s15, %s9379_s1 }
  0x5a   :  { %p8615_p0 = pnand %p8613_p13, %p8610_p12 }
  0x5c   :  { %8618 = shalt.err (!%p8615_p0)
}
  0x5d   :  { %s8619_s20 = scalar_lea.vmem %s8916_s23, 2048  ;;  %p8624_p2 = scmp.lt.s32.totalorder %s8916_s23, %s8916_s23 }
  0x5e   :  { %p8620_p1 = scmp.ne.s32.totalorder %s8916_s23, %s8619_s20  ;;  %p8625_p3 = scmp.lt.s32.totalorder %s8619_s20, %s8619_s20 }
  0x60   :  { %p8626_p4 = por %p8625_p3, %p8624_p2 }
  0x62   :  { %p8627_p5 = pnand %p8626_p4, %p8620_p1 }
  0x64   :  { %8630 = shalt.err (!%p8627_p5)
}
  0x65   :  { %s8783_s10 = smov 128   ;;  %s8784_s21 = smov 8  }
  0x66   :  { %38 = dma.hbm_to_vmem [thread:$0]  %s9379_s1, 2048, %s8916_s23, [#allocation3], %s8783_s10, %s8783_s10, %s8784_s21  }
  0x67   :  { %s8785_s25 = smov [#allocation6]   ;;  %s8631_s29 = scalar_lea.hbm %s9381_s3, 8192 }
  0x68   :  { %s54_s4 = sshll.u32 %s8785_s25, 4  ;;  %p8632_p6 = scmp.ne.s32.totalorder %s9381_s3, %s8631_s29  ;;  %s55_s4 = int_to_ptr.vmem [resolvable:$true] %s54_s4 }
  0x69   :  { %p8635_p7 = scmp.lt.u32.totalorder %s8631_s29, %s9381_s3 }
  0x6b   :  { %p8637_p8 = pnand %p8635_p7, %p8632_p6 }
  0x6d   :  { %8640 = shalt.err (!%p8637_p8)
}
  0x6e   :  { %s8641_s2 = scalar_lea.vmem %s55_s4, 8192  ;;  %p8646_p10 = scmp.lt.s32.totalorder %s55_s4, %s55_s4 }
  0x6f   :  { %p8642_p9 = scmp.ne.s32.totalorder %s55_s4, %s8641_s2  ;;  %p8647_p11 = scmp.lt.s32.totalorder %s8641_s2, %s8641_s2 }
  0x71   :  { %p8648_p12 = por %p8647_p11, %p8646_p10 }
  0x73   :  { %p8649_p13 = pnand %p8648_p12, %p8642_p9 }
  0x75   :  { %8652 = shalt.err (!%p8649_p13)
}
  0x76   :  { %s8786_s1 = smov 256   ;;  %s8787_s23 = smov 16  }
  0x77   :  { %60 = dma.hbm_to_vmem [thread:$0]  %s9381_s3, 8192, %s55_s4, [#allocation5], %s8786_s1, %s8786_s1, %s8787_s23  }
  0x78   :  { %s8788_s17 = smov [#allocation9]   ;;  %s8789_s6 = smov [#allocation12]  }
  0x79   :  { %s77_s19 = sshll.u32 %s8788_s17, 4  ;;  %s96_s16 = sshll.u32 %s8789_s6, 4  ;;  %s78_s19 = int_to_ptr.vmem [resolvable:$true] %s77_s19  ;;  %s97_s16 = int_to_ptr.vmem [resolvable:$true] %s96_s16 }
  0x7a   :  { %s8653_s21 = scalar_lea.hbm %s9383_s5, 64 }
  0x7b   :  { %p8654_p0 = scmp.ne.s32.totalorder %s9383_s5, %s8653_s21  ;;  %p8657_p1 = scmp.lt.u32.totalorder %s8653_s21, %s9383_s5 }
  0x7d   :  { %p8659_p2 = pnand %p8657_p1, %p8654_p0 }
  0x7f   :  { %8662 = shalt.err (!%p8659_p2)
}
  0x80   :  { %s8663_s3 = scalar_lea.vmem %s78_s19, 64  ;;  %p8668_p4 = scmp.lt.s32.totalorder %s78_s19, %s78_s19 }
  0x81   :  { %p8664_p3 = scmp.ne.s32.totalorder %s78_s19, %s8663_s3  ;;  %p8669_p5 = scmp.lt.s32.totalorder %s8663_s3, %s8663_s3 }
  0x83   :  { %p8670_p6 = por %p8669_p5, %p8668_p4 }
  0x85   :  { %p8671_p7 = pnand %p8670_p6, %p8664_p3 }
  0x87   :  { %8674 = shalt.err (!%p8671_p7)
}
  0x88   :  { %80 = dma.hbm_to_vmem [thread:$0]  %s9383_s5, 64, %s78_s19, [#allocation8]  }
  0x89   :  { %s8675_s8 = scalar_lea.hbm %s9385_s7, 32768 }
  0x8a   :  { %p8676_p8 = scmp.ne.s32.totalorder %s9385_s7, %s8675_s8  ;;  %p8679_p9 = scmp.lt.u32.totalorder %s8675_s8, %s9385_s7 }
  0x8c   :  { %p8681_p10 = pnand %p8679_p9, %p8676_p8 }
  0x8e   :  { %8684 = shalt.err (!%p8681_p10)
}
  0x8f   :  { %s8685_s23 = scalar_lea.vmem %s97_s16, 32768  ;;  %p8690_p12 = scmp.lt.s32.totalorder %s97_s16, %s97_s16 }
  0x90   :  { %p8686_p11 = scmp.ne.s32.totalorder %s97_s16, %s8685_s23  ;;  %p8691_p13 = scmp.lt.s32.totalorder %s8685_s23, %s8685_s23 }
  0x92   :  { %p8692_p0 = por %p8691_p13, %p8690_p12 }
  0x94   :  { %p8693_p1 = pnand %p8692_p0, %p8686_p11 }
  0x96   :  { %8696 = shalt.err (!%p8693_p1)
}
  0x97   :  { %s8790_s5 = smov 512   ;;  %s8791_s26 = smov 32  }
  0x98   :  { %102 = dma.hbm_to_vmem [thread:$0]  %s9385_s7, 32768, %s97_s16, [#allocation11], %s8790_s5, %s8790_s5, %s8791_s26  }
  0x99   :  { %s8792_s19 = smov [#allocation15]   ;;  %s8793_s20 = smov [#allocation18]  }
  0x9a   :  { %s119_s6 = sshll.u32 %s8792_s19, 4  ;;  %s138_s10 = sshll.u32 %s8793_s20, 4  ;;  %s120_s6 = int_to_ptr.vmem [resolvable:$true] %s119_s6  ;;  %s139_s10 = int_to_ptr.vmem [resolvable:$true] %s138_s10 }
  0x9b   :  { %s8697_s24 = scalar_lea.hbm %s9387_s9, 128 }
  0x9c   :  { %p8698_p2 = scmp.ne.s32.totalorder %s9387_s9, %s8697_s24  ;;  %p8701_p3 = scmp.lt.u32.totalorder %s8697_s24, %s9387_s9 }
  0x9e   :  { %p8703_p4 = pnand %p8701_p3, %p8698_p2 }
  0xa0   :  { %8706 = shalt.err (!%p8703_p4)
}
  0xa1   :  { %s8707_s7 = scalar_lea.vmem %s120_s6, 128  ;;  %p8712_p6 = scmp.lt.s32.totalorder %s120_s6, %s120_s6 }
  0xa2   :  { %p8708_p5 = scmp.ne.s32.totalorder %s120_s6, %s8707_s7  ;;  %p8713_p7 = scmp.lt.s32.totalorder %s8707_s7, %s8707_s7 }
  0xa4   :  { %p8714_p8 = por %p8713_p7, %p8712_p6 }
  0xa6   :  { %p8715_p9 = pnand %p8714_p8, %p8708_p5 }
  0xa8   :  { %8718 = shalt.err (!%p8715_p9)
}
  0xa9   :  { %122 = dma.hbm_to_vmem [thread:$0]  %s9387_s9, 128, %s120_s6, [#allocation14]  }
  0xaa   :  { %s8719_s8 = scalar_lea.hbm %s9389_s11, 57344 }
  0xab   :  { %p8720_p10 = scmp.ne.s32.totalorder %s9389_s11, %s8719_s8  ;;  %p8723_p11 = scmp.lt.u32.totalorder %s8719_s8, %s9389_s11 }
  0xad   :  { %p8725_p12 = pnand %p8723_p11, %p8720_p10 }
  0xaf   :  { %8728 = shalt.err (!%p8725_p12)
}
  0xb0   :  { %s8729_s23 = scalar_lea.vmem %s139_s10, 57344  ;;  %p8734_p0 = scmp.lt.s32.totalorder %s139_s10, %s139_s10 }
  0xb1   :  { %p8730_p13 = scmp.ne.s32.totalorder %s139_s10, %s8729_s23  ;;  %p8735_p1 = scmp.lt.s32.totalorder %s8729_s23, %s8729_s23 }
  0xb3   :  { %p8736_p2 = por %p8735_p1, %p8734_p0 }
  0xb5   :  { %p8737_p3 = pnand %p8736_p2, %p8730_p13 }
  0xb7   :  { %8740 = shalt.err (!%p8737_p3)
}
  0xb8   :  { %s8794_s9 = smov 448   ;;  %s8795_s5 = smov 28  }
  0xb9   :  { %144 = dma.hbm_to_vmem [thread:$0]  %s9389_s11, 57344, %s139_s10, [#allocation17], %s8794_s9, %s8794_s9, %s8795_s5  }
  0xba   :  { %s8796_s17 = smov [#allocation19]   ;;  %s8741_s21 = scalar_lea.hbm %s9390_s12, 112 }
  0xbb   :  { %s151_s19 = sshll.u32 %s8796_s17, 4  ;;  %p8742_p4 = scmp.ne.s32.totalorder %s9390_s12, %s8741_s21  ;;  %s152_s19 = int_to_ptr.vmem [resolvable:$true] %s151_s19 }
  0xbc   :  { %p8745_p5 = scmp.lt.u32.totalorder %s8741_s21, %s9390_s12 }
  0xbe   :  { %p8747_p6 = pnand %p8745_p5, %p8742_p4 }
  0xc0   :  { %8750 = shalt.err (!%p8747_p6)
}
  0xc1   :  { %s8751_s3 = scalar_lea.vmem %s152_s19, 112  ;;  %s8755_s11 = scalar_lea.vmem %s152_s19, 128 }
  0xc2   :  { %p8752_p7 = scmp.ne.s32.totalorder %s152_s19, %s8751_s3  ;;  %p8756_p8 = scmp.lt.s32.totalorder %s152_s19, %s152_s19 }
  0xc3   :  { %p8757_p9 = scmp.lt.s32.totalorder %s8755_s11, %s8751_s3 }
  0xc5   :  { %p8758_p10 = por %p8757_p9, %p8756_p8 }
  0xc7   :  { %p8759_p11 = pnand %p8758_p10, %p8752_p7 }
  0xc9   :  { %8762 = shalt.err (!%p8759_p11)
}
  0xca   :  { %154 = dma.hbm_to_vmem [thread:$0]  %s9390_s12, 112, %s152_s19, [#allocation20]  }
  0xcb   :  { %8763 = dma.done.wait [#allocation3], 2048  }
  0xcc   :  { %8764 = vsyncadd [#allocation3], 4294965248 }
  0xcd   :  { %8765 = dma.done.wait [#allocation5], 8224  }
  0xce   :  { %8766 = vsyncadd [#allocation5], 4294959072 }
  0xcf   :  { %8767 = dma.done.wait [#allocation8], 128  }
  0xd0   :  { %8768 = vsyncadd [#allocation8], 4294967168 }
  0xd1   :  { %8769 = dma.done.wait [#allocation11], 32832  }
  0xd2   :  { %8770 = vsyncadd [#allocation11], 4294934464 }
  0xd3   :  { %8771 = dma.done.wait [#allocation14], 256  }
  0xd4   :  { %8772 = vsyncadd [#allocation14], 4294967040 }
  0xd5   :  { %8773 = dma.done.wait [#allocation17], 57472  }
  0xd6   :  { %8774 = vsyncadd [#allocation17], 4294909824 }
  0xd7   :  { %8775 = dma.done.wait [#allocation20], 112  }
  0xd8   :  { %8776 = vsyncadd [#allocation20], 4294967184  ;;  %v8797_v0 = vmov 0   ;;  %v7699_v1 = vld [vmem:[#allocation2 + $0x4] ss:$8 sps:$4 sm:$0xff]  }
  0xd9   :  { %334 = vmatprep.mubr.bf16.mxu0 %v8797_v0  ;;  %v7701_v2 = vld [vmem:[#allocation2] ss:$8 sps:$4 sm:$0xff]   ;;  %302 = vmatprep.subr.bf16.mxu0 %v7699_v1  ;;  %v7702_v3 = vld [vmem:[#allocation2 + $0x14] ss:$8 sps:$4 sm:$0xff]   ;;  %v7704_v4 = vld [vmem:[#allocation2 + $0x10] ss:$8 sps:$4 sm:$0xff]  }
  0xda   :  { %303 = vmatpush1.bf16.msra.mxu0 %v7701_v2  ;;  %v7705_v5 = vld [vmem:[#allocation2 + $0x24] ss:$8 sps:$4 sm:$0xff]   ;;  %v7707_v6 = vld [vmem:[#allocation2 + $0x20] ss:$8 sps:$4 sm:$0xff]   ;;  %v7708_v7 = vld [vmem:[#allocation2 + $0x34] ss:$8 sps:$4 sm:$0xff]  }
  0xdb   :  { %304 = vmatprep.subr.bf16.mxu0 %v7702_v3  ;;  %v7710_v8 = vld [vmem:[#allocation2 + $0x30] ss:$8 sps:$4 sm:$0xff]   ;;  %v7711_v9 = vld [vmem:[#allocation2 + $0x44] ss:$8 sps:$4 sm:$0xff]   ;;  %v7713_v10 = vld [vmem:[#allocation2 + $0x40] ss:$8 sps:$4 sm:$0xff]  }
  0xdc   :  { %v7714_v11 = vld [vmem:[#allocation2 + $0x54] ss:$8 sps:$4 sm:$0xff]   ;;  %v7716_v12 = vld [vmem:[#allocation2 + $0x50] ss:$8 sps:$4 sm:$0xff]   ;;  %v7717_v13 = vld [vmem:[#allocation2 + $0x64] ss:$8 sps:$4 sm:$0xff]  }
  0xdd   :  { %v7719_v14 = vld [vmem:[#allocation2 + $0x60] ss:$8 sps:$4 sm:$0xff]   ;;  %v7720_v15 = vld [vmem:[#allocation2 + $0x74] ss:$8 sps:$4 sm:$0xff]   ;;  %v7722_v16 = vld [vmem:[#allocation2 + $0x70] ss:$8 sps:$4 sm:$0xff]  }
  0xde   :  { %305 = vmatpush1.bf16.msra.mxu0 %v7704_v4  ;;  %v192_v17 = vld [vmem:[%s9378_s0] sm:$0xff]  ;;  %v996_v52 = vld [vmem:[#allocation12] sm:$0xff]  ;;  %v212_v4 = vlaneseq }
  0xdf   :  { %306 = vmatprep.subr.bf16.mxu0 %v7705_v5  ;;  %v7725_v18 = vld [vmem:[#allocation6 + $0x4] ss:$16 sps:$4 sm:$0xff]   ;;  %v7723_v19 = vld [vmem:[#allocation6] ss:$16 sps:$4 sm:$0xff]   ;;  %v193_v20 = vpack.c.bf16 %v192_v17, %v192_v17  ;;  %v7773_v51 = vld [vmem:[#allocation6 + $0xc] ss:$16 sps:$4 sm:$0xff]  }
  0xe0   :  { %v7728_v21 = vld [vmem:[#allocation6 + $0x24] ss:$16 sps:$4 sm:$0xff]   ;;  %v7726_v22 = vld [vmem:[#allocation6 + $0x20] ss:$16 sps:$4 sm:$0xff]   ;;  %v9022_v5 = vshrl.u32 %v212_v4, 7 }
  0xe1   :  { %v7731_v23 = vld [vmem:[#allocation6 + $0x44] ss:$16 sps:$4 sm:$0xff]   ;;  %v7729_v24 = vld [vmem:[#allocation6 + $0x40] ss:$16 sps:$4 sm:$0xff]  }
  0xe2   :  { %307 = vmatpush1.bf16.msra.mxu0 %v7707_v6  ;;  %v7734_v25 = vld [vmem:[#allocation6 + $0x64] ss:$16 sps:$4 sm:$0xff]   ;;  %v7732_v26 = vld [vmem:[#allocation6 + $0x60] ss:$16 sps:$4 sm:$0xff]   ;;  %v9025_v6 = vsub.s32 0, %v9022_v5 }
  0xe3   :  { %308 = vmatprep.subr.bf16.mxu0 %v7708_v7  ;;  %v7737_v27 = vld [vmem:[#allocation6 + $0x84] ss:$16 sps:$4 sm:$0xff]   ;;  %v7735_v28 = vld [vmem:[#allocation6 + $0x80] ss:$16 sps:$4 sm:$0xff]   ;;  %v210_v7 = vld [vmem:[#allocation4] sm:$0x3] }
  0xe4   :  { %v7740_v29 = vld [vmem:[#allocation6 + $0xa4] ss:$16 sps:$4 sm:$0xff]   ;;  %v7738_v30 = vld [vmem:[#allocation6 + $0xa0] ss:$16 sps:$4 sm:$0xff]  }
  0xe5   :  { %v7743_v31 = vld [vmem:[#allocation6 + $0xc4] ss:$16 sps:$4 sm:$0xff]   ;;  %v7741_v32 = vld [vmem:[#allocation6 + $0xc0] ss:$16 sps:$4 sm:$0xff]  }
  0xe6   :  { %309 = vmatpush1.bf16.msra.mxu0 %v7710_v8  ;;  %v7746_v33 = vld [vmem:[#allocation6 + $0xe4] ss:$16 sps:$4 sm:$0xff]   ;;  %v7744_v34 = vld [vmem:[#allocation6 + $0xe0] ss:$16 sps:$4 sm:$0xff]   ;;  %v9028_v8 = vsub.s32 1, %v9022_v5 }
  0xe7   :  { %310 = vmatprep.subr.bf16.mxu0 %v7711_v9  ;;  %v7749_v35 = vld [vmem:[#allocation6 + $0x104] ss:$16 sps:$4 sm:$0xff]   ;;  %v7747_v36 = vld [vmem:[#allocation6 + $0x100] ss:$16 sps:$4 sm:$0xff]   ;;  %v215_v9 = vrot.slane %v210_v7, %v9025_v6 }
  0xe8   :  { %v7752_v37 = vld [vmem:[#allocation6 + $0x124] ss:$16 sps:$4 sm:$0xff]   ;;  %v7750_v38 = vld [vmem:[#allocation6 + $0x120] ss:$16 sps:$4 sm:$0xff]  }
  0xe9   :  { %v7755_v39 = vld [vmem:[#allocation6 + $0x144] ss:$16 sps:$4 sm:$0xff]   ;;  %v7753_v40 = vld [vmem:[#allocation6 + $0x140] ss:$16 sps:$4 sm:$0xff]  }
  0xea   :  { %311 = vmatpush1.bf16.msra.mxu0 %v7713_v10  ;;  %v7758_v41 = vld [vmem:[#allocation6 + $0x164] ss:$16 sps:$4 sm:$0xff]   ;;  %v7756_v42 = vld [vmem:[#allocation6 + $0x160] ss:$16 sps:$4 sm:$0xff]   ;;  %v219_v10 = vrot.slane %v210_v7, %v9028_v8 }
  0xeb   :  { %312 = vmatprep.subr.bf16.mxu0 %v7714_v11  ;;  %v7761_v43 = vld [vmem:[#allocation6 + $0x184] ss:$16 sps:$4 sm:$0xff]   ;;  %v7759_v44 = vld [vmem:[#allocation6 + $0x180] ss:$16 sps:$4 sm:$0xff]  }
  0xec   :  { %v7764_v45 = vld [vmem:[#allocation6 + $0x1a4] ss:$16 sps:$4 sm:$0xff]   ;;  %v7762_v46 = vld [vmem:[#allocation6 + $0x1a0] ss:$16 sps:$4 sm:$0xff]  }
  0xed   :  { %v7767_v47 = vld [vmem:[#allocation6 + $0x1c4] ss:$16 sps:$4 sm:$0xff]   ;;  %v7765_v48 = vld [vmem:[#allocation6 + $0x1c0] ss:$16 sps:$4 sm:$0xff]  }
  0xee   :  { %313 = vmatpush1.bf16.msra.mxu0 %v7716_v12  ;;  %v7770_v49 = vld [vmem:[#allocation6 + $0x1e4] ss:$16 sps:$4 sm:$0xff]   ;;  %v7768_v50 = vld [vmem:[#allocation6 + $0x1e0] ss:$16 sps:$4 sm:$0xff]  }
  0xef   :  { %314 = vmatprep.subr.bf16.mxu0 %v7717_v13  ;;  %v1000_v53 = vld [vmem:[#allocation12 + $0x20] sm:$0xff] }
  0xf0   :  { %v6821_v54 = vcombine.high %v996_v52, %v1000_v53  ;;  %v6820_v55 = vcombine.low %v996_v52, %v1000_v53  ;;  %v1004_v56 = vld [vmem:[#allocation12 + $0x40] sm:$0xff]  ;;  %v997_v53 = vld [vmem:[#allocation12 + $0x8] sm:$0xff] }
  0xf1   :  { %v1008_v57 = vld [vmem:[#allocation12 + $0x60] sm:$0xff] }
  0xf2   :  { %315 = vmatpush1.bf16.msra.mxu0 %v7719_v14  ;;  %v6829_v58 = vcombine.high %v1004_v56, %v1008_v57  ;;  %2574 = vmatprep.subr.bf16.mxu1 %v6821_v54  ;;  %v6828_v59 = vcombine.low %v1004_v56, %v1008_v57  ;;  %v1012_v60 = vld [vmem:[#allocation12 + $0x80] sm:$0xff]  ;;  %v1001_v54 = vld [vmem:[#allocation12 + $0x28] sm:$0xff] }
  0xf3   :  { %316 = vmatprep.subr.bf16.mxu0 %v7720_v15  ;;  %2575 = vmatpush1.bf16.msra.mxu1 %v6820_v55  ;;  %v1016_v61 = vld [vmem:[#allocation12 + $0xa0] sm:$0xff]  ;;  %v7816_v55 = vld [vmem:[#allocation6 + $0x1e8] ss:$16 sps:$4 sm:$0xff]   ;;  %v6823_v56 = vcombine.high %v997_v53, %v1001_v54 }
  0xf4   :  { %2576 = vmatprep.subr.bf16.mxu1 %v6829_v58  ;;  %v6837_v62 = vcombine.high %v1012_v60, %v1016_v61  ;;  %v6836_v63 = vcombine.low %v1012_v60, %v1016_v61  ;;  %v1020_v0 = vld [vmem:[#allocation12 + $0xc0] sm:$0xff]  ;;  %v1005_v57 = vld [vmem:[#allocation12 + $0x48] sm:$0xff] }
  0xf5   :  { %v1024_v1 = vld [vmem:[#allocation12 + $0xe0] sm:$0xff]  ;;  %v1009_v58 = vld [vmem:[#allocation12 + $0x68] sm:$0xff] }
  0xf6   :  { %317 = vmatpush1.bf16.msra.mxu0 %v7722_v16  ;;  %v6845_v2 = vcombine.high %v1020_v0, %v1024_v1  ;;  %v6844_v3 = vcombine.low %v1020_v0, %v1024_v1  ;;  %v7818_v52 = vld [vmem:[#allocation6 + $0x1ec] ss:$16 sps:$4 sm:$0xff]   ;;  %v6831_v60 = vcombine.high %v1005_v57, %v1009_v58  ;;  %v1013_v61 = vld [vmem:[#allocation12 + $0x88] sm:$0xff] }
  0xf7   :  { %757 = vmatprep.subr.bf16.mxu0 %v7725_v18  ;;  %2577 = vmatpush1.bf16.msra.mxu1 %v6828_v59  ;;  %v6822_v59 = vcombine.low %v997_v53, %v1001_v54  ;;  %v1021_v1 = vld [vmem:[#allocation12 + $0xc8] sm:$0xff] }
  0xf8   :  { %2578 = vmatprep.subr.bf16.mxu1 %v6837_v62  ;;  %v1017_v62 = vld [vmem:[#allocation12 + $0xa8] sm:$0xff] }
  0xf9   :  { %335 = vmatmul.mubr.bf16.vlgmr.msra.gmra.mrb[0].mxu0 %v193_v20  ;;  %v6839_v0 = vcombine.high %v1013_v61, %v1017_v62  ;;  %v1073_v53 = vld [vmem:[#allocation12 + $0x268] sm:$0xff] }
  0xfa   :  { %758 = vmatpush1.bf16.msra.mxu0 %v7723_v19 }
  0xfb   :  { %759 = vmatprep.subr.bf16.mxu0 %v7728_v21  ;;  %2579 = vmatpush1.bf16.msra.mxu1 %v6836_v63  ;;  %v6830_v63 = vcombine.low %v1005_v57, %v1009_v58  ;;  %v1076_v57 = vld [vmem:[#allocation12 + $0x280] sm:$0xff] }
  0xfc   :  { %2580 = vmatprep.subr.bf16.mxu1 %v6845_v2  ;;  %v1025_v2 = vld [vmem:[#allocation12 + $0xe8] sm:$0xff]  ;;  %v1080_v58 = vld [vmem:[#allocation12 + $0x2a0] sm:$0xff] }
  0xfd   :  { %v6847_v4 = vcombine.high %v1021_v1, %v1025_v2  ;;  %v6846_v7 = vcombine.low %v1021_v1, %v1025_v2  ;;  %v1084_v1 = vld [vmem:[#allocation12 + $0x2c0] sm:$0xff] }
  0xfe   :  { %760 = vmatpush1.bf16.msra.mxu0 %v7726_v22  ;;  %v7771_v22 = vld [vmem:[#allocation6 + $0x8] ss:$16 sps:$4 sm:$0xff]   ;;  %v1088_v2 = vld [vmem:[#allocation12 + $0x2e0] sm:$0xff] }
  0xff   :  { %761 = vmatprep.subr.bf16.mxu0 %v7731_v23  ;;  %2581 = vmatpush1.bf16.msra.mxu1 %v6844_v3  ;;  %v6838_v3 = vcombine.low %v1013_v61, %v1017_v62  ;;  %v1081_v61 = vld [vmem:[#allocation12 + $0x2a8] sm:$0xff] }
 0x102   :  { %762 = vmatpush1.bf16.msra.mxu0 %v7729_v24  ;;  %v7776_v24 = vld [vmem:[#allocation6 + $0x2c] ss:$16 sps:$4 sm:$0xff]  }
 0x103   :  { %763 = vmatprep.subr.bf16.mxu0 %v7734_v25  ;;  %v7774_v25 = vld [vmem:[#allocation6 + $0x28] ss:$16 sps:$4 sm:$0xff]  }
 0x106   :  { %764 = vmatpush1.bf16.msra.mxu0 %v7732_v26  ;;  %v7779_v26 = vld [vmem:[#allocation6 + $0x4c] ss:$16 sps:$4 sm:$0xff]  }
 0x107   :  { %765 = vmatprep.subr.bf16.mxu0 %v7737_v27  ;;  %v7777_v27 = vld [vmem:[#allocation6 + $0x48] ss:$16 sps:$4 sm:$0xff]  }
 0x10a   :  { %766 = vmatpush1.bf16.msra.mxu0 %v7735_v28  ;;  %v7782_v28 = vld [vmem:[#allocation6 + $0x6c] ss:$16 sps:$4 sm:$0xff]  }
 0x10b   :  { %767 = vmatprep.subr.bf16.mxu0 %v7740_v29  ;;  %v7780_v29 = vld [vmem:[#allocation6 + $0x68] ss:$16 sps:$4 sm:$0xff]  }
 0x10e   :  { %768 = vmatpush1.bf16.msra.mxu0 %v7738_v30  ;;  %v7785_v30 = vld [vmem:[#allocation6 + $0x8c] ss:$16 sps:$4 sm:$0xff]  }
 0x10f   :  { %769 = vmatprep.subr.bf16.mxu0 %v7743_v31  ;;  %v7783_v31 = vld [vmem:[#allocation6 + $0x88] ss:$16 sps:$4 sm:$0xff]  }
 0x112   :  { %770 = vmatpush1.bf16.msra.mxu0 %v7741_v32  ;;  %v7788_v32 = vld [vmem:[#allocation6 + $0xac] ss:$16 sps:$4 sm:$0xff]  }
 0x113   :  { %771 = vmatprep.subr.bf16.mxu0 %v7746_v33  ;;  %v7786_v33 = vld [vmem:[#allocation6 + $0xa8] ss:$16 sps:$4 sm:$0xff]  }
 0x116   :  { %772 = vmatpush1.bf16.msra.mxu0 %v7744_v34  ;;  %v7791_v34 = vld [vmem:[#allocation6 + $0xcc] ss:$16 sps:$4 sm:$0xff]  }
 0x117   :  { %773 = vmatprep.subr.bf16.mxu0 %v7749_v35  ;;  %v7789_v35 = vld [vmem:[#allocation6 + $0xc8] ss:$16 sps:$4 sm:$0xff]  }
 0x11a   :  { %774 = vmatpush1.bf16.msra.mxu0 %v7747_v36  ;;  %v7794_v36 = vld [vmem:[#allocation6 + $0xec] ss:$16 sps:$4 sm:$0xff]  }
 0x11b   :  { %775 = vmatprep.subr.bf16.mxu0 %v7752_v37  ;;  %v7792_v37 = vld [vmem:[#allocation6 + $0xe8] ss:$16 sps:$4 sm:$0xff]  }
 0x11e   :  { %776 = vmatpush1.bf16.msra.mxu0 %v7750_v38  ;;  %v7797_v38 = vld [vmem:[#allocation6 + $0x10c] ss:$16 sps:$4 sm:$0xff]  }
 0x11f   :  { %777 = vmatprep.subr.bf16.mxu0 %v7755_v39  ;;  %v7795_v39 = vld [vmem:[#allocation6 + $0x108] ss:$16 sps:$4 sm:$0xff]  }
 0x122   :  { %778 = vmatpush1.bf16.msra.mxu0 %v7753_v40  ;;  %v7800_v40 = vld [vmem:[#allocation6 + $0x12c] ss:$16 sps:$4 sm:$0xff]  }
 0x123   :  { %779 = vmatprep.subr.bf16.mxu0 %v7758_v41  ;;  %v7798_v41 = vld [vmem:[#allocation6 + $0x128] ss:$16 sps:$4 sm:$0xff]  }
 0x126   :  { %780 = vmatpush1.bf16.msra.mxu0 %v7756_v42  ;;  %v7803_v42 = vld [vmem:[#allocation6 + $0x14c] ss:$16 sps:$4 sm:$0xff]  }
 0x127   :  { %781 = vmatprep.subr.bf16.mxu0 %v7761_v43  ;;  %v7801_v43 = vld [vmem:[#allocation6 + $0x148] ss:$16 sps:$4 sm:$0xff]  }
 0x12a   :  { %782 = vmatpush1.bf16.msra.mxu0 %v7759_v44  ;;  %v7806_v44 = vld [vmem:[#allocation6 + $0x16c] ss:$16 sps:$4 sm:$0xff]  }
 0x12b   :  { %783 = vmatprep.subr.bf16.mxu0 %v7764_v45  ;;  %v7804_v45 = vld [vmem:[#allocation6 + $0x168] ss:$16 sps:$4 sm:$0xff]  }
 0x12e   :  { %784 = vmatpush1.bf16.msra.mxu0 %v7762_v46  ;;  %v7809_v46 = vld [vmem:[#allocation6 + $0x18c] ss:$16 sps:$4 sm:$0xff]  }
 0x12f   :  { %785 = vmatprep.subr.bf16.mxu0 %v7767_v47  ;;  %v7807_v47 = vld [vmem:[#allocation6 + $0x188] ss:$16 sps:$4 sm:$0xff]  }
 0x132   :  { %786 = vmatpush1.bf16.msra.mxu0 %v7765_v48  ;;  %v7812_v48 = vld [vmem:[#allocation6 + $0x1ac] ss:$16 sps:$4 sm:$0xff]  }
 0x133   :  { %787 = vmatprep.subr.bf16.mxu0 %v7770_v49  ;;  %v7810_v49 = vld [vmem:[#allocation6 + $0x1a8] ss:$16 sps:$4 sm:$0xff]  }
 0x136   :  { %788 = vmatpush1.bf16.msra.mxu0 %v7768_v50  ;;  %v7815_v50 = vld [vmem:[#allocation6 + $0x1cc] ss:$16 sps:$4 sm:$0xff]  }
 0x137   :  { %798 = vmatprep.subr.bf16.mxu0 %v7773_v51  ;;  %v7813_v51 = vld [vmem:[#allocation6 + $0x1c8] ss:$16 sps:$4 sm:$0xff]  }
 0x1cc   :  { %v336_v11 = vpop.f32.mrb[0].mxu0 }
 0x1cd   :  { %v337_v12 = vadd.f32 %v336_v11, %v215_v9  ;;  %v338_v13 = vpop.f32.mrb[1].mxu0  ;;  %v1028_v9 = vld [vmem:[#allocation12 + $0x100] sm:$0xff]  ;;  %v1029_v11 = vld [vmem:[#allocation12 + $0x108] sm:$0xff] }
 0x1ce   :  { %v339_v14 = vadd.f32 %v338_v13, %v219_v10  ;;  %v340_v15 = vpop.f32.mrb[2].mxu0  ;;  %v1032_v10 = vld [vmem:[#allocation12 + $0x120] sm:$0xff]  ;;  %v1033_v13 = vld [vmem:[#allocation12 + $0x128] sm:$0xff] }
 0x1cf   :  { %vm343_vm0 = vcmp.ge.f32.partialorder %v337_v12, 0.0  ;;  %v345_v16 = vmul.f32 0.2, %v337_v12  ;;  %v341_v17 = vpop.f32.mrb[3].mxu0  ;;  %v6855_v15 = vcombine.high %v1029_v11, %v1033_v13 }
 0x1d0   :  { %vm344_vm1 = vcmp.ge.f32.partialorder %v339_v14, 0.0  ;;  %v346_v18 = vmul.f32 0.2, %v339_v14  ;;  %v1036_v17 = vld [vmem:[#allocation12 + $0x140] sm:$0xff] }
 0x1d1   :  { %v347_v19 = vsel %vm343_vm0, %v337_v12, %v345_v16  ;;  %v6853_v12 = vcombine.high %v1028_v9, %v1032_v10  ;;  %v6852_v16 = vcombine.low %v1028_v9, %v1032_v10 }
 0x1d2   :  { %v348_v20 = vsel %vm344_vm1, %v339_v14, %v346_v18  ;;  %v9032_v23 = vpack.c.bf16 %v347_v19, %v347_v19  ;;  %v6854_v14 = vcombine.low %v1029_v11, %v1033_v13  ;;  %v1040_v18 = vld [vmem:[#allocation12 + $0x160] sm:$0xff]  ;;  %v1037_v19 = vld [vmem:[#allocation12 + $0x148] sm:$0xff]  ;;  %v6908_v11 = vcombine.low %v1084_v1, %v1088_v2 }
 0x1d3   :  { %v350_v21 = vpack.c.bf16 %v348_v20, %v348_v20  ;;  %2582 = vmatprep.subr.bf16.mxu1 %v6853_v12  ;;  %v6861_v20 = vcombine.high %v1036_v17, %v1040_v18  ;;  %v1092_v12 = vld [vmem:[#allocation12 + $0x300] sm:$0xff] }
 0x1d4   :  { %2583 = vmatpush1.bf16.msra.mxu1 %v6852_v16  ;;  %v1096_v13 = vld [vmem:[#allocation12 + $0x320] sm:$0xff]  ;;  %v1097_v16 = vld [vmem:[#allocation12 + $0x328] sm:$0xff] }
 0x1d5   :  { %789 = vmatprep.mubr.bf16.mxu0 %v350_v21  ;;  %2584 = vmatprep.subr.bf16.mxu1 %v6861_v20  ;;  %v1100_v20 = vld [vmem:[#allocation12 + $0x340] sm:$0xff] }
 0x1d6   :  { %790 = vmatmul.mubr.bf16.vlgmr.msra.gmra.mrb[4].mxu0 %v9032_v23 }
 0x1d7   :  { %799 = vmatpush1.bf16.msra.mxu0 %v7771_v22  ;;  %830 = vmatprep.mubr.bf16.mxu0 %v350_v21  ;;  %v1041_v21 = vld [vmem:[#allocation12 + $0x168] sm:$0xff] }
 0x1d8   :  { %800 = vmatprep.subr.bf16.mxu0 %v7776_v24  ;;  %v6862_v22 = vcombine.low %v1037_v19, %v1041_v21  ;;  %v6860_v24 = vcombine.low %v1036_v17, %v1040_v18 }
 0x1da   :  { %2585 = vmatpush1.bf16.msra.mxu1 %v6860_v24  ;;  %v1105_v24 = vld [vmem:[#allocation12 + $0x368] sm:$0xff] }
 0x1db   :  { %801 = vmatpush1.bf16.msra.mxu0 %v7774_v25  ;;  %v1044_v25 = vld [vmem:[#allocation12 + $0x180] sm:$0xff] }
 0x1dc   :  { %802 = vmatprep.subr.bf16.mxu0 %v7779_v26  ;;  %v1048_v26 = vld [vmem:[#allocation12 + $0x1a0] sm:$0xff] }
 0x1df   :  { %803 = vmatpush1.bf16.msra.mxu0 %v7777_v27  ;;  %v1045_v27 = vld [vmem:[#allocation12 + $0x188] sm:$0xff] }
 0x1e0   :  { %804 = vmatprep.subr.bf16.mxu0 %v7782_v28  ;;  %v6869_v28 = vcombine.high %v1044_v25, %v1048_v26 }
 0x1e2   :  { %2586 = vmatprep.subr.bf16.mxu1 %v6869_v28  ;;  %v1108_v28 = vld [vmem:[#allocation12 + $0x380] sm:$0xff] }
 0x1e3   :  { %805 = vmatpush1.bf16.msra.mxu0 %v7780_v29  ;;  %v1049_v29 = vld [vmem:[#allocation12 + $0x1a8] sm:$0xff] }
 0x1e4   :  { %806 = vmatprep.subr.bf16.mxu0 %v7785_v30  ;;  %v6870_v30 = vcombine.low %v1045_v27, %v1049_v29 }
 0x1e7   :  { %807 = vmatpush1.bf16.msra.mxu0 %v7783_v31  ;;  %v6871_v31 = vcombine.high %v1045_v27, %v1049_v29  ;;  %v1112_v29 = vld [vmem:[#allocation12 + $0x3a0] sm:$0xff] }
 0x1e8   :  { %808 = vmatprep.subr.bf16.mxu0 %v7788_v32  ;;  %v6868_v32 = vcombine.low %v1044_v25, %v1048_v26 }
 0x1ea   :  { %2587 = vmatpush1.bf16.msra.mxu1 %v6868_v32  ;;  %v1113_v32 = vld [vmem:[#allocation12 + $0x3a8] sm:$0xff] }
 0x1eb   :  { %809 = vmatpush1.bf16.msra.mxu0 %v7786_v33  ;;  %v1052_v33 = vld [vmem:[#allocation12 + $0x1c0] sm:$0xff] }
 0x1ec   :  { %810 = vmatprep.subr.bf16.mxu0 %v7791_v34  ;;  %v1056_v34 = vld [vmem:[#allocation12 + $0x1e0] sm:$0xff] }
 0x1ef   :  { %811 = vmatpush1.bf16.msra.mxu0 %v7789_v35  ;;  %v1053_v35 = vld [vmem:[#allocation12 + $0x1c8] sm:$0xff] }
 0x1f0   :  { %812 = vmatprep.subr.bf16.mxu0 %v7794_v36  ;;  %v6877_v36 = vcombine.high %v1052_v33, %v1056_v34 }
 0x1f2   :  { %2588 = vmatprep.subr.bf16.mxu1 %v6877_v36 }
 0x1f3   :  { %813 = vmatpush1.bf16.msra.mxu0 %v7792_v37  ;;  %v1057_v37 = vld [vmem:[#allocation12 + $0x1e8] sm:$0xff] }
 0x1f4   :  { %814 = vmatprep.subr.bf16.mxu0 %v7797_v38  ;;  %v6878_v38 = vcombine.low %v1053_v35, %v1057_v37 }
 0x1f7   :  { %815 = vmatpush1.bf16.msra.mxu0 %v7795_v39  ;;  %v6879_v39 = vcombine.high %v1053_v35, %v1057_v37  ;;  %v1120_v35 = vld [vmem:[#allocation12 + $0x3e0] sm:$0xff] }
 0x1f8   :  { %816 = vmatprep.subr.bf16.mxu0 %v7800_v40  ;;  %v6876_v40 = vcombine.low %v1052_v33, %v1056_v34  ;;  %v6932_v33 = vcombine.low %v1108_v28, %v1112_v29  ;;  %v1116_v34 = vld [vmem:[#allocation12 + $0x3c0] sm:$0xff] }
 0x1fa   :  { %2589 = vmatpush1.bf16.msra.mxu1 %v6876_v40  ;;  %v1121_v40 = vld [vmem:[#allocation12 + $0x3e8] sm:$0xff] }
 0x1fb   :  { %817 = vmatpush1.bf16.msra.mxu0 %v7798_v41  ;;  %v1060_v41 = vld [vmem:[#allocation12 + $0x200] sm:$0xff] }
 0x1fc   :  { %818 = vmatprep.subr.bf16.mxu0 %v7803_v42  ;;  %v1064_v42 = vld [vmem:[#allocation12 + $0x220] sm:$0xff] }
 0x1ff   :  { %819 = vmatpush1.bf16.msra.mxu0 %v7801_v43  ;;  %v1061_v43 = vld [vmem:[#allocation12 + $0x208] sm:$0xff] }
 0x200   :  { %820 = vmatprep.subr.bf16.mxu0 %v7806_v44  ;;  %v6885_v44 = vcombine.high %v1060_v41, %v1064_v42 }
 0x202   :  { %2590 = vmatprep.subr.bf16.mxu1 %v6885_v44  ;;  %v9036_v44 = vld [vmem:[#allocation12 + $0x400] sm:$0xff] }
 0x203   :  { %821 = vmatpush1.bf16.msra.mxu0 %v7804_v45  ;;  %v1065_v45 = vld [vmem:[#allocation12 + $0x228] sm:$0xff] }
 0x204   :  { %822 = vmatprep.subr.bf16.mxu0 %v7809_v46  ;;  %v6886_v46 = vcombine.low %v1061_v43, %v1065_v45 }
 0x207   :  { %823 = vmatpush1.bf16.msra.mxu0 %v7807_v47  ;;  %v6887_v47 = vcombine.high %v1061_v43, %v1065_v45  ;;  %v9038_v45 = vld [vmem:[#allocation12 + $0x420] sm:$0xff] }
 0x208   :  { %824 = vmatprep.subr.bf16.mxu0 %v7812_v48  ;;  %v6884_v48 = vcombine.low %v1060_v41, %v1064_v42  ;;  %v6940_v42 = vcombine.low %v1116_v34, %v1120_v35 }
 0x20a   :  { %2591 = vmatpush1.bf16.msra.mxu1 %v6884_v48  ;;  %v9044_v48 = vld [vmem:[#allocation12 + $0x428] sm:$0xff] }
 0x20b   :  { %825 = vmatpush1.bf16.msra.mxu0 %v7810_v49  ;;  %v1068_v49 = vld [vmem:[#allocation12 + $0x240] sm:$0xff] }
 0x20c   :  { %826 = vmatprep.subr.bf16.mxu0 %v7815_v50  ;;  %v1072_v50 = vld [vmem:[#allocation12 + $0x260] sm:$0xff] }
 0x20f   :  { %827 = vmatpush1.bf16.msra.mxu0 %v7813_v51  ;;  %v1069_v51 = vld [vmem:[#allocation12 + $0x248] sm:$0xff] }
 0x210   :  { %828 = vmatprep.subr.bf16.mxu0 %v7818_v52  ;;  %v6893_v52 = vcombine.high %v1068_v49, %v1072_v50  ;;  %v6894_v54 = vcombine.low %v1069_v51, %v1073_v53 }
 0x212   :  { %2592 = vmatprep.subr.bf16.mxu1 %v6893_v52  ;;  %v9052_v52 = vld [vmem:[#allocation7] sm:$0xf] }
 0x213   :  { %829 = vmatpush1.bf16.msra.mxu0 %v7816_v55  ;;  %v6895_v55 = vcombine.high %v1069_v51, %v1073_v53  ;;  %v420_v53 = vrot.slane %v9052_v52, %v9025_v6 }
 0x214   :  { %2656 = vmatprep.subr.bf16.mxu0 %v6823_v56  ;;  %v6892_v56 = vcombine.low %v1068_v49, %v1072_v50  ;;  %v6948_v49 = vcombine.low %v9036_v44, %v9038_v45 }
 0x216   :  { %831 = vmatmul.mubr.bf16.vlgmr.msra.gmra.mrb[8].mxu0 %v9032_v23  ;;  %v6863_v23 = vcombine.high %v1037_v19, %v1041_v21  ;;  %2593 = vmatpush1.bf16.msra.mxu1 %v6892_v56  ;;  %v6916_v19 = vcombine.low %v1092_v12, %v1096_v13  ;;  %v1104_v21 = vld [vmem:[#allocation12 + $0x360] sm:$0xff] }
 0x217   :  { %2657 = vmatpush1.bf16.msra.mxu0 %v6822_v59  ;;  %v1077_v59 = vld [vmem:[#allocation12 + $0x288] sm:$0xff]  ;;  %v6924_v27 = vcombine.low %v1100_v20, %v1104_v21 }
 0x218   :  { %2658 = vmatprep.subr.bf16.mxu0 %v6831_v60  ;;  %v6901_v60 = vcombine.high %v1076_v57, %v1080_v58  ;;  %v6902_v62 = vcombine.low %v1077_v59, %v1081_v61 }
 0x21a   :  { %2594 = vmatprep.subr.bf16.mxu1 %v6901_v60 }
 0x21b   :  { %2659 = vmatpush1.bf16.msra.mxu0 %v6830_v63  ;;  %v6903_v63 = vcombine.high %v1077_v59, %v1081_v61 }
 0x21c   :  { %2660 = vmatprep.subr.bf16.mxu0 %v6839_v0  ;;  %v6900_v0 = vcombine.low %v1076_v57, %v1080_v58 }
 0x21e   :  { %2595 = vmatpush1.bf16.msra.mxu1 %v6900_v0 }
 0x21f   :  { %2661 = vmatpush1.bf16.msra.mxu0 %v6838_v3  ;;  %v1085_v3 = vld [vmem:[#allocation12 + $0x2c8] sm:$0xff] }
 0x220   :  { %2662 = vmatprep.subr.bf16.mxu0 %v6847_v4  ;;  %v6909_v4 = vcombine.high %v1084_v1, %v1088_v2 }
 0x222   :  { %2596 = vmatprep.subr.bf16.mxu1 %v6909_v4 }
 0x223   :  { %2663 = vmatpush1.bf16.msra.mxu0 %v6846_v7  ;;  %v1089_v7 = vld [vmem:[#allocation12 + $0x2e8] sm:$0xff]  ;;  %2597 = vmatpush1.bf16.msra.mxu1 %v6908_v11 }
 0x224   :  { %2664 = vmatprep.subr.bf16.mxu0 %v6855_v15  ;;  %v6910_v9 = vcombine.low %v1085_v3, %v1089_v7  ;;  %v6911_v10 = vcombine.high %v1085_v3, %v1089_v7  ;;  %v6917_v15 = vcombine.high %v1092_v12, %v1096_v13 }
 0x226   :  { %2598 = vmatprep.subr.bf16.mxu1 %v6917_v15 }
 0x227   :  { %2665 = vmatpush1.bf16.msra.mxu0 %v6854_v14  ;;  %v1093_v14 = vld [vmem:[#allocation12 + $0x308] sm:$0xff]  ;;  %2599 = vmatpush1.bf16.msra.mxu1 %v6916_v19 }
 0x228   :  { %2666 = vmatprep.subr.bf16.mxu0 %v6863_v23  ;;  %v6918_v17 = vcombine.low %v1093_v14, %v1097_v16  ;;  %v6919_v18 = vcombine.high %v1093_v14, %v1097_v16  ;;  %v6925_v23 = vcombine.high %v1100_v20, %v1104_v21 }
 0x22a   :  { %2600 = vmatprep.subr.bf16.mxu1 %v6925_v23 }
 0x22b   :  { %2667 = vmatpush1.bf16.msra.mxu0 %v6862_v22  ;;  %v1101_v22 = vld [vmem:[#allocation12 + $0x348] sm:$0xff]  ;;  %2601 = vmatpush1.bf16.msra.mxu1 %v6924_v27 }
 0x22c   :  { %2668 = vmatprep.subr.bf16.mxu0 %v6871_v31  ;;  %v6926_v25 = vcombine.low %v1101_v22, %v1105_v24  ;;  %v6927_v26 = vcombine.high %v1101_v22, %v1105_v24  ;;  %v6933_v31 = vcombine.high %v1108_v28, %v1112_v29 }
 0x22e   :  { %2602 = vmatprep.subr.bf16.mxu1 %v6933_v31 }
 0x22f   :  { %2669 = vmatpush1.bf16.msra.mxu0 %v6870_v30  ;;  %v1109_v30 = vld [vmem:[#allocation12 + $0x388] sm:$0xff]  ;;  %2603 = vmatpush1.bf16.msra.mxu1 %v6932_v33 }
 0x230   :  { %2670 = vmatprep.subr.bf16.mxu0 %v6879_v39  ;;  %v6934_v36 = vcombine.low %v1109_v30, %v1113_v32  ;;  %v6935_v37 = vcombine.high %v1109_v30, %v1113_v32  ;;  %v1117_v39 = vld [vmem:[#allocation12 + $0x3c8] sm:$0xff] }
 0x231   :  { %v6943_v41 = vcombine.high %v1117_v39, %v1121_v40  ;;  %v6942_v43 = vcombine.low %v1117_v39, %v1121_v40  ;;  %v9060_v39 = vld [vmem:[#allocation10] sm:$0xf] }
 0x233   :  { %2671 = vmatpush1.bf16.msra.mxu0 %v6878_v38  ;;  %v6941_v38 = vcombine.high %v1116_v34, %v1120_v35 }
 0x234   :  { %2672 = vmatprep.subr.bf16.mxu0 %v6887_v47  ;;  %v6949_v47 = vcombine.high %v9036_v44, %v9038_v45 }
 0x235   :  { %2604 = vmatprep.subr.bf16.mxu1 %v6941_v38  ;;  %v9058_v38 = vld [vmem:[#allocation9] sm:$0xf] }
 0x236   :  { %2605 = vmatpush1.bf16.msra.mxu1 %v6940_v42 }
 0x237   :  { %2673 = vmatpush1.bf16.msra.mxu0 %v6886_v46  ;;  %v9040_v46 = vld [vmem:[#allocation12 + $0x408] sm:$0xff]  ;;  %2615 = vmatprep.subr.bf16.mxu1 %v6949_v47  ;;  %v938_v47 = vrot.slane %v9058_v38, %v9028_v8 }
 0x238   :  { %2674 = vmatprep.subr.bf16.mxu0 %v6895_v55  ;;  %v6950_v50 = vcombine.low %v9040_v46, %v9044_v48  ;;  %v6951_v51 = vcombine.high %v9040_v46, %v9044_v48  ;;  %v1156_v46 = vld [vmem:[#allocation12 + $0x500] sm:$0xff] }
 0x239   :  { %v1160_v48 = vld [vmem:[#allocation12 + $0x520] sm:$0xff] }
 0x23b   :  { %2675 = vmatpush1.bf16.msra.mxu0 %v6894_v54  ;;  %v424_v54 = vrot.slane %v9052_v52, %v9028_v8 }
 0x23c   :  { %2676 = vmatprep.subr.bf16.mxu0 %v6903_v63 }
 0x23f   :  { %2677 = vmatpush1.bf16.msra.mxu0 %v6902_v62 }
 0x240   :  { %2678 = vmatprep.subr.bf16.mxu0 %v6911_v10 }
 0x243   :  { %2679 = vmatpush1.bf16.msra.mxu0 %v6910_v9 }
 0x244   :  { %2680 = vmatprep.subr.bf16.mxu0 %v6919_v18 }
 0x247   :  { %2681 = vmatpush1.bf16.msra.mxu0 %v6918_v17 }
 0x248   :  { %2682 = vmatprep.subr.bf16.mxu0 %v6927_v26 }
 0x24b   :  { %2683 = vmatpush1.bf16.msra.mxu0 %v6926_v25 }
 0x24c   :  { %2684 = vmatprep.subr.bf16.mxu0 %v6935_v37 }
 0x24f   :  { %2685 = vmatpush1.bf16.msra.mxu0 %v6934_v36 }
 0x250   :  { %2686 = vmatprep.subr.bf16.mxu0 %v6943_v41  ;;  %v934_v41 = vrot.slane %v9058_v38, %v9025_v6 }
 0x253   :  { %2687 = vmatpush1.bf16.msra.mxu0 %v6942_v43 }
 0x254   :  { %2697 = vmatprep.subr.bf16.mxu0 %v6951_v51 }
 0x2a9   :  { %v791_v55 = vpop.f32.mrb[4].mxu0 }
 0x2aa   :  { %v792_v56 = vadd.f32 %v791_v55, %v420_v53  ;;  %v793_v57 = vpop.f32.mrb[5].mxu0 }
 0x2ab   :  { %v794_v58 = vadd.f32 %v793_v57, %v424_v54  ;;  %v795_v59 = vpop.f32.mrb[6].mxu0  ;;  %v959_v54 = vrot.slane %v9060_v39, %v9025_v6  ;;  %v963_v57 = vrot.slane %v9060_v39, %v9028_v8 }
 0x2ac   :  { %v841_v60 = vrot.slane %v792_v56, 4  ;;  %v870_v61 = vmul.f32 %v792_v56, %v792_v56  ;;  %v796_v62 = vpop.f32.mrb[7].mxu0 }
 0x2ad   :  { %v847_v63 = vrot.slane %v794_v58, 4  ;;  %v871_v0 = vmul.f32 %v794_v58, %v794_v58 }
 0x2ae   :  { %v842_v1 = vadd.f32 %v841_v60, %v792_v56  ;;  %v874_v2 = vrot.slane %v870_v61, 4 }
 0x2af   :  { %v848_v3 = vadd.f32 %v847_v63, %v794_v58  ;;  %v880_v4 = vrot.slane %v871_v0, 4  ;;  %v1132_v63 = vld [vmem:[#allocation12 + $0x440] sm:$0xff] }
 0x2b0   :  { %v843_v7 = vrot.slane %v842_v1, 2  ;;  %v875_v9 = vadd.f32 %v874_v2, %v870_v61  ;;  %v1133_v2 = vld [vmem:[#allocation12 + $0x448] sm:$0xff] }
 0x2b1   :  { %v849_v10 = vrot.slane %v848_v3, 2  ;;  %v881_v11 = vadd.f32 %v880_v4, %v871_v0 }
 0x2b2   :  { %v844_v12 = vadd.f32 %v843_v7, %v842_v1  ;;  %v876_v13 = vrot.slane %v875_v9, 2  ;;  %v1136_v1 = vld [vmem:[#allocation12 + $0x460] sm:$0xff] }
 0x2b3   :  { %v850_v14 = vadd.f32 %v849_v10, %v848_v3  ;;  %v882_v15 = vrot.slane %v881_v11, 2  ;;  %v1137_v3 = vld [vmem:[#allocation12 + $0x468] sm:$0xff]  ;;  %v6957_v10 = vcombine.high %v1132_v63, %v1136_v1 }
 0x2b4   :  { %v845_v16 = vrot.slane %v844_v12, 1  ;;  %v877_v17 = vadd.f32 %v876_v13, %v875_v9  ;;  %v1144_v13 = vld [vmem:[#allocation12 + $0x4a0] sm:$0xff] }
 0x2b5   :  { %v851_v18 = vrot.slane %v850_v14, 1  ;;  %v883_v19 = vadd.f32 %v882_v15, %v881_v11  ;;  %v6959_v11 = vcombine.high %v1133_v2, %v1137_v3  ;;  %v1145_v15 = vld [vmem:[#allocation12 + $0x4a8] sm:$0xff] }
 0x2b6   :  { %v846_v20 = vadd.f32 %v845_v16, %v844_v12  ;;  %v878_v21 = vrot.slane %v877_v17, 1  ;;  %v1140_v12 = vld [vmem:[#allocation12 + $0x480] sm:$0xff]  ;;  %v6956_v16 = vcombine.low %v1132_v63, %v1136_v1 }
 0x2b7   :  { %v852_v22 = vadd.f32 %v851_v18, %v850_v14  ;;  %v884_v23 = vrot.slane %v883_v19, 1  ;;  %v1141_v14 = vld [vmem:[#allocation12 + $0x488] sm:$0xff]  ;;  %v6965_v18 = vcombine.high %v1140_v12, %v1144_v13 }
 0x2b8   :  { %v866_v24 = vmul.f32 0.125, %v846_v20  ;;  %v879_v25 = vadd.f32 %v878_v21, %v877_v17  ;;  %v6958_v17 = vcombine.low %v1133_v2, %v1137_v3  ;;  %v1148_v20 = vld [vmem:[#allocation12 + $0x4c0] sm:$0xff] }
 0x2b9   :  { %v867_v26 = vmul.f32 0.125, %v852_v22  ;;  %v885_v27 = vadd.f32 %v884_v23, %v883_v19  ;;  %v6967_v19 = vcombine.high %v1141_v14, %v1145_v15  ;;  %v1152_v21 = vld [vmem:[#allocation12 + $0x4e0] sm:$0xff]  ;;  %v1149_v22 = vld [vmem:[#allocation12 + $0x4c8] sm:$0xff] }
 0x2ba   :  { %v898_v28 = vmul.f32 0.125, %v879_v25  ;;  %v902_v29 = vmul.f32 %v866_v24, %v866_v24  ;;  %v914_v40 = vsub.f32 %v792_v56, %v866_v24  ;;  %v1153_v23 = vld [vmem:[#allocation12 + $0x4e8] sm:$0xff]  ;;  %v6964_v24 = vcombine.low %v1140_v12, %v1144_v13  ;;  %v1180_v2 = vld [vmem:[#allocation12 + $0x5c0] sm:$0xff] }
 0x2bb   :  { %v899_v30 = vmul.f32 0.125, %v885_v27  ;;  %v903_v31 = vmul.f32 %v867_v26, %v867_v26  ;;  %v915_v43 = vsub.f32 %v794_v58, %v867_v26  ;;  %v6966_v25 = vcombine.low %v1141_v14, %v1145_v15  ;;  %v1185_v12 = vld [vmem:[#allocation12 + $0x5e8] sm:$0xff] }
 0x2bc   :  { %v906_v32 = vsub.f32 %v898_v28, %v902_v29  ;;  %v6973_v44 = vcombine.high %v1148_v20, %v1152_v21  ;;  %v6975_v45 = vcombine.high %v1149_v22, %v1153_v23  ;;  %v9085_v26 = vsub.s32 2, %v9022_v5 }
 0x2bd   :  { %v907_v33 = vsub.f32 %v899_v30, %v903_v31  ;;  %v6972_v27 = vcombine.low %v1148_v20, %v1152_v21  ;;  %v6974_v28 = vcombine.low %v1149_v22, %v1153_v23  ;;  %v9088_v29 = vsub.s32 3, %v9022_v5  ;;  %v1188_v23 = vld [vmem:[#allocation12 + $0x600] sm:$0xff] }
 0x2be   :  { %v910_v34 = vmax.f32 %v906_v32, 0.0  ;;  %v6981_v30 = vcombine.high %v1156_v46, %v1160_v48  ;;  %v1164_v32 = vld [vmem:[#allocation12 + $0x540] sm:$0xff] }
 0x2bf   :  { %v911_v35 = vmax.f32 %v907_v33, 0.0  ;;  %v1168_v33 = vld [vmem:[#allocation12 + $0x560] sm:$0xff] }
 0x2c0   :  { %v918_v36 = vadd.f32 1e-05, %v910_v34  ;;  %v1165_v34 = vld [vmem:[#allocation12 + $0x548] sm:$0xff] }
 0x2c1   :  { %v919_v37 = vadd.f32 1e-05, %v911_v35  ;;  %v1169_v35 = vld [vmem:[#allocation12 + $0x568] sm:$0xff] }
 0x2c2   :  { %8459 = vrsqrt.f32 %v918_v36  ;;  %v428_v36 = vrot.slane %v9052_v52, %v9085_v26 }
 0x2c3   :  { %8461 = vrsqrt.f32 %v919_v37  ;;  %v432_v37 = vrot.slane %v9052_v52, %v9088_v29  ;;  %v6988_v52 = vcombine.low %v1164_v32, %v1168_v33 }
 0x2cc   :  { %v8460_v42 = vpop.eup %8459 }
 0x2cd   :  { %v8462_v51 = vpop.eup %8461  ;;  %v926_v53 = vmul.f32 %v8460_v42, %v914_v40  ;;  %v6980_v40 = vcombine.low %v1156_v46, %v1160_v48  ;;  %v6989_v42 = vcombine.high %v1164_v32, %v1168_v33  ;;  %v1193_v46 = vld [vmem:[#allocation12 + $0x628] sm:$0xff] }
 0x2ce   :  { %v927_v55 = vmul.f32 %v8462_v51, %v915_v43  ;;  %v6991_v43 = vcombine.high %v1165_v34, %v1169_v35 }
 0x2cf   :  { %v951_v59 = vmul.f32 %v934_v41, %v926_v53  ;;  %v1176_v53 = vld [vmem:[#allocation12 + $0x5a0] sm:$0xff] }
 0x2d0   :  { %v952_v60 = vmul.f32 %v938_v47, %v927_v55  ;;  %v1172_v47 = vld [vmem:[#allocation12 + $0x580] sm:$0xff]  ;;  %v1177_v55 = vld [vmem:[#allocation12 + $0x5a8] sm:$0xff] }
 0x2d1   :  { %v976_v56 = vadd.f32 %v959_v54, %v951_v59  ;;  %v1173_v54 = vld [vmem:[#allocation12 + $0x588] sm:$0xff] }
 0x2d2   :  { %v977_v61 = vadd.f32 %v963_v57, %v952_v60  ;;  %v6999_v1 = vcombine.high %v1173_v54, %v1177_v55 }
 0x2d3   :  { %vm980_vm2 = vcmp.ge.f32.partialorder %v976_v56, 0.0  ;;  %v984_v62 = vmul.f32 0.2, %v976_v56 }
 0x2d4   :  { %vm981_vm3 = vcmp.ge.f32.partialorder %v977_v61, 0.0  ;;  %v985_v58 = vmul.f32 0.2, %v977_v61 }
 0x2d5   :  { %v988_v0 = vsel %vm980_vm2, %v976_v56, %v984_v62 }
 0x2d6   :  { %v989_v4 = vsel %vm981_vm3, %v977_v61, %v985_v58  ;;  %v9072_v9 = vpack.c.bf16 %v988_v0, %v988_v0  ;;  %v6990_v61 = vcombine.low %v1165_v34, %v1169_v35  ;;  %v6997_v0 = vcombine.high %v1172_v47, %v1176_v53  ;;  %v1196_v35 = vld [vmem:[#allocation12 + $0x640] sm:$0xff] }
 0x2d7   :  { %v9070_v7 = vpack.c.bf16 %v989_v4, %v989_v4 }
 0x2d9   :  { %2606 = vmatprep.mubr.bf16.mxu1 %v9070_v7  ;;  %2688 = vmatprep.mubr.bf16.mxu0 %v9070_v7 }
 0x2da   :  { %2607 = vmatmul.mubr.bf16.vlgmr.msra.gmra.mrb[0].mxu1 %v9072_v9  ;;  %2689 = vmatmul.mubr.bf16.vlgmr.msra.gmra.mrb[12].mxu0 %v9072_v9 }
 0x2db   :  { %2616 = vmatpush1.bf16.msra.mxu1 %v6948_v49  ;;  %2698 = vmatpush1.bf16.msra.mxu0 %v6950_v50  ;;  %v1157_v49 = vld [vmem:[#allocation12 + $0x508] sm:$0xff] }
 0x2dc   :  { %2617 = vmatprep.subr.bf16.mxu1 %v6957_v10  ;;  %2699 = vmatprep.subr.bf16.mxu0 %v6959_v11  ;;  %v1161_v50 = vld [vmem:[#allocation12 + $0x528] sm:$0xff]  ;;  %v1184_v10 = vld [vmem:[#allocation12 + $0x5e0] sm:$0xff] }
 0x2dd   :  { %v6983_v31 = vcombine.high %v1157_v49, %v1161_v50  ;;  %v6982_v41 = vcombine.low %v1157_v49, %v1161_v50  ;;  %v1181_v11 = vld [vmem:[#allocation12 + $0x5c8] sm:$0xff]  ;;  %v7005_v21 = vcombine.high %v1180_v2, %v1184_v10 }
 0x2de   :  { %v7007_v22 = vcombine.high %v1181_v11, %v1185_v12 }
 0x2df   :  { %2618 = vmatpush1.bf16.msra.mxu1 %v6956_v16  ;;  %2700 = vmatpush1.bf16.msra.mxu0 %v6958_v17  ;;  %v6996_v17 = vcombine.low %v1172_v47, %v1176_v53 }
 0x2e0   :  { %2619 = vmatprep.subr.bf16.mxu1 %v6965_v18  ;;  %2701 = vmatprep.subr.bf16.mxu0 %v6967_v19  ;;  %v6998_v18 = vcombine.low %v1173_v54, %v1177_v55 }
 0x2e3   :  { %2620 = vmatpush1.bf16.msra.mxu1 %v6964_v24  ;;  %2702 = vmatpush1.bf16.msra.mxu0 %v6966_v25 }
 0x2e4   :  { %2621 = vmatprep.subr.bf16.mxu1 %v6973_v44  ;;  %2703 = vmatprep.subr.bf16.mxu0 %v6975_v45  ;;  %v1192_v44 = vld [vmem:[#allocation12 + $0x620] sm:$0xff]  ;;  %v1189_v45 = vld [vmem:[#allocation12 + $0x608] sm:$0xff] }
 0x2e5   :  { %v7013_v33 = vcombine.high %v1188_v23, %v1192_v44  ;;  %v7015_v34 = vcombine.high %v1189_v45, %v1193_v46  ;;  %v7012_v54 = vcombine.low %v1188_v23, %v1192_v44  ;;  %v7014_v55 = vcombine.low %v1189_v45, %v1193_v46 }
 0x2e7   :  { %2622 = vmatpush1.bf16.msra.mxu1 %v6972_v27  ;;  %2704 = vmatpush1.bf16.msra.mxu0 %v6974_v28  ;;  %v7004_v28 = vcombine.low %v1180_v2, %v1184_v10  ;;  %v1209_v2 = vld [vmem:[#allocation12 + $0x6a8] sm:$0xff] }
 0x2e8   :  { %2623 = vmatprep.subr.bf16.mxu1 %v6981_v30  ;;  %2705 = vmatprep.subr.bf16.mxu0 %v6983_v31  ;;  %v7006_v30 = vcombine.low %v1181_v11, %v1185_v12 }
 0x2e9   :  { %v832_v51 = vpop.f32.mrb[8].mxu0 }
 0x2ea   :  { %v9094_v57 = vadd.f32 %v832_v51, %v428_v36  ;;  %v834_v59 = vpop.f32.mrb[9].mxu0 }
 0x2eb   :  { %v9096_v60 = vadd.f32 %v834_v59, %v432_v37  ;;  %v836_v56 = vpop.f32.mrb[10].mxu0  ;;  %2624 = vmatpush1.bf16.msra.mxu1 %v6980_v40  ;;  %2706 = vmatpush1.bf16.msra.mxu0 %v6982_v41  ;;  %v1200_v40 = vld [vmem:[#allocation12 + $0x660] sm:$0xff]  ;;  %v1197_v41 = vld [vmem:[#allocation12 + $0x648] sm:$0xff] }
 0x2ec   :  { %v853_v62 = vrot.slane %v9094_v57, 4  ;;  %v872_v58 = vmul.f32 %v9094_v57, %v9094_v57  ;;  %v837_v63 = vpop.f32.mrb[11].mxu0  ;;  %2625 = vmatprep.subr.bf16.mxu1 %v6989_v42  ;;  %2707 = vmatprep.subr.bf16.mxu0 %v6991_v43  ;;  %v1201_v42 = vld [vmem:[#allocation12 + $0x668] sm:$0xff]  ;;  %v7020_v12 = vcombine.low %v1196_v35, %v1200_v40 }
 0x2ed   :  { %v859_v3 = vrot.slane %v9096_v60, 4  ;;  %v873_v4 = vmul.f32 %v9096_v60, %v9096_v60 }
 0x2ee   :  { %v854_v13 = vadd.f32 %v853_v62, %v9094_v57  ;;  %v886_v14 = vrot.slane %v872_v58, 4  ;;  %v1204_v62 = vld [vmem:[#allocation12 + $0x680] sm:$0xff] }
 0x2ef   :  { %v860_v15 = vadd.f32 %v859_v3, %v9096_v60  ;;  %v892_v16 = vrot.slane %v873_v4, 4  ;;  %2626 = vmatpush1.bf16.msra.mxu1 %v6988_v52  ;;  %2708 = vmatpush1.bf16.msra.mxu0 %v6990_v61  ;;  %v7021_v52 = vcombine.high %v1196_v35, %v1200_v40  ;;  %v7023_v61 = vcombine.high %v1197_v41, %v1201_v42  ;;  %v1232_v35 = vld [vmem:[#allocation12 + $0x760] sm:$0xff] }
 0x2f0   :  { %v855_v19 = vrot.slane %v854_v13, 2  ;;  %v887_v20 = vadd.f32 %v886_v14, %v872_v58  ;;  %2627 = vmatprep.subr.bf16.mxu1 %v6997_v0  ;;  %2709 = vmatprep.subr.bf16.mxu0 %v6999_v1  ;;  %v1208_v0 = vld [vmem:[#allocation12 + $0x6a0] sm:$0xff]  ;;  %v1205_v1 = vld [vmem:[#allocation12 + $0x688] sm:$0xff] }
 0x2f1   :  { %v861_v24 = vrot.slane %v860_v15, 2  ;;  %v893_v25 = vadd.f32 %v892_v16, %v873_v4  ;;  %v7031_v16 = vcombine.high %v1205_v1, %v1209_v2 }
 0x2f2   :  { %v856_v48 = vadd.f32 %v855_v19, %v854_v13  ;;  %v888_v49 = vrot.slane %v887_v20, 2  ;;  %v7022_v13 = vcombine.low %v1197_v41, %v1201_v42  ;;  %v1216_v19 = vld [vmem:[#allocation12 + $0x6e0] sm:$0xff] }
 0x2f3   :  { %v862_v50 = vadd.f32 %v861_v24, %v860_v15  ;;  %v894_v27 = vrot.slane %v893_v25, 2  ;;  %2628 = vmatpush1.bf16.msra.mxu1 %v6996_v17  ;;  %2710 = vmatpush1.bf16.msra.mxu0 %v6998_v18  ;;  %v7029_v15 = vcombine.high %v1204_v62, %v1208_v0  ;;  %v1212_v17 = vld [vmem:[#allocation12 + $0x6c0] sm:$0xff]  ;;  %v7028_v24 = vcombine.low %v1204_v62, %v1208_v0 }
 0x2f4   :  { %v857_v31 = vrot.slane %v856_v48, 1  ;;  %v889_v32 = vadd.f32 %v888_v49, %v887_v20  ;;  %2629 = vmatprep.subr.bf16.mxu1 %v7005_v21  ;;  %2711 = vmatprep.subr.bf16.mxu0 %v7007_v22  ;;  %v1213_v20 = vld [vmem:[#allocation12 + $0x6c8] sm:$0xff]  ;;  %v7037_v45 = vcombine.high %v1212_v17, %v1216_v19 }
 0x2f5   :  { %v863_v36 = vrot.slane %v862_v50, 1  ;;  %v895_v37 = vadd.f32 %v894_v27, %v893_v25  ;;  %v1217_v21 = vld [vmem:[#allocation12 + $0x6e8] sm:$0xff]  ;;  %v7030_v25 = vcombine.low %v1205_v1, %v1209_v2 }
 0x2f6   :  { %v858_v43 = vadd.f32 %v857_v31, %v856_v48  ;;  %v890_v47 = vrot.slane %v889_v32, 1  ;;  %v7039_v46 = vcombine.high %v1213_v20, %v1217_v21  ;;  %v1220_v48 = vld [vmem:[#allocation12 + $0x700] sm:$0xff]  ;;  %v1221_v27 = vld [vmem:[#allocation12 + $0x708] sm:$0xff]  ;;  %v7038_v31 = vcombine.low %v1213_v20, %v1217_v21  ;;  %v1002_v20 = vld [vmem:[#allocation12 + $0x30] sm:$0xff] }
 0x2f7   :  { %v864_v51 = vadd.f32 %v863_v36, %v862_v50  ;;  %v896_v53 = vrot.slane %v895_v37, 1  ;;  %2630 = vmatpush1.bf16.msra.mxu1 %v7004_v28  ;;  %2712 = vmatpush1.bf16.msra.mxu0 %v7006_v30  ;;  %v1224_v50 = vld [vmem:[#allocation12 + $0x720] sm:$0xff]  ;;  %v1225_v28 = vld [vmem:[#allocation12 + $0x728] sm:$0xff]  ;;  %v7036_v30 = vcombine.low %v1212_v17, %v1216_v19  ;;  %v999_v21 = vld [vmem:[#allocation12 + $0x18] sm:$0xff] }
 0x2f8   :  { %v9106_v59 = vmul.f32 0.125, %v858_v43  ;;  %v891_v56 = vadd.f32 %v890_v47, %v889_v32  ;;  %2631 = vmatprep.subr.bf16.mxu1 %v7013_v33  ;;  %2713 = vmatprep.subr.bf16.mxu0 %v7015_v34  ;;  %v7045_v32 = vcombine.high %v1220_v48, %v1224_v50  ;;  %v7047_v33 = vcombine.high %v1221_v27, %v1225_v28  ;;  %v1228_v34 = vld [vmem:[#allocation12 + $0x740] sm:$0xff]  ;;  %v1229_v36 = vld [vmem:[#allocation12 + $0x748] sm:$0xff] }
 0x2f9   :  { %v9108_v58 = vmul.f32 0.125, %v864_v51  ;;  %v897_v63 = vadd.f32 %v896_v53, %v895_v37  ;;  %v1233_v37 = vld [vmem:[#allocation12 + $0x768] sm:$0xff]  ;;  %v7044_v40 = vcombine.low %v1220_v48, %v1224_v50  ;;  %v7046_v41 = vcombine.low %v1221_v27, %v1225_v28  ;;  %v1236_v47 = vld [vmem:[#allocation12 + $0x780] sm:$0xff]  ;;  %v1010_v27 = vld [vmem:[#allocation12 + $0x70] sm:$0xff] }
 0x2fa   :  { %v900_v3 = vmul.f32 0.125, %v891_v56  ;;  %v904_v4 = vmul.f32 %v9106_v59, %v9106_v59  ;;  %v7053_v42 = vcombine.high %v1228_v34, %v1232_v35  ;;  %v7055_v43 = vcombine.high %v1229_v36, %v1233_v37  ;;  %v1240_v51 = vld [vmem:[#allocation12 + $0x7a0] sm:$0xff]  ;;  %v1237_v53 = vld [vmem:[#allocation12 + $0x788] sm:$0xff]  ;;  %v1007_v28 = vld [vmem:[#allocation12 + $0x58] sm:$0xff] }
 0x2fb   :  { %v901_v10 = vmul.f32 0.125, %v897_v63  ;;  %v905_v11 = vmul.f32 %v9108_v58, %v9108_v58  ;;  %2632 = vmatpush1.bf16.msra.mxu1 %v7012_v54  ;;  %2714 = vmatpush1.bf16.msra.mxu0 %v7014_v55  ;;  %v1241_v54 = vld [vmem:[#allocation12 + $0x7a8] sm:$0xff]  ;;  %v942_v55 = vrot.slane %v9058_v38, %v9085_v26  ;;  %v7052_v56 = vcombine.low %v1228_v34, %v1232_v35 }
 0x2fc   :  { %v908_v14 = vsub.f32 %v900_v3, %v904_v4  ;;  %2633 = vmatprep.subr.bf16.mxu1 %v7021_v52  ;;  %2715 = vmatprep.subr.bf16.mxu0 %v7023_v61  ;;  %v916_v52 = vsub.f32 %v9094_v57, %v9106_v59  ;;  %v946_v61 = vrot.slane %v9058_v38, %v9088_v29  ;;  %v1244_v3 = vld [vmem:[#allocation12 + $0x7c0] sm:$0xff]  ;;  %v1249_v57 = vld [vmem:[#allocation12 + $0x7e8] sm:$0xff] }
 0x2fd   :  { %v909_v18 = vsub.f32 %v901_v10, %v905_v11  ;;  %v7054_v62 = vcombine.low %v1229_v36, %v1233_v37  ;;  %v917_v0 = vsub.f32 %v9096_v60, %v9108_v58  ;;  %v7061_v1 = vcombine.high %v1236_v47, %v1240_v51  ;;  %v1248_v11 = vld [vmem:[#allocation12 + $0x7e0] sm:$0xff]  ;;  %v1014_v37 = vld [vmem:[#allocation12 + $0x90] sm:$0xff] }
 0x2fe   :  { %v912_v22 = vmax.f32 %v908_v14, 0.0  ;;  %v7063_v2 = vcombine.high %v1237_v53, %v1241_v54  ;;  %v967_v38 = vrot.slane %v9060_v39, %v9085_v26  ;;  %v7060_v60 = vcombine.low %v1236_v47, %v1240_v51 }
 0x2ff   :  { %v913_v23 = vmax.f32 %v909_v18, 0.0  ;;  %2634 = vmatpush1.bf16.msra.mxu1 %v7020_v12  ;;  %2716 = vmatpush1.bf16.msra.mxu0 %v7022_v13  ;;  %v1245_v12 = vld [vmem:[#allocation12 + $0x7c8] sm:$0xff]  ;;  %v971_v13 = vrot.slane %v9060_v39, %v9088_v29  ;;  %v7062_v58 = vcombine.low %v1237_v53, %v1241_v54  ;;  %v998_v18 = vld [vmem:[#allocation12 + $0x10] sm:$0xff] }
 0x300   :  { %v920_v44 = vadd.f32 1e-05, %v912_v22  ;;  %2635 = vmatprep.subr.bf16.mxu1 %v7029_v15  ;;  %2717 = vmatprep.subr.bf16.mxu0 %v7031_v16  ;;  %v7069_v16 = vcombine.high %v1244_v3, %v1248_v11  ;;  %v7071_v17 = vcombine.high %v1245_v12, %v1249_v57  ;;  %v1003_v22 = vld [vmem:[#allocation12 + $0x38] sm:$0xff]  ;;  %v7070_v39 = vcombine.low %v1245_v12, %v1249_v57  ;;  %v1022_v54 = vld [vmem:[#allocation12 + $0xd0] sm:$0xff] }
 0x301   :  { %v921_v49 = vadd.f32 1e-05, %v913_v23  ;;  %v6826_v34 = vcombine.low %v999_v21, %v1003_v22  ;;  %v1038_v57 = vld [vmem:[#allocation12 + $0x150] sm:$0xff] }
 0x302   :  { %8463 = vrsqrt.f32 %v920_v44 }
 0x303   :  { %8465 = vrsqrt.f32 %v921_v49  ;;  %2636 = vmatpush1.bf16.msra.mxu1 %v7028_v24  ;;  %2718 = vmatpush1.bf16.msra.mxu0 %v7030_v25  ;;  %v7068_v24 = vcombine.low %v1244_v3, %v1248_v11  ;;  %v1006_v49 = vld [vmem:[#allocation12 + $0x50] sm:$0xff]  ;;  %v1035_v3 = vld [vmem:[#allocation12 + $0x138] sm:$0xff] }
 0x304   :  { %2637 = vmatprep.subr.bf16.mxu1 %v7037_v45  ;;  %2719 = vmatprep.subr.bf16.mxu0 %v7039_v46  ;;  %v6825_v45 = vcombine.high %v998_v18, %v1002_v20  ;;  %v6827_v46 = vcombine.high %v999_v21, %v1003_v22  ;;  %v6833_v35 = vcombine.high %v1006_v49, %v1010_v27 }
 0x307   :  { %2638 = vmatpush1.bf16.msra.mxu1 %v7036_v30  ;;  %2720 = vmatpush1.bf16.msra.mxu0 %v7038_v31  ;;  %v1011_v30 = vld [vmem:[#allocation12 + $0x78] sm:$0xff] }
 0x308   :  { %2639 = vmatprep.subr.bf16.mxu1 %v7045_v32  ;;  %2721 = vmatprep.subr.bf16.mxu0 %v7047_v33  ;;  %v6824_v32 = vcombine.low %v998_v18, %v1002_v20  ;;  %v6835_v36 = vcombine.high %v1007_v28, %v1011_v30  ;;  %v6834_v47 = vcombine.low %v1007_v28, %v1011_v30  ;;  %v1047_v18 = vld [vmem:[#allocation12 + $0x198] sm:$0xff] }
 0x309   :  { %v1063_v28 = vld [vmem:[#allocation12 + $0x218] sm:$0xff] }
 0x30a   :  { %v1067_v30 = vld [vmem:[#allocation12 + $0x238] sm:$0xff] }
 0x30b   :  { %2640 = vmatpush1.bf16.msra.mxu1 %v7044_v40  ;;  %2722 = vmatpush1.bf16.msra.mxu0 %v7046_v41  ;;  %v1018_v40 = vld [vmem:[#allocation12 + $0xb0] sm:$0xff]  ;;  %v1015_v41 = vld [vmem:[#allocation12 + $0x98] sm:$0xff] }
 0x30c   :  { %v8464_v63 = vpop.eup %8463  ;;  %2641 = vmatprep.subr.bf16.mxu1 %v7053_v42  ;;  %2723 = vmatprep.subr.bf16.mxu0 %v7055_v43  ;;  %v1019_v42 = vld [vmem:[#allocation12 + $0xb8] sm:$0xff]  ;;  %v6832_v43 = vcombine.low %v1006_v49, %v1010_v27  ;;  %v6841_v51 = vcombine.high %v1014_v37, %v1018_v40  ;;  %v1066_v27 = vld [vmem:[#allocation12 + $0x230] sm:$0xff] }
 0x30d   :  { %v8466_v4 = vpop.eup %8465  ;;  %v928_v10 = vmul.f32 %v8464_v63, %v916_v52  ;;  %v6843_v53 = vcombine.high %v1015_v41, %v1019_v42  ;;  %v1027_v52 = vld [vmem:[#allocation12 + $0xf8] sm:$0xff] }
 0x30e   :  { %v929_v59 = vmul.f32 %v8466_v4, %v917_v0 }
 0x30f   :  { %v953_v14 = vmul.f32 %v942_v55, %v928_v10  ;;  %2642 = vmatpush1.bf16.msra.mxu1 %v7052_v56  ;;  %2724 = vmatpush1.bf16.msra.mxu0 %v7054_v62  ;;  %v1026_v55 = vld [vmem:[#allocation12 + $0xf0] sm:$0xff]  ;;  %v1023_v56 = vld [vmem:[#allocation12 + $0xd8] sm:$0xff]  ;;  %v6842_v62 = vcombine.low %v1015_v41, %v1019_v42 }
 0x310   :  { %v954_v15 = vmul.f32 %v946_v61, %v929_v59  ;;  %2643 = vmatprep.subr.bf16.mxu1 %v7061_v1  ;;  %2725 = vmatprep.subr.bf16.mxu0 %v7063_v2  ;;  %v6840_v61 = vcombine.low %v1014_v37, %v1018_v40  ;;  %v6849_v63 = vcombine.high %v1022_v54, %v1026_v55  ;;  %v1030_v1 = vld [vmem:[#allocation12 + $0x110] sm:$0xff]  ;;  %v1039_v59 = vld [vmem:[#allocation12 + $0x158] sm:$0xff] }
 0x311   :  { %v978_v19 = vadd.f32 %v967_v38, %v953_v14  ;;  %v6851_v0 = vcombine.high %v1023_v56, %v1027_v52  ;;  %v1034_v2 = vld [vmem:[#allocation12 + $0x130] sm:$0xff]  ;;  %v6848_v4 = vcombine.low %v1022_v54, %v1026_v55  ;;  %v6850_v10 = vcombine.low %v1023_v56, %v1027_v52  ;;  %v1071_v41 = vld [vmem:[#allocation12 + $0x258] sm:$0xff] }
 0x312   :  { %v979_v23 = vadd.f32 %v971_v13, %v954_v15  ;;  %v6857_v11 = vcombine.high %v1030_v1, %v1034_v2  ;;  %v1042_v38 = vld [vmem:[#allocation12 + $0x170] sm:$0xff]  ;;  %v1043_v13 = vld [vmem:[#allocation12 + $0x178] sm:$0xff]  ;;  %v6856_v14 = vcombine.low %v1030_v1, %v1034_v2 }
 0x313   :  { %2644 = vmatpush1.bf16.msra.mxu1 %v7060_v60  ;;  %2726 = vmatpush1.bf16.msra.mxu0 %v7062_v58  ;;  %vm982_vm4 = vcmp.ge.f32.partialorder %v978_v19, 0.0  ;;  %v986_v25 = vmul.f32 0.2, %v978_v19  ;;  %v6865_v58 = vcombine.high %v1038_v57, %v1042_v38  ;;  %v6867_v15 = vcombine.high %v1039_v59, %v1043_v13  ;;  %v1070_v37 = vld [vmem:[#allocation12 + $0x250] sm:$0xff]  ;;  %v1075_v42 = vld [vmem:[#allocation12 + $0x278] sm:$0xff] }
 0x314   :  { %2645 = vmatprep.subr.bf16.mxu1 %v7069_v16  ;;  %2727 = vmatprep.subr.bf16.mxu0 %v7071_v17  ;;  %vm983_vm5 = vcmp.ge.f32.partialorder %v979_v23, 0.0  ;;  %v987_v44 = vmul.f32 0.2, %v979_v23  ;;  %v1046_v16 = vld [vmem:[#allocation12 + $0x190] sm:$0xff]  ;;  %v6864_v20 = vcombine.low %v1038_v57, %v1042_v38  ;;  %v6866_v21 = vcombine.low %v1039_v59, %v1043_v13  ;;  %v1079_v56 = vld [vmem:[#allocation12 + $0x298] sm:$0xff] }
 0x315   :  { %v990_v48 = vsel %vm982_vm4, %v978_v19, %v986_v25  ;;  %v1050_v17 = vld [vmem:[#allocation12 + $0x1b0] sm:$0xff]  ;;  %v1051_v19 = vld [vmem:[#allocation12 + $0x1b8] sm:$0xff] }
 0x316   :  { %v991_v50 = vsel %vm983_vm5, %v979_v23, %v987_v44  ;;  %v9128_v33 = vpack.c.bf16 %v990_v48, %v990_v48  ;;  %v6873_v22 = vcombine.high %v1046_v16, %v1050_v17  ;;  %v6875_v23 = vcombine.high %v1047_v18, %v1051_v19  ;;  %v1055_v25 = vld [vmem:[#allocation12 + $0x1d8] sm:$0xff]  ;;  %v1074_v40 = vld [vmem:[#allocation12 + $0x270] sm:$0xff] }
 0x317   :  { %2646 = vmatpush1.bf16.msra.mxu1 %v7068_v24  ;;  %2728 = vmatpush1.bf16.msra.mxu0 %v7070_v39  ;;  %v9126_v31 = vpack.c.bf16 %v991_v50, %v991_v50  ;;  %v1054_v24 = vld [vmem:[#allocation12 + $0x1d0] sm:$0xff]  ;;  %v1059_v44 = vld [vmem:[#allocation12 + $0x1f8] sm:$0xff] }
 0x318   :  { %2738 = vmatprep.subr.bf16.mxu1 %v6825_v45  ;;  %2820 = vmatprep.subr.bf16.mxu0 %v6827_v46  ;;  %v1058_v39 = vld [vmem:[#allocation12 + $0x1f0] sm:$0xff]  ;;  %v6872_v45 = vcombine.low %v1046_v16, %v1050_v17  ;;  %v6874_v46 = vcombine.low %v1047_v18, %v1051_v19  ;;  %v6883_v49 = vcombine.high %v1055_v25, %v1059_v44  ;;  %v1083_v52 = vld [vmem:[#allocation12 + $0x2b8] sm:$0xff] }
 0x319   :  { %2647 = vmatprep.mubr.bf16.mxu1 %v9126_v31  ;;  %2729 = vmatprep.mubr.bf16.mxu0 %v9126_v31  ;;  %v6881_v48 = vcombine.high %v1054_v24, %v1058_v39  ;;  %v1062_v50 = vld [vmem:[#allocation12 + $0x210] sm:$0xff]  ;;  %v1095_v59 = vld [vmem:[#allocation12 + $0x318] sm:$0xff] }
 0x31a   :  { %2648 = vmatmul.mubr.bf16.vlgmr.msra.gmra.mrb[0].mxu1 %v9128_v33  ;;  %2730 = vmatmul.mubr.bf16.vlgmr.msra.gmra.mrb[12].mxu0 %v9128_v33  ;;  %v1078_v54 = vld [vmem:[#allocation12 + $0x290] sm:$0xff]  ;;  %v1099_v13 = vld [vmem:[#allocation12 + $0x338] sm:$0xff] }
 0x31b   :  { %2739 = vmatpush1.bf16.msra.mxu1 %v6824_v32  ;;  %2770 = vmatprep.mubr.bf16.mxu1 %v9070_v7  ;;  %v6880_v32 = vcombine.low %v1054_v24, %v1058_v39  ;;  %v1082_v55 = vld [vmem:[#allocation12 + $0x2b0] sm:$0xff]  ;;  %v1103_v18 = vld [vmem:[#allocation12 + $0x358] sm:$0xff] }
 0x31c   :  { %2821 = vmatpush1.bf16.msra.mxu0 %v6826_v34  ;;  %2852 = vmatprep.mubr.bf16.mxu0 %v9070_v7  ;;  %v1031_v7 = vld [vmem:[#allocation12 + $0x118] sm:$0xff]  ;;  %v6882_v34 = vcombine.low %v1055_v25, %v1059_v44  ;;  %v1086_v1 = vld [vmem:[#allocation12 + $0x2d0] sm:$0xff] }
 0x31d   :  { %2740 = vmatprep.subr.bf16.mxu1 %v6833_v35  ;;  %2822 = vmatprep.subr.bf16.mxu0 %v6835_v36  ;;  %v6859_v12 = vcombine.high %v1031_v7, %v1035_v3  ;;  %v6858_v60 = vcombine.low %v1031_v7, %v1035_v3  ;;  %v6889_v35 = vcombine.high %v1062_v50, %v1066_v27  ;;  %v1090_v2 = vld [vmem:[#allocation12 + $0x2f0] sm:$0xff]  ;;  %v1087_v7 = vld [vmem:[#allocation12 + $0x2d8] sm:$0xff] }
 0x31e   :  { %v6891_v36 = vcombine.high %v1063_v28, %v1067_v30  ;;  %v1091_v3 = vld [vmem:[#allocation12 + $0x2f8] sm:$0xff]  ;;  %v1094_v57 = vld [vmem:[#allocation12 + $0x310] sm:$0xff] }
 0x31f   :  { %2741 = vmatpush1.bf16.msra.mxu1 %v6832_v43  ;;  %v6888_v43 = vcombine.low %v1062_v50, %v1066_v27  ;;  %v1098_v38 = vld [vmem:[#allocation12 + $0x330] sm:$0xff]  ;;  %v1107_v19 = vld [vmem:[#allocation12 + $0x378] sm:$0xff] }
 0x320   :  { %2823 = vmatpush1.bf16.msra.mxu0 %v6834_v47  ;;  %2742 = vmatprep.subr.bf16.mxu1 %v6841_v51  ;;  %v6890_v47 = vcombine.low %v1063_v28, %v1067_v30  ;;  %v6897_v51 = vcombine.high %v1070_v37, %v1074_v40  ;;  %v1102_v16 = vld [vmem:[#allocation12 + $0x350] sm:$0xff]  ;;  %v1111_v25 = vld [vmem:[#allocation12 + $0x398] sm:$0xff] }
 0x321   :  { %2824 = vmatprep.subr.bf16.mxu0 %v6843_v53  ;;  %v6899_v53 = vcombine.high %v1071_v41, %v1075_v42  ;;  %v1106_v17 = vld [vmem:[#allocation12 + $0x370] sm:$0xff]  ;;  %v1115_v44 = vld [vmem:[#allocation12 + $0x3b8] sm:$0xff] }
 0x322   :  { %v1110_v24 = vld [vmem:[#allocation12 + $0x390] sm:$0xff]  ;;  %v1119_v28 = vld [vmem:[#allocation12 + $0x3d8] sm:$0xff] }
 0x323   :  { %2743 = vmatpush1.bf16.msra.mxu1 %v6840_v61  ;;  %v6896_v61 = vcombine.low %v1070_v37, %v1074_v40  ;;  %v1114_v39 = vld [vmem:[#allocation12 + $0x3b0] sm:$0xff]  ;;  %v1123_v30 = vld [vmem:[#allocation12 + $0x3f8] sm:$0xff] }
 0x324   :  { %2825 = vmatpush1.bf16.msra.mxu0 %v6842_v62  ;;  %2744 = vmatprep.subr.bf16.mxu1 %v6849_v63  ;;  %v6898_v62 = vcombine.low %v1071_v41, %v1075_v42  ;;  %v6905_v63 = vcombine.high %v1078_v54, %v1082_v55  ;;  %v1118_v50 = vld [vmem:[#allocation12 + $0x3d0] sm:$0xff]  ;;  %v1127_v41 = vld [vmem:[#allocation12 + $0x418] sm:$0xff] }
 0x325   :  { %2826 = vmatprep.subr.bf16.mxu0 %v6851_v0  ;;  %v6907_v0 = vcombine.high %v1079_v56, %v1083_v52  ;;  %v1122_v27 = vld [vmem:[#allocation12 + $0x3f0] sm:$0xff]  ;;  %v1131_v42 = vld [vmem:[#allocation12 + $0x438] sm:$0xff] }
 0x326   :  { %v1126_v37 = vld [vmem:[#allocation12 + $0x410] sm:$0xff] }
 0x327   :  { %2745 = vmatpush1.bf16.msra.mxu1 %v6848_v4  ;;  %v6904_v4 = vcombine.low %v1078_v54, %v1082_v55  ;;  %v1130_v40 = vld [vmem:[#allocation12 + $0x430] sm:$0xff] }
 0x328   :  { %2827 = vmatpush1.bf16.msra.mxu0 %v6850_v10  ;;  %2746 = vmatprep.subr.bf16.mxu1 %v6857_v11  ;;  %v6906_v10 = vcombine.low %v1079_v56, %v1083_v52  ;;  %v6913_v11 = vcombine.high %v1086_v1, %v1090_v2  ;;  %v1134_v54 = vld [vmem:[#allocation12 + $0x450] sm:$0xff]  ;;  %v6952_v56 = vcombine.low %v1126_v37, %v1130_v40  ;;  %v1135_v52 = vld [vmem:[#allocation12 + $0x458] sm:$0xff] }
 0x329   :  { %2828 = vmatprep.subr.bf16.mxu0 %v6859_v12  ;;  %v6915_v12 = vcombine.high %v1087_v7, %v1091_v3  ;;  %v1138_v55 = vld [vmem:[#allocation12 + $0x470] sm:$0xff] }
 0x32b   :  { %2747 = vmatpush1.bf16.msra.mxu1 %v6856_v14  ;;  %v6912_v14 = vcombine.low %v1086_v1, %v1090_v2  ;;  %v1146_v1 = vld [vmem:[#allocation12 + $0x4b0] sm:$0xff] }
 0x32c   :  { %2829 = vmatpush1.bf16.msra.mxu0 %v6858_v60  ;;  %2748 = vmatprep.subr.bf16.mxu1 %v6865_v58  ;;  %v6914_v60 = vcombine.low %v1087_v7, %v1091_v3  ;;  %v6921_v58 = vcombine.high %v1094_v57, %v1098_v38  ;;  %v1143_v7 = vld [vmem:[#allocation12 + $0x498] sm:$0xff] }
 0x32d   :  { %2830 = vmatprep.subr.bf16.mxu0 %v6867_v15  ;;  %v6923_v15 = vcombine.high %v1095_v59, %v1099_v13  ;;  %v1147_v3 = vld [vmem:[#allocation12 + $0x4b8] sm:$0xff] }
 0x32f   :  { %2749 = vmatpush1.bf16.msra.mxu1 %v6864_v20  ;;  %v6920_v20 = vcombine.low %v1094_v57, %v1098_v38  ;;  %v1150_v57 = vld [vmem:[#allocation12 + $0x4d0] sm:$0xff] }
 0x330   :  { %2831 = vmatpush1.bf16.msra.mxu0 %v6866_v21  ;;  %2750 = vmatprep.subr.bf16.mxu1 %v6873_v22  ;;  %v6922_v21 = vcombine.low %v1095_v59, %v1099_v13  ;;  %v6929_v22 = vcombine.high %v1102_v16, %v1106_v17  ;;  %v1154_v38 = vld [vmem:[#allocation12 + $0x4f0] sm:$0xff]  ;;  %v1151_v59 = vld [vmem:[#allocation12 + $0x4d8] sm:$0xff] }
 0x331   :  { %2832 = vmatprep.subr.bf16.mxu0 %v6875_v23  ;;  %v6931_v23 = vcombine.high %v1103_v18, %v1107_v19  ;;  %v1155_v13 = vld [vmem:[#allocation12 + $0x4f8] sm:$0xff] }
 0x333   :  { %2751 = vmatpush1.bf16.msra.mxu1 %v6872_v45  ;;  %v6928_v45 = vcombine.low %v1102_v16, %v1106_v17  ;;  %v1162_v16 = vld [vmem:[#allocation12 + $0x530] sm:$0xff]  ;;  %v1159_v17 = vld [vmem:[#allocation12 + $0x518] sm:$0xff] }
 0x334   :  { %2833 = vmatpush1.bf16.msra.mxu0 %v6874_v46  ;;  %2752 = vmatprep.subr.bf16.mxu1 %v6881_v48  ;;  %v6930_v46 = vcombine.low %v1103_v18, %v1107_v19  ;;  %v6937_v48 = vcombine.high %v1110_v24, %v1114_v39  ;;  %v1163_v18 = vld [vmem:[#allocation12 + $0x538] sm:$0xff]  ;;  %v6978_v19 = vcombine.low %v1151_v59, %v1155_v13 }
 0x335   :  { %2834 = vmatprep.subr.bf16.mxu0 %v6883_v49  ;;  %v6939_v49 = vcombine.high %v1111_v25, %v1115_v44 }
 0x337   :  { %2753 = vmatpush1.bf16.msra.mxu1 %v6880_v32  ;;  %v6936_v32 = vcombine.low %v1110_v24, %v1114_v39  ;;  %v1167_v24 = vld [vmem:[#allocation12 + $0x558] sm:$0xff] }
 0x338   :  { %2835 = vmatpush1.bf16.msra.mxu0 %v6882_v34  ;;  %2754 = vmatprep.subr.bf16.mxu1 %v6889_v35  ;;  %v6938_v34 = vcombine.low %v1111_v25, %v1115_v44  ;;  %v6945_v35 = vcombine.high %v1118_v50, %v1122_v27  ;;  %v1171_v39 = vld [vmem:[#allocation12 + $0x578] sm:$0xff]  ;;  %v6986_v44 = vcombine.low %v1159_v17, %v1163_v18 }
 0x339   :  { %2836 = vmatprep.subr.bf16.mxu0 %v6891_v36  ;;  %v6947_v36 = vcombine.high %v1119_v28, %v1123_v30 }
 0x33b   :  { %2755 = vmatpush1.bf16.msra.mxu1 %v6888_v43  ;;  %v6944_v43 = vcombine.low %v1118_v50, %v1122_v27  ;;  %v1175_v50 = vld [vmem:[#allocation12 + $0x598] sm:$0xff] }
 0x33c   :  { %2837 = vmatpush1.bf16.msra.mxu0 %v6890_v47  ;;  %2756 = vmatprep.subr.bf16.mxu1 %v6897_v51  ;;  %v6946_v47 = vcombine.low %v1119_v28, %v1123_v30  ;;  %v6953_v51 = vcombine.high %v1126_v37, %v1130_v40  ;;  %v1179_v27 = vld [vmem:[#allocation12 + $0x5b8] sm:$0xff]  ;;  %v6994_v30 = vcombine.low %v1167_v24, %v1171_v39 }
 0x33d   :  { %2838 = vmatprep.subr.bf16.mxu0 %v6899_v53  ;;  %v6955_v53 = vcombine.high %v1127_v41, %v1131_v42  ;;  %v1183_v37 = vld [vmem:[#allocation12 + $0x5d8] sm:$0xff] }
 0x33e   :  { %v1187_v40 = vld [vmem:[#allocation12 + $0x5f8] sm:$0xff] }
 0x33f   :  { %2757 = vmatpush1.bf16.msra.mxu1 %v6896_v61  ;;  %v1139_v61 = vld [vmem:[#allocation12 + $0x478] sm:$0xff] }
 0x340   :  { %2839 = vmatpush1.bf16.msra.mxu0 %v6898_v62  ;;  %2758 = vmatprep.subr.bf16.mxu1 %v6905_v63  ;;  %v6954_v62 = vcombine.low %v1127_v41, %v1131_v42  ;;  %v6961_v63 = vcombine.high %v1134_v54, %v1138_v55  ;;  %v6963_v2 = vcombine.high %v1135_v52, %v1139_v61 }
 0x341   :  { %2840 = vmatprep.subr.bf16.mxu0 %v6907_v0  ;;  %v1142_v0 = vld [vmem:[#allocation12 + $0x490] sm:$0xff]  ;;  %v7002_v42 = vcombine.low %v1175_v50, %v1179_v27 }
 0x343   :  { %2759 = vmatpush1.bf16.msra.mxu1 %v6904_v4  ;;  %v6960_v4 = vcombine.low %v1134_v54, %v1138_v55  ;;  %v1191_v54 = vld [vmem:[#allocation12 + $0x618] sm:$0xff] }
 0x344   :  { %2841 = vmatpush1.bf16.msra.mxu0 %v6906_v10  ;;  %2760 = vmatprep.subr.bf16.mxu1 %v6913_v11  ;;  %v6962_v10 = vcombine.low %v1135_v52, %v1139_v61  ;;  %v6969_v11 = vcombine.high %v1142_v0, %v1146_v1  ;;  %v1195_v55 = vld [vmem:[#allocation12 + $0x638] sm:$0xff]  ;;  %v7010_v52 = vcombine.low %v1183_v37, %v1187_v40 }
 0x345   :  { %2842 = vmatprep.subr.bf16.mxu0 %v6915_v12  ;;  %v6971_v12 = vcombine.high %v1143_v7, %v1147_v3 }
 0x347   :  { %2761 = vmatpush1.bf16.msra.mxu1 %v6912_v14  ;;  %v6968_v14 = vcombine.low %v1142_v0, %v1146_v1  ;;  %v1202_v0 = vld [vmem:[#allocation12 + $0x670] sm:$0xff]  ;;  %v1199_v1 = vld [vmem:[#allocation12 + $0x658] sm:$0xff] }
 0x348   :  { %2843 = vmatpush1.bf16.msra.mxu0 %v6914_v60  ;;  %2762 = vmatprep.subr.bf16.mxu1 %v6921_v58  ;;  %v6977_v60 = vcombine.high %v1150_v57, %v1154_v38  ;;  %v6979_v58 = vcombine.high %v1151_v59, %v1155_v13 }
 0x349   :  { %2844 = vmatprep.subr.bf16.mxu0 %v6923_v15  ;;  %v1158_v15 = vld [vmem:[#allocation12 + $0x510] sm:$0xff] }
 0x34a   :  { %v6984_v25 = vcombine.low %v1158_v15, %v1162_v16 }
 0x34b   :  { %2763 = vmatpush1.bf16.msra.mxu1 %v6920_v20  ;;  %v6985_v20 = vcombine.high %v1158_v15, %v1162_v16  ;;  %v1215_v15 = vld [vmem:[#allocation12 + $0x6d8] sm:$0xff] }
 0x34c   :  { %2845 = vmatpush1.bf16.msra.mxu0 %v6922_v21  ;;  %2764 = vmatprep.subr.bf16.mxu1 %v6929_v22  ;;  %v6987_v21 = vcombine.high %v1159_v17, %v1163_v18  ;;  %v1166_v22 = vld [vmem:[#allocation12 + $0x550] sm:$0xff]  ;;  %v1219_v16 = vld [vmem:[#allocation12 + $0x6f8] sm:$0xff] }
 0x34d   :  { %2846 = vmatprep.subr.bf16.mxu0 %v6931_v23  ;;  %v1170_v23 = vld [vmem:[#allocation12 + $0x570] sm:$0xff] }
 0x34e   :  { %v6992_v28 = vcombine.low %v1166_v22, %v1170_v23 }
 0x34f   :  { %2765 = vmatpush1.bf16.msra.mxu1 %v6928_v45  ;;  %v6993_v45 = vcombine.high %v1166_v22, %v1170_v23  ;;  %v1223_v22 = vld [vmem:[#allocation12 + $0x718] sm:$0xff] }
 0x350   :  { %2847 = vmatpush1.bf16.msra.mxu0 %v6930_v46  ;;  %2766 = vmatprep.subr.bf16.mxu1 %v6937_v48  ;;  %v6995_v46 = vcombine.high %v1167_v24, %v1171_v39  ;;  %v1174_v48 = vld [vmem:[#allocation12 + $0x590] sm:$0xff]  ;;  %v1227_v23 = vld [vmem:[#allocation12 + $0x738] sm:$0xff]  ;;  %v7042_v39 = vcombine.low %v1215_v15, %v1219_v16 }
 0x351   :  { %2848 = vmatprep.subr.bf16.mxu0 %v6939_v49  ;;  %v1178_v49 = vld [vmem:[#allocation12 + $0x5b0] sm:$0xff] }
 0x352   :  { %v7000_v41 = vcombine.low %v1174_v48, %v1178_v49 }
 0x353   :  { %2767 = vmatpush1.bf16.msra.mxu1 %v6936_v32  ;;  %v7001_v32 = vcombine.high %v1174_v48, %v1178_v49  ;;  %v1231_v48 = vld [vmem:[#allocation12 + $0x758] sm:$0xff] }
 0x354   :  { %2849 = vmatpush1.bf16.msra.mxu0 %v6938_v34  ;;  %2768 = vmatprep.subr.bf16.mxu1 %v6945_v35  ;;  %v7003_v34 = vcombine.high %v1175_v50, %v1179_v27  ;;  %v1182_v35 = vld [vmem:[#allocation12 + $0x5d0] sm:$0xff]  ;;  %v1235_v49 = vld [vmem:[#allocation12 + $0x778] sm:$0xff]  ;;  %v7050_v27 = vcombine.low %v1223_v22, %v1227_v23 }
 0x355   :  { %2850 = vmatprep.subr.bf16.mxu0 %v6947_v36  ;;  %v1186_v36 = vld [vmem:[#allocation12 + $0x5f0] sm:$0xff] }
 0x357   :  { %2769 = vmatpush1.bf16.msra.mxu1 %v6944_v43  ;;  %v7009_v43 = vcombine.high %v1182_v35, %v1186_v36 }
 0x358   :  { %2851 = vmatpush1.bf16.msra.mxu0 %v6946_v47  ;;  %2779 = vmatprep.subr.bf16.mxu1 %v6953_v51  ;;  %v7011_v47 = vcombine.high %v1183_v37, %v1187_v40  ;;  %v1190_v51 = vld [vmem:[#allocation12 + $0x610] sm:$0xff]  ;;  %v7058_v40 = vcombine.low %v1231_v48, %v1235_v49 }
 0x359   :  { %2861 = vmatprep.subr.bf16.mxu0 %v6955_v53  ;;  %v1194_v53 = vld [vmem:[#allocation12 + $0x630] sm:$0xff] }
 0x35a   :  { %2771 = vmatmul.mubr.bf16.vlgmr.msra.gmra.mrb[4].mxu1 %v9072_v9  ;;  %v7017_v61 = vcombine.high %v1190_v51, %v1194_v53 }
 0x35b   :  { %2853 = vmatmul.mubr.bf16.vlgmr.msra.gmra.mrb[16].mxu0 %v9072_v9  ;;  %2780 = vmatpush1.bf16.msra.mxu1 %v6952_v56  ;;  %v6970_v9 = vcombine.low %v1143_v7, %v1147_v3  ;;  %v7008_v56 = vcombine.low %v1182_v35, %v1186_v36  ;;  %v7016_v7 = vcombine.low %v1190_v51, %v1194_v53  ;;  %v1239_v35 = vld [vmem:[#allocation12 + $0x798] sm:$0xff] }
 0x35c   :  { %2811 = vmatprep.mubr.bf16.mxu1 %v9126_v31  ;;  %2862 = vmatpush1.bf16.msra.mxu0 %v6954_v62  ;;  %v7019_v62 = vcombine.high %v1191_v54, %v1195_v55  ;;  %v7018_v3 = vcombine.low %v1191_v54, %v1195_v55  ;;  %v1243_v36 = vld [vmem:[#allocation12 + $0x7b8] sm:$0xff] }
 0x35d   :  { %2893 = vmatprep.mubr.bf16.mxu0 %v9126_v31  ;;  %2781 = vmatprep.subr.bf16.mxu1 %v6961_v63  ;;  %v6976_v31 = vcombine.low %v1150_v57, %v1154_v38  ;;  %v1198_v63 = vld [vmem:[#allocation12 + $0x650] sm:$0xff]  ;;  %v1207_v57 = vld [vmem:[#allocation12 + $0x698] sm:$0xff]  ;;  %v7066_v55 = vcombine.low %v1239_v35, %v1243_v36 }
 0x35e   :  { %2863 = vmatprep.subr.bf16.mxu0 %v6963_v2  ;;  %v1203_v2 = vld [vmem:[#allocation12 + $0x678] sm:$0xff]  ;;  %v7024_v59 = vcombine.low %v1198_v63, %v1202_v0 }
 0x35f   :  { %2782 = vmatpush1.bf16.msra.mxu1 %v6960_v4  ;;  %v7025_v4 = vcombine.high %v1198_v63, %v1202_v0  ;;  %v1211_v38 = vld [vmem:[#allocation12 + $0x6b8] sm:$0xff]  ;;  %v7026_v13 = vcombine.low %v1199_v1, %v1203_v2  ;;  %v7824_v0 = vld [vmem:[#allocation18 + $0xc] ss:$28 sps:$4 sm:$0xff]  }
 0x360   :  { %2864 = vmatpush1.bf16.msra.mxu0 %v6962_v10  ;;  %2783 = vmatprep.subr.bf16.mxu1 %v6969_v11  ;;  %v7027_v10 = vcombine.high %v1199_v1, %v1203_v2  ;;  %v1206_v11 = vld [vmem:[#allocation12 + $0x690] sm:$0xff]  ;;  %v7034_v18 = vcombine.low %v1207_v57, %v1211_v38  ;;  %v1247_v51 = vld [vmem:[#allocation12 + $0x7d8] sm:$0xff] }
 0x361   :  { %2865 = vmatprep.subr.bf16.mxu0 %v6971_v12  ;;  %v1210_v12 = vld [vmem:[#allocation12 + $0x6b0] sm:$0xff]  ;;  %v1251_v53 = vld [vmem:[#allocation12 + $0x7f8] sm:$0xff] }
 0x362   :  { %v7032_v17 = vcombine.low %v1206_v11, %v1210_v12  ;;  %v7821_v63 = vld [vmem:[#allocation18 + $0x4] ss:$28 sps:$4 sm:$0xff]  }
 0x363   :  { %2784 = vmatpush1.bf16.msra.mxu1 %v6968_v14  ;;  %v7033_v14 = vcombine.high %v1206_v11, %v1210_v12  ;;  %v7819_v1 = vld [vmem:[#allocation18] ss:$28 sps:$4 sm:$0xff]   ;;  %v7822_v2 = vld [vmem:[#allocation18 + $0x8] ss:$28 sps:$4 sm:$0xff]   ;;  %v7833_v11 = vld [vmem:[#allocation18 + $0x74] ss:$28 sps:$4 sm:$0xff]  }
 0x364   :  { %2866 = vmatpush1.bf16.msra.mxu0 %v6970_v9  ;;  %2785 = vmatprep.subr.bf16.mxu1 %v6977_v60  ;;  %v7035_v9 = vcombine.high %v1207_v57, %v1211_v38  ;;  %v1214_v60 = vld [vmem:[#allocation12 + $0x6d0] sm:$0xff]  ;;  %v7831_v57 = vld [vmem:[#allocation18 + $0x70] ss:$28 sps:$4 sm:$0xff]  }
 0x365   :  { %2867 = vmatprep.subr.bf16.mxu0 %v6979_v58  ;;  %v1218_v58 = vld [vmem:[#allocation12 + $0x6f0] sm:$0xff] }
 0x366   :  { %v7040_v24 = vcombine.low %v1214_v60, %v1218_v58  ;;  %v7836_v12 = vld [vmem:[#allocation18 + $0x7c] ss:$28 sps:$4 sm:$0xff]  }
 0x367   :  { %2786 = vmatpush1.bf16.msra.mxu1 %v6976_v31  ;;  %v7041_v31 = vcombine.high %v1214_v60, %v1218_v58  ;;  %v7834_v38 = vld [vmem:[#allocation18 + $0x78] ss:$28 sps:$4 sm:$0xff]   ;;  %v7848_v60 = vld [vmem:[#allocation18 + $0xec] ss:$28 sps:$4 sm:$0xff]   ;;  %v7843_v58 = vld [vmem:[#allocation18 + $0xe0] ss:$28 sps:$4 sm:$0xff]  }
 0x368   :  { %2868 = vmatpush1.bf16.msra.mxu0 %v6978_v19  ;;  %2787 = vmatprep.subr.bf16.mxu1 %v6985_v20  ;;  %v7043_v19 = vcombine.high %v1215_v15, %v1219_v16  ;;  %v1222_v20 = vld [vmem:[#allocation12 + $0x710] sm:$0xff]  ;;  %v7846_v15 = vld [vmem:[#allocation18 + $0xe8] ss:$28 sps:$4 sm:$0xff]  }
 0x369   :  { %2869 = vmatprep.subr.bf16.mxu0 %v6987_v21  ;;  %v1226_v21 = vld [vmem:[#allocation12 + $0x730] sm:$0xff] }
 0x36a   :  { %v7048_v50 = vcombine.low %v1222_v20, %v1226_v21  ;;  %v7851_v16 = vld [vmem:[#allocation18 + $0x11c] ss:$28 sps:$4 sm:$0xff]  }
 0x36b   :  { %2788 = vmatpush1.bf16.msra.mxu1 %v6984_v25  ;;  %v7049_v25 = vcombine.high %v1222_v20, %v1226_v21  ;;  %v7860_v20 = vld [vmem:[#allocation18 + $0x15c] ss:$28 sps:$4 sm:$0xff]   ;;  %v7855_v21 = vld [vmem:[#allocation18 + $0x150] ss:$28 sps:$4 sm:$0xff]  }
 0x36c   :  { %2870 = vmatpush1.bf16.msra.mxu0 %v6986_v44  ;;  %2789 = vmatprep.subr.bf16.mxu1 %v6993_v45  ;;  %v7051_v44 = vcombine.high %v1223_v22, %v1227_v23  ;;  %v1230_v45 = vld [vmem:[#allocation12 + $0x750] sm:$0xff]  ;;  %v7863_v23 = vld [vmem:[#allocation18 + $0x18c] ss:$28 sps:$4 sm:$0xff]  }
 0x36d   :  { %2871 = vmatprep.subr.bf16.mxu0 %v6995_v46  ;;  %v1234_v46 = vld [vmem:[#allocation12 + $0x770] sm:$0xff] }
 0x36e   :  { %v7056_v37 = vcombine.low %v1230_v45, %v1234_v46  ;;  %v7858_v22 = vld [vmem:[#allocation18 + $0x158] ss:$28 sps:$4 sm:$0xff]  }
 0x36f   :  { %2790 = vmatpush1.bf16.msra.mxu1 %v6992_v28  ;;  %v7057_v28 = vcombine.high %v1230_v45, %v1234_v46  ;;  %v7872_v45 = vld [vmem:[#allocation18 + $0x1cc] ss:$28 sps:$4 sm:$0xff]   ;;  %v7867_v46 = vld [vmem:[#allocation18 + $0x1c0] ss:$28 sps:$4 sm:$0xff]  }
 0x370   :  { %2872 = vmatpush1.bf16.msra.mxu0 %v6994_v30  ;;  %2791 = vmatprep.subr.bf16.mxu1 %v7001_v32  ;;  %v7059_v30 = vcombine.high %v1231_v48, %v1235_v49  ;;  %v1238_v32 = vld [vmem:[#allocation12 + $0x790] sm:$0xff]  ;;  %v7870_v48 = vld [vmem:[#allocation18 + $0x1c8] ss:$28 sps:$4 sm:$0xff]  }
 0x371   :  { %2873 = vmatprep.subr.bf16.mxu0 %v7003_v34  ;;  %v1242_v34 = vld [vmem:[#allocation12 + $0x7b0] sm:$0xff] }
 0x372   :  { %v7064_v54 = vcombine.low %v1238_v32, %v1242_v34  ;;  %v7875_v49 = vld [vmem:[#allocation18 + $0x1fc] ss:$28 sps:$4 sm:$0xff]  }
 0x373   :  { %2792 = vmatpush1.bf16.msra.mxu1 %v7000_v41  ;;  %v7065_v41 = vcombine.high %v1238_v32, %v1242_v34  ;;  %v7884_v32 = vld [vmem:[#allocation18 + $0x23c] ss:$28 sps:$4 sm:$0xff]   ;;  %v7879_v34 = vld [vmem:[#allocation18 + $0x230] ss:$28 sps:$4 sm:$0xff]  }
 0x374   :  { %2874 = vmatpush1.bf16.msra.mxu0 %v7002_v42  ;;  %2793 = vmatprep.subr.bf16.mxu1 %v7009_v43  ;;  %v7067_v42 = vcombine.high %v1239_v35, %v1243_v36  ;;  %v1246_v43 = vld [vmem:[#allocation12 + $0x7d0] sm:$0xff]  ;;  %v7887_v36 = vld [vmem:[#allocation18 + $0x26c] ss:$28 sps:$4 sm:$0xff]  }
 0x375   :  { %2875 = vmatprep.subr.bf16.mxu0 %v7011_v47  ;;  %v1250_v47 = vld [vmem:[#allocation12 + $0x7f0] sm:$0xff] }
 0x376   :  { %v7882_v35 = vld [vmem:[#allocation18 + $0x238] ss:$28 sps:$4 sm:$0xff]  }
 0x377   :  { %2794 = vmatpush1.bf16.msra.mxu1 %v7008_v56  ;;  %v7073_v56 = vcombine.high %v1246_v43, %v1250_v47 }
 0x378   :  { %2876 = vmatpush1.bf16.msra.mxu0 %v7010_v52  ;;  %2795 = vmatprep.subr.bf16.mxu1 %v7017_v61  ;;  %v7075_v52 = vcombine.high %v1247_v51, %v1251_v53  ;;  %v7072_v61 = vcombine.low %v1246_v43, %v1250_v47  ;;  %v7896_v43 = vld [vmem:[#allocation18 + $0x2ac] ss:$28 sps:$4 sm:$0xff]   ;;  %v7891_v47 = vld [vmem:[#allocation18 + $0x2a0] ss:$28 sps:$4 sm:$0xff]  }
 0x379   :  { %2877 = vmatprep.subr.bf16.mxu0 %v7019_v62  ;;  %v7074_v62 = vcombine.low %v1247_v51, %v1251_v53  ;;  %v7894_v51 = vld [vmem:[#allocation18 + $0x2a8] ss:$28 sps:$4 sm:$0xff]   ;;  %v7899_v53 = vld [vmem:[#allocation18 + $0x2dc] ss:$28 sps:$4 sm:$0xff]  }
 0x37b   :  { %2796 = vmatpush1.bf16.msra.mxu1 %v7016_v7  ;;  %v7827_v7 = vld [vmem:[#allocation18 + $0x3c] ss:$28 sps:$4 sm:$0xff]  }
 0x37c   :  { %2878 = vmatpush1.bf16.msra.mxu0 %v7018_v3  ;;  %2797 = vmatprep.subr.bf16.mxu1 %v7025_v4  ;;  %v7830_v3 = vld [vmem:[#allocation18 + $0x44] ss:$28 sps:$4 sm:$0xff]   ;;  %v7825_v4 = vld [vmem:[#allocation18 + $0x38] ss:$28 sps:$4 sm:$0xff]  }
 0x37d   :  { %2879 = vmatprep.subr.bf16.mxu0 %v7027_v10  ;;  %v7828_v10 = vld [vmem:[#allocation18 + $0x40] ss:$28 sps:$4 sm:$0xff]  }
 0x37f   :  { %2798 = vmatpush1.bf16.msra.mxu1 %v7024_v59  ;;  %v7839_v59 = vld [vmem:[#allocation18 + $0xac] ss:$28 sps:$4 sm:$0xff]  }
 0x380   :  { %2880 = vmatpush1.bf16.msra.mxu0 %v7026_v13  ;;  %2799 = vmatprep.subr.bf16.mxu1 %v7033_v14  ;;  %v7842_v13 = vld [vmem:[#allocation18 + $0xb4] ss:$28 sps:$4 sm:$0xff]   ;;  %v7837_v14 = vld [vmem:[#allocation18 + $0xa8] ss:$28 sps:$4 sm:$0xff]  }
 0x381   :  { %2881 = vmatprep.subr.bf16.mxu0 %v7035_v9  ;;  %v7845_v9 = vld [vmem:[#allocation18 + $0xe4] ss:$28 sps:$4 sm:$0xff]  }
 0x383   :  { %2800 = vmatpush1.bf16.msra.mxu1 %v7032_v17  ;;  %v7854_v17 = vld [vmem:[#allocation18 + $0x124] ss:$28 sps:$4 sm:$0xff]  }
 0x384   :  { %2882 = vmatpush1.bf16.msra.mxu0 %v7034_v18  ;;  %2801 = vmatprep.subr.bf16.mxu1 %v7041_v31  ;;  %v7849_v18 = vld [vmem:[#allocation18 + $0x118] ss:$28 sps:$4 sm:$0xff]   ;;  %v7852_v31 = vld [vmem:[#allocation18 + $0x120] ss:$28 sps:$4 sm:$0xff]  }
 0x385   :  { %2883 = vmatprep.subr.bf16.mxu0 %v7043_v19  ;;  %v7857_v19 = vld [vmem:[#allocation18 + $0x154] ss:$28 sps:$4 sm:$0xff]  }
 0x387   :  { %2802 = vmatpush1.bf16.msra.mxu1 %v7040_v24  ;;  %v7866_v24 = vld [vmem:[#allocation18 + $0x194] ss:$28 sps:$4 sm:$0xff]  }
 0x388   :  { %2884 = vmatpush1.bf16.msra.mxu0 %v7042_v39  ;;  %2803 = vmatprep.subr.bf16.mxu1 %v7049_v25  ;;  %v7861_v39 = vld [vmem:[#allocation18 + $0x188] ss:$28 sps:$4 sm:$0xff]   ;;  %v7864_v25 = vld [vmem:[#allocation18 + $0x190] ss:$28 sps:$4 sm:$0xff]  }
 0x389   :  { %2885 = vmatprep.subr.bf16.mxu0 %v7051_v44  ;;  %v7869_v44 = vld [vmem:[#allocation18 + $0x1c4] ss:$28 sps:$4 sm:$0xff]  }
 0x38b   :  { %2804 = vmatpush1.bf16.msra.mxu1 %v7048_v50  ;;  %v7878_v50 = vld [vmem:[#allocation18 + $0x204] ss:$28 sps:$4 sm:$0xff]  }
 0x38c   :  { %2886 = vmatpush1.bf16.msra.mxu0 %v7050_v27  ;;  %2805 = vmatprep.subr.bf16.mxu1 %v7057_v28  ;;  %v7873_v27 = vld [vmem:[#allocation18 + $0x1f8] ss:$28 sps:$4 sm:$0xff]   ;;  %v7876_v28 = vld [vmem:[#allocation18 + $0x200] ss:$28 sps:$4 sm:$0xff]  }
 0x38d   :  { %2887 = vmatprep.subr.bf16.mxu0 %v7059_v30  ;;  %v7881_v30 = vld [vmem:[#allocation18 + $0x234] ss:$28 sps:$4 sm:$0xff]  }
 0x38f   :  { %2806 = vmatpush1.bf16.msra.mxu1 %v7056_v37  ;;  %v7890_v37 = vld [vmem:[#allocation18 + $0x274] ss:$28 sps:$4 sm:$0xff]  }
 0x390   :  { %2888 = vmatpush1.bf16.msra.mxu0 %v7058_v40  ;;  %2807 = vmatprep.subr.bf16.mxu1 %v7065_v41  ;;  %v7885_v40 = vld [vmem:[#allocation18 + $0x268] ss:$28 sps:$4 sm:$0xff]   ;;  %v7888_v41 = vld [vmem:[#allocation18 + $0x270] ss:$28 sps:$4 sm:$0xff]  }
 0x391   :  { %2889 = vmatprep.subr.bf16.mxu0 %v7067_v42  ;;  %v7893_v42 = vld [vmem:[#allocation18 + $0x2a4] ss:$28 sps:$4 sm:$0xff]  }
 0x393   :  { %2808 = vmatpush1.bf16.msra.mxu1 %v7064_v54  ;;  %v7902_v54 = vld [vmem:[#allocation18 + $0x2e4] ss:$28 sps:$4 sm:$0xff]  }
 0x394   :  { %2890 = vmatpush1.bf16.msra.mxu0 %v7066_v55  ;;  %2809 = vmatprep.subr.bf16.mxu1 %v7073_v56  ;;  %v7897_v55 = vld [vmem:[#allocation18 + $0x2d8] ss:$28 sps:$4 sm:$0xff]   ;;  %v7900_v56 = vld [vmem:[#allocation18 + $0x2e0] ss:$28 sps:$4 sm:$0xff]  }
 0x395   :  { %2891 = vmatprep.subr.bf16.mxu0 %v7075_v52  ;;  %v7905_v52 = vld [vmem:[#allocation18 + $0x314] ss:$28 sps:$4 sm:$0xff]  }
 0x397   :  { %2810 = vmatpush1.bf16.msra.mxu1 %v7072_v61  ;;  %v7908_v61 = vld [vmem:[#allocation18 + $0x31c] ss:$28 sps:$4 sm:$0xff]  }
 0x398   :  { %2892 = vmatpush1.bf16.msra.mxu0 %v7074_v62  ;;  %6063 = vmatprep.subr.bf16.mxu1 %v7821_v63  ;;  %v7903_v62 = vld [vmem:[#allocation18 + $0x310] ss:$28 sps:$4 sm:$0xff]   ;;  %v7906_v63 = vld [vmem:[#allocation18 + $0x318] ss:$28 sps:$4 sm:$0xff]  }
 0x399   :  { %6227 = vmatprep.subr.bf16.mxu0 %v7824_v0  ;;  %v7911_v0 = vld [vmem:[#allocation18 + $0x34c] ss:$28 sps:$4 sm:$0xff]  }
 0x39a   :  { %2812 = vmatmul.mubr.bf16.vlgmr.msra.gmra.mrb[4].mxu1 %v9128_v33 }
 0x39b   :  { %2894 = vmatmul.mubr.bf16.vlgmr.msra.gmra.mrb[16].mxu0 %v9128_v33  ;;  %6064 = vmatpush1.bf16.msra.mxu1 %v7819_v1  ;;  %v7840_v33 = vld [vmem:[#allocation18 + $0xb0] ss:$28 sps:$4 sm:$0xff]  }
 0x39c   :  { %6228 = vmatpush1.bf16.msra.mxu0 %v7822_v2  ;;  %6065 = vmatprep.subr.bf16.mxu1 %v7827_v7  ;;  %v7914_v1 = vld [vmem:[#allocation18 + $0x354] ss:$28 sps:$4 sm:$0xff]   ;;  %v7909_v2 = vld [vmem:[#allocation18 + $0x348] ss:$28 sps:$4 sm:$0xff]  }
 0x39d   :  { %6229 = vmatprep.subr.bf16.mxu0 %v7830_v3  ;;  %v7912_v7 = vld [vmem:[#allocation18 + $0x350] ss:$28 sps:$4 sm:$0xff]   ;;  %v7917_v3 = vld [vmem:[#allocation18 + $0x384] ss:$28 sps:$4 sm:$0xff]  }
 0x39f   :  { %6066 = vmatpush1.bf16.msra.mxu1 %v7825_v4  ;;  %v7920_v4 = vld [vmem:[#allocation18 + $0x38c] ss:$28 sps:$4 sm:$0xff]  }
 0x3a0   :  { %6230 = vmatpush1.bf16.msra.mxu0 %v7828_v10  ;;  %6067 = vmatprep.subr.bf16.mxu1 %v7833_v11  ;;  %v9142_v10 = vld [vmem:[#allocation13] sm:$0xff] }
 0x3a1   :  { %6231 = vmatprep.subr.bf16.mxu0 %v7836_v12  ;;  %v1257_v11 = vrot.slane %v9142_v10, %v9025_v6  ;;  %v1261_v12 = vrot.slane %v9142_v10, %v9028_v8 }
 0x3a3   :  { %6068 = vmatpush1.bf16.msra.mxu1 %v7831_v57  ;;  %v1269_v57 = vrot.slane %v9142_v10, %v9088_v29 }
 0x3a4   :  { %6232 = vmatpush1.bf16.msra.mxu0 %v7834_v38  ;;  %6069 = vmatprep.subr.bf16.mxu1 %v7839_v59 }
 0x3a5   :  { %6233 = vmatprep.subr.bf16.mxu0 %v7842_v13 }
 0x3a7   :  { %6070 = vmatpush1.bf16.msra.mxu1 %v7837_v14 }
 0x3a8   :  { %6234 = vmatpush1.bf16.msra.mxu0 %v7840_v33  ;;  %6071 = vmatprep.subr.bf16.mxu1 %v7845_v9 }
 0x3a9   :  { %6235 = vmatprep.subr.bf16.mxu0 %v7848_v60 }
 0x3ab   :  { %6072 = vmatpush1.bf16.msra.mxu1 %v7843_v58 }
 0x3ac   :  { %6236 = vmatpush1.bf16.msra.mxu0 %v7846_v15  ;;  %6073 = vmatprep.subr.bf16.mxu1 %v7851_v16 }
 0x3ad   :  { %6237 = vmatprep.subr.bf16.mxu0 %v7854_v17 }
 0x3af   :  { %6074 = vmatpush1.bf16.msra.mxu1 %v7849_v18 }
 0x3b0   :  { %6238 = vmatpush1.bf16.msra.mxu0 %v7852_v31  ;;  %6075 = vmatprep.subr.bf16.mxu1 %v7857_v19 }
 0x3b1   :  { %6239 = vmatprep.subr.bf16.mxu0 %v7860_v20 }
 0x3b3   :  { %6076 = vmatpush1.bf16.msra.mxu1 %v7855_v21 }
 0x3b4   :  { %6240 = vmatpush1.bf16.msra.mxu0 %v7858_v22  ;;  %6077 = vmatprep.subr.bf16.mxu1 %v7863_v23 }
 0x3b5   :  { %6241 = vmatprep.subr.bf16.mxu0 %v7866_v24 }
 0x3b7   :  { %6078 = vmatpush1.bf16.msra.mxu1 %v7861_v39 }
 0x3b8   :  { %6242 = vmatpush1.bf16.msra.mxu0 %v7864_v25  ;;  %6079 = vmatprep.subr.bf16.mxu1 %v7869_v44 }
 0x3b9   :  { %6243 = vmatprep.subr.bf16.mxu0 %v7872_v45 }
 0x3bb   :  { %6080 = vmatpush1.bf16.msra.mxu1 %v7867_v46 }
 0x3bc   :  { %6244 = vmatpush1.bf16.msra.mxu0 %v7870_v48  ;;  %6081 = vmatprep.subr.bf16.mxu1 %v7875_v49 }
 0x3bd   :  { %6245 = vmatprep.subr.bf16.mxu0 %v7878_v50 }
 0x3bf   :  { %6082 = vmatpush1.bf16.msra.mxu1 %v7873_v27 }
 0x3c0   :  { %6246 = vmatpush1.bf16.msra.mxu0 %v7876_v28  ;;  %6083 = vmatprep.subr.bf16.mxu1 %v7881_v30 }
 0x3c1   :  { %6247 = vmatprep.subr.bf16.mxu0 %v7884_v32 }
 0x3c3   :  { %6084 = vmatpush1.bf16.msra.mxu1 %v7879_v34 }
 0x3c4   :  { %6248 = vmatpush1.bf16.msra.mxu0 %v7882_v35  ;;  %6085 = vmatprep.subr.bf16.mxu1 %v7887_v36 }
 0x3c5   :  { %6249 = vmatprep.subr.bf16.mxu0 %v7890_v37 }
 0x3c7   :  { %6086 = vmatpush1.bf16.msra.mxu1 %v7885_v40 }
 0x3c8   :  { %6250 = vmatpush1.bf16.msra.mxu0 %v7888_v41  ;;  %6087 = vmatprep.subr.bf16.mxu1 %v7893_v42 }
 0x3c9   :  { %6251 = vmatprep.subr.bf16.mxu0 %v7896_v43 }
 0x3cb   :  { %6088 = vmatpush1.bf16.msra.mxu1 %v7891_v47 }
 0x3cc   :  { %6252 = vmatpush1.bf16.msra.mxu0 %v7894_v51  ;;  %6089 = vmatprep.subr.bf16.mxu1 %v7899_v53 }
 0x3cd   :  { %6253 = vmatprep.subr.bf16.mxu0 %v7902_v54 }
 0x3cf   :  { %6090 = vmatpush1.bf16.msra.mxu1 %v7897_v55 }
 0x3d0   :  { %6254 = vmatpush1.bf16.msra.mxu0 %v7900_v56  ;;  %6091 = vmatprep.subr.bf16.mxu1 %v7905_v52 }
 0x3d1   :  { %6255 = vmatprep.subr.bf16.mxu0 %v7908_v61 }
 0x3d3   :  { %6092 = vmatpush1.bf16.msra.mxu1 %v7903_v62 }
 0x3d4   :  { %6256 = vmatpush1.bf16.msra.mxu0 %v7906_v63  ;;  %6093 = vmatprep.subr.bf16.mxu1 %v7911_v0 }
 0x3d5   :  { %6257 = vmatprep.subr.bf16.mxu0 %v7914_v1 }
 0x3d7   :  { %6094 = vmatpush1.bf16.msra.mxu1 %v7909_v2 }
 0x3d8   :  { %6258 = vmatpush1.bf16.msra.mxu0 %v7912_v7  ;;  %6104 = vmatprep.subr.bf16.mxu1 %v7917_v3 }
 0x3d9   :  { %6268 = vmatprep.subr.bf16.mxu0 %v7920_v4 }
 0x3ed   :  { %v2649_v38 = vpop.f32.mrb[0].mxu1  ;;  %v9150_v59 = vpop.f32.mrb[12].mxu0 }
 0x3ee   :  { %v9152_v13 = vadd.f32 %v2649_v38, %v1257_v11  ;;  %v2651_v14 = vpop.f32.mrb[1].mxu1  ;;  %v2733_v33 = vpop.f32.mrb[13].mxu0 }
 0x3ef   :  { %v9154_v9 = vadd.f32 %v2651_v14, %v1261_v12  ;;  %v9156_v60 = vadd.f32 %v2733_v33, %v1269_v57  ;;  %v2653_v58 = vpop.f32.mrb[2].mxu1  ;;  %v2735_v15 = vpop.f32.mrb[14].mxu0 }
 0x3f0   :  { %v2904_v16 = vrot.slane %v9152_v13, 4  ;;  %v2960_v17 = vmul.f32 %v9152_v13, %v9152_v13  ;;  %v2654_v18 = vpop.f32.mrb[3].mxu1  ;;  %v2736_v31 = vpop.f32.mrb[15].mxu0 }
 0x3f1   :  { %v2910_v19 = vrot.slane %v9154_v9, 4  ;;  %v2961_v20 = vmul.f32 %v9154_v9, %v9154_v9  ;;  %v2922_v21 = vrot.slane %v9156_v60, 4  ;;  %v2963_v22 = vmul.f32 %v9156_v60, %v9156_v60 }
 0x3f2   :  { %v2905_v23 = vadd.f32 %v9152_v13, %v2904_v16  ;;  %v2968_v24 = vrot.slane %v2960_v17, 4 }
 0x3f3   :  { %v2911_v39 = vadd.f32 %v9154_v9, %v2910_v19  ;;  %v2974_v25 = vrot.slane %v2961_v20, 4  ;;  %v2923_v44 = vadd.f32 %v9156_v60, %v2922_v21  ;;  %v2986_v45 = vrot.slane %v2963_v22, 4  ;;  %v9172_v21 = vld [vmem:[#allocation15] sm:$0xff] }
 0x3f4   :  { %v2906_v46 = vrot.slane %v2905_v23, 2  ;;  %v2969_v48 = vadd.f32 %v2968_v24, %v2960_v17 }
 0x3f5   :  { %v2912_v49 = vrot.slane %v2911_v39, 2  ;;  %v2975_v50 = vadd.f32 %v2974_v25, %v2961_v20  ;;  %v2924_v27 = vrot.slane %v2923_v44, 2  ;;  %v2987_v28 = vadd.f32 %v2986_v45, %v2963_v22 }
 0x3f6   :  { %v2907_v30 = vadd.f32 %v2906_v46, %v2905_v23  ;;  %v2970_v32 = vrot.slane %v2969_v48, 2  ;;  %v1265_v20 = vrot.slane %v9142_v10, %v9085_v26  ;;  %v9177_v23 = vld [vmem:[#allocation16] sm:$0xff] }
 0x3f7   :  { %v2913_v34 = vadd.f32 %v2912_v49, %v2911_v39  ;;  %v2976_v35 = vrot.slane %v2975_v50, 2  ;;  %v2925_v36 = vadd.f32 %v2924_v27, %v2923_v44  ;;  %v2988_v37 = vrot.slane %v2987_v28, 2 }
 0x3f8   :  { %v2908_v40 = vrot.slane %v2907_v30, 1  ;;  %v2971_v41 = vadd.f32 %v2970_v32, %v2969_v48  ;;  %v9175_v22 = vadd.f32 %v9150_v59, %v1265_v20  ;;  %v3084_v39 = vrot.slane %v9172_v21, %v9025_v6  ;;  %v7933_v20 = vld [vmem:[#allocation18 + $0x428] ss:$28 sps:$4 sm:$0xff]  }
 0x3f9   :  { %v2914_v42 = vrot.slane %v2913_v34, 1  ;;  %v2977_v43 = vadd.f32 %v2976_v35, %v2975_v50  ;;  %v2926_v47 = vrot.slane %v2925_v36, 1  ;;  %v2989_v51 = vadd.f32 %v2988_v37, %v2987_v28 }
 0x3fa   :  { %v2909_v53 = vadd.f32 %v2908_v40, %v2907_v30  ;;  %v2972_v54 = vrot.slane %v2971_v41, 1  ;;  %v3088_v44 = vrot.slane %v9172_v21, %v9028_v8  ;;  %v3133_v45 = vrot.slane %v9177_v23, %v9025_v6 }
 0x3fb   :  { %v2915_v55 = vadd.f32 %v2914_v42, %v2913_v34  ;;  %v2978_v56 = vrot.slane %v2977_v43, 1  ;;  %v2927_v52 = vadd.f32 %v2926_v47, %v2925_v36  ;;  %v2990_v61 = vrot.slane %v2989_v51, 1 }
 0x3fc   :  { %v2952_v62 = vmul.f32 0.125, %v2909_v53  ;;  %v2973_v63 = vadd.f32 %v2972_v54, %v2971_v41  ;;  %v2916_v48 = vrot.slane %v9175_v22, 4  ;;  %v2962_v59 = vmul.f32 %v9175_v22, %v9175_v22 }
 0x3fd   :  { %v2953_v0 = vmul.f32 0.125, %v2915_v55  ;;  %v2979_v1 = vadd.f32 %v2978_v56, %v2977_v43  ;;  %v2955_v2 = vmul.f32 0.125, %v2927_v52  ;;  %v2991_v7 = vadd.f32 %v2990_v61, %v2989_v51 }
 0x3fe   :  { %v3016_v3 = vmul.f32 0.125, %v2973_v63  ;;  %v3024_v4 = vmul.f32 %v2952_v62, %v2952_v62  ;;  %v3048_v24 = vsub.f32 %v9152_v13, %v2952_v62  ;;  %v3096_v27 = vrot.slane %v9172_v21, %v9088_v29  ;;  %v7915_v62 = vld [vmem:[#allocation18 + $0x380] ss:$28 sps:$4 sm:$0xff]   ;;  %v7918_v63 = vld [vmem:[#allocation18 + $0x388] ss:$28 sps:$4 sm:$0xff]  }
 0x3ff   :  { %v3017_v11 = vmul.f32 0.125, %v2979_v1  ;;  %v3025_v12 = vmul.f32 %v2953_v0, %v2953_v0  ;;  %v3019_v38 = vmul.f32 0.125, %v2991_v7  ;;  %v3027_v14 = vmul.f32 %v2955_v2, %v2955_v2 }
 0x400   :  { %v3032_v57 = vsub.f32 %v3016_v3, %v3024_v4  ;;  %v3049_v49 = vsub.f32 %v9154_v9, %v2953_v0  ;;  %v3051_v13 = vsub.f32 %v9156_v60, %v2955_v2  ;;  %v3137_v34 = vrot.slane %v9177_v23, %v9028_v8  ;;  %v7923_v3 = vld [vmem:[#allocation18 + $0x3bc] ss:$28 sps:$4 sm:$0xff]   ;;  %v7926_v4 = vld [vmem:[#allocation18 + $0x3c4] ss:$28 sps:$4 sm:$0xff]  }
 0x401   :  { %v3033_v33 = vsub.f32 %v3017_v11, %v3025_v12  ;;  %v3035_v15 = vsub.f32 %v3019_v38, %v3027_v14  ;;  %v3145_v36 = vrot.slane %v9177_v23, %v9088_v29  ;;  %v2917_v37 = vadd.f32 %v9175_v22, %v2916_v48  ;;  %v7921_v12 = vld [vmem:[#allocation18 + $0x3b8] ss:$28 sps:$4 sm:$0xff]   ;;  %v7942_v48 = vld [vmem:[#allocation18 + $0x468] ss:$28 sps:$4 sm:$0xff]  }
 0x402   :  { %v3040_v58 = vmax.f32 %v3032_v57, 0.0  ;;  %v2980_v40 = vrot.slane %v2962_v59, 4  ;;  %v7924_v57 = vld [vmem:[#allocation18 + $0x3c0] ss:$28 sps:$4 sm:$0xff]  }
 0x403   :  { %v3041_v16 = vmax.f32 %v3033_v33, 0.0  ;;  %v3043_v18 = vmax.f32 %v3035_v15, 0.0  ;;  %v2918_v51 = vrot.slane %v2917_v37, 2  ;;  %v7929_v33 = vld [vmem:[#allocation18 + $0x3f4] ss:$28 sps:$4 sm:$0xff]  }
 0x404   :  { %v3056_v17 = vadd.f32 1e-05, %v3040_v58  ;;  %v2981_v53 = vadd.f32 %v2980_v40, %v2962_v59  ;;  %v7932_v58 = vld [vmem:[#allocation18 + $0x3fc] ss:$28 sps:$4 sm:$0xff]   ;;  %v7927_v15 = vld [vmem:[#allocation18 + $0x3f0] ss:$28 sps:$4 sm:$0xff]  }
 0x405   :  { %v3057_v31 = vadd.f32 1e-05, %v3041_v16  ;;  %v3059_v19 = vadd.f32 1e-05, %v3043_v18  ;;  %v2919_v1 = vadd.f32 %v2918_v51, %v2917_v37  ;;  %v7930_v16 = vld [vmem:[#allocation18 + $0x3f8] ss:$28 sps:$4 sm:$0xff]  }
 0x406   :  { %8467 = vrsqrt.f32 %v3056_v17  ;;  %v2982_v2 = vrot.slane %v2981_v53, 2  ;;  %v7959_v40 = vld [vmem:[#allocation18 + $0x50c] ss:$28 sps:$4 sm:$0xff]   ;;  %v7963_v51 = vld [vmem:[#allocation18 + $0x540] ss:$28 sps:$4 sm:$0xff]  }
 0x407   :  { %8469 = vrsqrt.f32 %v3057_v31  ;;  %v2920_v38 = vrot.slane %v2919_v1, 1  ;;  %v7935_v31 = vld [vmem:[#allocation18 + $0x42c] ss:$28 sps:$4 sm:$0xff]  }
 0x408   :  { %8471 = vrsqrt.f32 %v3059_v19  ;;  %v2983_v14 = vadd.f32 %v2982_v2, %v2981_v53  ;;  %v7938_v19 = vld [vmem:[#allocation18 + $0x434] ss:$28 sps:$4 sm:$0xff]   ;;  %v7966_v53 = vld [vmem:[#allocation18 + $0x548] ss:$28 sps:$4 sm:$0xff]  }
 0x409   :  { %v2921_v17 = vadd.f32 %v2920_v38, %v2919_v1  ;;  %v7978_v1 = vld [vmem:[#allocation18 + $0x5b8] ss:$28 sps:$4 sm:$0xff]   ;;  %v7983_v2 = vld [vmem:[#allocation18 + $0x5ec] ss:$28 sps:$4 sm:$0xff]  }
 0x40a   :  { %v2984_v18 = vrot.slane %v2983_v14, 1  ;;  %v7984_v38 = vld [vmem:[#allocation18 + $0x5f0] ss:$28 sps:$4 sm:$0xff]  }
 0x410   :  { %v8468_v25 = vpop.eup %8467 }
 0x411   :  { %v3072_v46 = vmul.f32 %v8468_v25, %v3048_v24  ;;  %v8470_v50 = vpop.eup %8469  ;;  %v7936_v24 = vld [vmem:[#allocation18 + $0x430] ss:$28 sps:$4 sm:$0xff]   ;;  %v2985_v25 = vadd.f32 %v2984_v18, %v2983_v14  ;;  %v7989_v14 = vld [vmem:[#allocation18 + $0x624] ss:$28 sps:$4 sm:$0xff]   ;;  %v7995_v18 = vld [vmem:[#allocation18 + $0x65c] ss:$28 sps:$4 sm:$0xff]  }
 0x412   :  { %v8472_v28 = vpop.eup %8471  ;;  %v3073_v32 = vmul.f32 %v8470_v50, %v3049_v49  ;;  %v7947_v50 = vld [vmem:[#allocation18 + $0x49c] ss:$28 sps:$4 sm:$0xff]  }
 0x413   :  { %v3121_v30 = vmul.f32 %v3084_v39, %v3072_v46  ;;  %v3075_v35 = vmul.f32 %v8472_v28, %v3051_v13  ;;  %v9210_v39 = vmul.f32 0.125, %v2921_v17  ;;  %v7939_v46 = vld [vmem:[#allocation18 + $0x460] ss:$28 sps:$4 sm:$0xff]   ;;  %v3018_v59 = vmul.f32 0.125, %v2985_v25  ;;  %v7990_v17 = vld [vmem:[#allocation18 + $0x628] ss:$28 sps:$4 sm:$0xff]  }
 0x414   :  { %v3122_v9 = vmul.f32 %v3088_v44, %v3073_v32  ;;  %v7941_v44 = vld [vmem:[#allocation18 + $0x464] ss:$28 sps:$4 sm:$0xff]   ;;  %v7953_v32 = vld [vmem:[#allocation18 + $0x4d4] ss:$28 sps:$4 sm:$0xff]   ;;  %v8004_v25 = vld [vmem:[#allocation18 + $0x69c] ss:$28 sps:$4 sm:$0xff]  }
 0x415   :  { %v3170_v41 = vadd.f32 %v3133_v45, %v3121_v30  ;;  %v3124_v42 = vmul.f32 %v3096_v27, %v3075_v35  ;;  %v7944_v45 = vld [vmem:[#allocation18 + $0x46c] ss:$28 sps:$4 sm:$0xff]   ;;  %v3026_v49 = vmul.f32 %v9210_v39, %v9210_v39  ;;  %v7950_v13 = vld [vmem:[#allocation18 + $0x4a4] ss:$28 sps:$4 sm:$0xff]   ;;  %v7945_v27 = vld [vmem:[#allocation18 + $0x498] ss:$28 sps:$4 sm:$0xff]  }
 0x416   :  { %v3171_v60 = vadd.f32 %v3137_v34, %v3122_v9  ;;  %v7948_v28 = vld [vmem:[#allocation18 + $0x4a0] ss:$28 sps:$4 sm:$0xff]   ;;  %v7951_v35 = vld [vmem:[#allocation18 + $0x4d0] ss:$28 sps:$4 sm:$0xff]  }
 0x417   :  { %vm3178_vm6 = vcmp.ge.f32.partialorder %v3170_v41, 0.0  ;;  %v3186_v43 = vmul.f32 0.2, %v3170_v41  ;;  %v3173_v47 = vadd.f32 %v3145_v36, %v3124_v42  ;;  %v3034_v30 = vsub.f32 %v3018_v59, %v3026_v49  ;;  %v7956_v34 = vld [vmem:[#allocation18 + $0x4dc] ss:$28 sps:$4 sm:$0xff]  }
 0x418   :  { %vm3179_vm7 = vcmp.ge.f32.partialorder %v3171_v60, 0.0  ;;  %v3187_v54 = vmul.f32 0.2, %v3171_v60  ;;  %v7954_v36 = vld [vmem:[#allocation18 + $0x4d8] ss:$28 sps:$4 sm:$0xff]  }
 0x419   :  { %v3194_v55 = vsel %vm3178_vm6, %v3170_v41, %v3186_v43  ;;  %vm3181_vm8 = vcmp.ge.f32.partialorder %v3173_v47, 0.0  ;;  %v3189_v56 = vmul.f32 0.2, %v3173_v47  ;;  %v3042_v37 = vmax.f32 %v3034_v30, 0.0  ;;  %v7962_v9 = vld [vmem:[#allocation18 + $0x514] ss:$28 sps:$4 sm:$0xff]  }
 0x41a   :  { %v3195_v52 = vsel %vm3179_vm7, %v3171_v60, %v3187_v54  ;;  %v9200_v7 = vpack.c.bf16 %v3194_v55, %v3194_v55  ;;  %v7957_v41 = vld [vmem:[#allocation18 + $0x508] ss:$28 sps:$4 sm:$0xff]   ;;  %v7960_v42 = vld [vmem:[#allocation18 + $0x510] ss:$28 sps:$4 sm:$0xff]   ;;  %v7971_v54 = vld [vmem:[#allocation18 + $0x57c] ss:$28 sps:$4 sm:$0xff]  }
 0x41b   :  { %v9198_v61 = vpack.c.bf16 %v3195_v52, %v3195_v52  ;;  %v3197_v0 = vsel %vm3181_vm8, %v3173_v47, %v3189_v56  ;;  %v3058_v60 = vadd.f32 1e-05, %v3042_v37  ;;  %v7965_v43 = vld [vmem:[#allocation18 + $0x544] ss:$28 sps:$4 sm:$0xff]   ;;  %v7968_v47 = vld [vmem:[#allocation18 + $0x54c] ss:$28 sps:$4 sm:$0xff]  }
 0x41c   :  { %v9206_v11 = vpack.c.bf16 %v3197_v0, %v3197_v0  ;;  %v7974_v55 = vld [vmem:[#allocation18 + $0x584] ss:$28 sps:$4 sm:$0xff]   ;;  %v7969_v56 = vld [vmem:[#allocation18 + $0x578] ss:$28 sps:$4 sm:$0xff]   ;;  %v7975_v0 = vld [vmem:[#allocation18 + $0x5b0] ss:$28 sps:$4 sm:$0xff]  }
 0x41d   :  { %6095 = vmatprep.mubr.bf16.mxu1 %v9198_v61  ;;  %6259 = vmatprep.mubr.bf16.mxu0 %v9198_v61  ;;  %8473 = vrsqrt.f32 %v3058_v60  ;;  %v7972_v52 = vld [vmem:[#allocation18 + $0x580] ss:$28 sps:$4 sm:$0xff]   ;;  %v8010_v59 = vld [vmem:[#allocation18 + $0x6d4] ss:$28 sps:$4 sm:$0xff]  }
 0x41e   :  { %6096 = vmatmul.mubr.bf16.vlgmr.msra.gmra.mrb[8].mxu1 %v9200_v7  ;;  %6260 = vmatmul.mubr.bf16.vlgmr.msra.gmra.mrb[20].mxu0 %v9200_v7  ;;  %v8022_v37 = vld [vmem:[#allocation18 + $0x744] ss:$28 sps:$4 sm:$0xff]   ;;  %v8023_v60 = vld [vmem:[#allocation18 + $0x770] ss:$28 sps:$4 sm:$0xff]  }
 0x41f   :  { %6105 = vmatpush1.bf16.msra.mxu1 %v7915_v62  ;;  %6269 = vmatpush1.bf16.msra.mxu0 %v7918_v63  ;;  %v7977_v62 = vld [vmem:[#allocation18 + $0x5b4] ss:$28 sps:$4 sm:$0xff]   ;;  %v7980_v63 = vld [vmem:[#allocation18 + $0x5bc] ss:$28 sps:$4 sm:$0xff]  }
 0x420   :  { %6136 = vmatprep.mubr.bf16.mxu1 %v9206_v11  ;;  %6300 = vmatprep.mubr.bf16.mxu0 %v9206_v11 }
 0x421   :  { %6106 = vmatprep.subr.bf16.mxu1 %v7923_v3  ;;  %6270 = vmatprep.subr.bf16.mxu0 %v7926_v4  ;;  %v7986_v3 = vld [vmem:[#allocation18 + $0x5f4] ss:$28 sps:$4 sm:$0xff]  }
 0x423   :  { %6107 = vmatpush1.bf16.msra.mxu1 %v7921_v12  ;;  %6271 = vmatpush1.bf16.msra.mxu0 %v7924_v57  ;;  %v3050_v12 = vsub.f32 %v9175_v22, %v9210_v39  ;;  %v7981_v57 = vld [vmem:[#allocation18 + $0x5e8] ss:$28 sps:$4 sm:$0xff]   ;;  %v8001_v39 = vld [vmem:[#allocation18 + $0x694] ss:$28 sps:$4 sm:$0xff]  }
 0x424   :  { %6108 = vmatprep.subr.bf16.mxu1 %v7929_v33  ;;  %6272 = vmatprep.subr.bf16.mxu0 %v7932_v58  ;;  %v7992_v33 = vld [vmem:[#allocation18 + $0x62c] ss:$28 sps:$4 sm:$0xff]   ;;  %v7998_v22 = vld [vmem:[#allocation18 + $0x664] ss:$28 sps:$4 sm:$0xff]  }
 0x427   :  { %6109 = vmatpush1.bf16.msra.mxu1 %v7927_v15  ;;  %6273 = vmatpush1.bf16.msra.mxu0 %v7930_v16  ;;  %v8474_v4 = vpop.eup %8473  ;;  %v3092_v15 = vrot.slane %v9172_v21, %v9085_v26  ;;  %v7987_v16 = vld [vmem:[#allocation18 + $0x620] ss:$28 sps:$4 sm:$0xff]  }
 0x428   :  { %6110 = vmatprep.subr.bf16.mxu1 %v7935_v31  ;;  %6274 = vmatprep.subr.bf16.mxu0 %v7938_v19  ;;  %v3074_v58 = vmul.f32 %v8474_v4, %v3050_v12  ;;  %v3141_v19 = vrot.slane %v9177_v23, %v9085_v26 }
 0x42a   :  { %v3123_v31 = vmul.f32 %v3092_v15, %v3074_v58 }
 0x42b   :  { %6111 = vmatpush1.bf16.msra.mxu1 %v7933_v20  ;;  %6275 = vmatpush1.bf16.msra.mxu0 %v7936_v24  ;;  %v7993_v20 = vld [vmem:[#allocation18 + $0x658] ss:$28 sps:$4 sm:$0xff]   ;;  %v7996_v24 = vld [vmem:[#allocation18 + $0x660] ss:$28 sps:$4 sm:$0xff]  }
 0x42c   :  { %6112 = vmatprep.subr.bf16.mxu1 %v7941_v44  ;;  %6276 = vmatprep.subr.bf16.mxu0 %v7944_v45  ;;  %v3172_v44 = vadd.f32 %v3141_v19, %v3123_v31  ;;  %v7999_v45 = vld [vmem:[#allocation18 + $0x690] ss:$28 sps:$4 sm:$0xff]  }
 0x42e   :  { %v3188_v49 = vmul.f32 0.2, %v3172_v44  ;;  %vm3180_vm9 = vcmp.ge.f32.partialorder %v3172_v44, 0.0 }
 0x42f   :  { %6113 = vmatpush1.bf16.msra.mxu1 %v7939_v46  ;;  %6277 = vmatpush1.bf16.msra.mxu0 %v7942_v48  ;;  %v8002_v46 = vld [vmem:[#allocation18 + $0x698] ss:$28 sps:$4 sm:$0xff]   ;;  %v8007_v48 = vld [vmem:[#allocation18 + $0x6cc] ss:$28 sps:$4 sm:$0xff]  }
 0x430   :  { %6114 = vmatprep.subr.bf16.mxu1 %v7947_v50  ;;  %6278 = vmatprep.subr.bf16.mxu0 %v7950_v13  ;;  %v8005_v50 = vld [vmem:[#allocation18 + $0x6c8] ss:$28 sps:$4 sm:$0xff]   ;;  %v8008_v13 = vld [vmem:[#allocation18 + $0x6d0] ss:$28 sps:$4 sm:$0xff]   ;;  %v3196_v30 = vsel %vm3180_vm9, %v3172_v44, %v3188_v49 }
 0x433   :  { %6115 = vmatpush1.bf16.msra.mxu1 %v7945_v27  ;;  %6279 = vmatpush1.bf16.msra.mxu0 %v7948_v28  ;;  %v8013_v27 = vld [vmem:[#allocation18 + $0x704] ss:$28 sps:$4 sm:$0xff]   ;;  %v8016_v28 = vld [vmem:[#allocation18 + $0x70c] ss:$28 sps:$4 sm:$0xff]  }
 0x434   :  { %6116 = vmatprep.subr.bf16.mxu1 %v7953_v32  ;;  %6280 = vmatprep.subr.bf16.mxu0 %v7956_v34  ;;  %v8011_v32 = vld [vmem:[#allocation18 + $0x700] ss:$28 sps:$4 sm:$0xff]   ;;  %v8014_v34 = vld [vmem:[#allocation18 + $0x708] ss:$28 sps:$4 sm:$0xff]  }
 0x437   :  { %6117 = vmatpush1.bf16.msra.mxu1 %v7951_v35  ;;  %6281 = vmatpush1.bf16.msra.mxu0 %v7954_v36  ;;  %v9220_v35 = vpack.c.bf16 %v3196_v30, %v3196_v30  ;;  %v8019_v36 = vld [vmem:[#allocation18 + $0x73c] ss:$28 sps:$4 sm:$0xff]  }
 0x438   :  { %6118 = vmatprep.subr.bf16.mxu1 %v7959_v40  ;;  %6282 = vmatprep.subr.bf16.mxu0 %v7962_v9  ;;  %v8017_v40 = vld [vmem:[#allocation18 + $0x738] ss:$28 sps:$4 sm:$0xff]   ;;  %v8020_v9 = vld [vmem:[#allocation18 + $0x740] ss:$28 sps:$4 sm:$0xff]  }
 0x43b   :  { %6119 = vmatpush1.bf16.msra.mxu1 %v7957_v41  ;;  %6283 = vmatpush1.bf16.msra.mxu0 %v7960_v42  ;;  %v8025_v41 = vld [vmem:[#allocation18 + $0x774] ss:$28 sps:$4 sm:$0xff]   ;;  %v8028_v42 = vld [vmem:[#allocation18 + $0x77c] ss:$28 sps:$4 sm:$0xff]  }
 0x43c   :  { %6120 = vmatprep.subr.bf16.mxu1 %v7965_v43  ;;  %6284 = vmatprep.subr.bf16.mxu0 %v7968_v47  ;;  %v8026_v43 = vld [vmem:[#allocation18 + $0x778] ss:$28 sps:$4 sm:$0xff]   ;;  %v8031_v47 = vld [vmem:[#allocation18 + $0x7ac] ss:$28 sps:$4 sm:$0xff]  }
 0x43f   :  { %6121 = vmatpush1.bf16.msra.mxu1 %v7963_v51  ;;  %6285 = vmatpush1.bf16.msra.mxu0 %v7966_v53  ;;  %v8034_v51 = vld [vmem:[#allocation18 + $0x7b4] ss:$28 sps:$4 sm:$0xff]   ;;  %v9225_v53 = vsub.s32 4, %v9022_v5 }
 0x440   :  { %6122 = vmatprep.subr.bf16.mxu1 %v7971_v54  ;;  %6286 = vmatprep.subr.bf16.mxu0 %v7974_v55  ;;  %v9228_v54 = vsub.s32 5, %v9022_v5  ;;  %v8029_v55 = vld [vmem:[#allocation18 + $0x7a8] ss:$28 sps:$4 sm:$0xff]  }
 0x443   :  { %6123 = vmatpush1.bf16.msra.mxu1 %v7969_v56  ;;  %6287 = vmatpush1.bf16.msra.mxu0 %v7972_v52  ;;  %v8032_v56 = vld [vmem:[#allocation18 + $0x7b0] ss:$28 sps:$4 sm:$0xff]   ;;  %v9231_v52 = vsub.s32 7, %v9022_v5 }
 0x444   :  { %6124 = vmatprep.subr.bf16.mxu1 %v7977_v62  ;;  %6288 = vmatprep.subr.bf16.mxu0 %v7980_v63  ;;  %v8037_v62 = vld [vmem:[#allocation18 + $0x7e4] ss:$28 sps:$4 sm:$0xff]   ;;  %v8040_v63 = vld [vmem:[#allocation18 + $0x7ec] ss:$28 sps:$4 sm:$0xff]  }
 0x445   :  { %v1285_v4 = vrot.slane %v9142_v10, %v9231_v52 }
 0x447   :  { %6125 = vmatpush1.bf16.msra.mxu1 %v7975_v0  ;;  %6289 = vmatpush1.bf16.msra.mxu0 %v7978_v1  ;;  %v1273_v0 = vrot.slane %v9142_v10, %v9225_v53  ;;  %v1277_v1 = vrot.slane %v9142_v10, %v9228_v54 }
 0x448   :  { %6126 = vmatprep.subr.bf16.mxu1 %v7983_v2  ;;  %6290 = vmatprep.subr.bf16.mxu0 %v7986_v3  ;;  %v8035_v2 = vld [vmem:[#allocation18 + $0x7e0] ss:$28 sps:$4 sm:$0xff]   ;;  %v8038_v3 = vld [vmem:[#allocation18 + $0x7e8] ss:$28 sps:$4 sm:$0xff]  }
 0x44b   :  { %6127 = vmatpush1.bf16.msra.mxu1 %v7981_v57  ;;  %6291 = vmatpush1.bf16.msra.mxu0 %v7984_v38  ;;  %v8043_v57 = vld [vmem:[#allocation18 + $0x81c] ss:$28 sps:$4 sm:$0xff]   ;;  %v8046_v38 = vld [vmem:[#allocation18 + $0x824] ss:$28 sps:$4 sm:$0xff]  }
 0x44c   :  { %6128 = vmatprep.subr.bf16.mxu1 %v7989_v14  ;;  %6292 = vmatprep.subr.bf16.mxu0 %v7992_v33 }
 0x44f   :  { %6129 = vmatpush1.bf16.msra.mxu1 %v7987_v16  ;;  %6293 = vmatpush1.bf16.msra.mxu0 %v7990_v17 }
 0x450   :  { %6130 = vmatprep.subr.bf16.mxu1 %v7995_v18  ;;  %6294 = vmatprep.subr.bf16.mxu0 %v7998_v22  ;;  %v8041_v18 = vld [vmem:[#allocation18 + $0x818] ss:$28 sps:$4 sm:$0xff]  }
 0x453   :  { %6131 = vmatpush1.bf16.msra.mxu1 %v7993_v20  ;;  %6295 = vmatpush1.bf16.msra.mxu0 %v7996_v24 }
 0x454   :  { %6132 = vmatprep.subr.bf16.mxu1 %v8001_v39  ;;  %6296 = vmatprep.subr.bf16.mxu0 %v8004_v25  ;;  %v8044_v39 = vld [vmem:[#allocation18 + $0x820] ss:$28 sps:$4 sm:$0xff]  }
 0x457   :  { %6133 = vmatpush1.bf16.msra.mxu1 %v7999_v45  ;;  %6297 = vmatpush1.bf16.msra.mxu0 %v8002_v46  ;;  %v8049_v46 = vld [vmem:[#allocation18 + $0x854] ss:$28 sps:$4 sm:$0xff]  }
 0x458   :  { %6134 = vmatprep.subr.bf16.mxu1 %v8007_v48  ;;  %6298 = vmatprep.subr.bf16.mxu0 %v8010_v59  ;;  %v8052_v48 = vld [vmem:[#allocation18 + $0x85c] ss:$28 sps:$4 sm:$0xff]  }
 0x45b   :  { %6135 = vmatpush1.bf16.msra.mxu1 %v8005_v50  ;;  %6299 = vmatpush1.bf16.msra.mxu0 %v8008_v13 }
 0x45c   :  { %6145 = vmatprep.subr.bf16.mxu1 %v8013_v27  ;;  %6309 = vmatprep.subr.bf16.mxu0 %v8016_v28 }
 0x45e   :  { %6137 = vmatmul.mubr.bf16.vlgmr.msra.gmra.mrb[8].mxu1 %v9220_v35  ;;  %6301 = vmatmul.mubr.bf16.vlgmr.msra.gmra.mrb[20].mxu0 %v9220_v35 }
 0x45f   :  { %6146 = vmatpush1.bf16.msra.mxu1 %v8011_v32  ;;  %6310 = vmatpush1.bf16.msra.mxu0 %v8014_v34 }
 0x460   :  { %6147 = vmatprep.subr.bf16.mxu1 %v8019_v36  ;;  %6311 = vmatprep.subr.bf16.mxu0 %v8022_v37  ;;  %v8047_v37 = vld [vmem:[#allocation18 + $0x850] ss:$28 sps:$4 sm:$0xff]  }
 0x463   :  { %6148 = vmatpush1.bf16.msra.mxu1 %v8017_v40  ;;  %6312 = vmatpush1.bf16.msra.mxu0 %v8020_v9  ;;  %v8050_v40 = vld [vmem:[#allocation18 + $0x858] ss:$28 sps:$4 sm:$0xff]  }
 0x464   :  { %6149 = vmatprep.subr.bf16.mxu1 %v8025_v41  ;;  %6313 = vmatprep.subr.bf16.mxu0 %v8028_v42  ;;  %v8055_v42 = vld [vmem:[#allocation18 + $0x88c] ss:$28 sps:$4 sm:$0xff]  }
 0x467   :  { %6150 = vmatpush1.bf16.msra.mxu1 %v8023_v60  ;;  %6314 = vmatpush1.bf16.msra.mxu0 %v8026_v43  ;;  %v8058_v60 = vld [vmem:[#allocation18 + $0x894] ss:$28 sps:$4 sm:$0xff]  }
 0x468   :  { %6151 = vmatprep.subr.bf16.mxu1 %v8031_v47  ;;  %6315 = vmatprep.subr.bf16.mxu0 %v8034_v51 }
 0x46b   :  { %6152 = vmatpush1.bf16.msra.mxu1 %v8029_v55  ;;  %6316 = vmatpush1.bf16.msra.mxu0 %v8032_v56 }
 0x46c   :  { %6153 = vmatprep.subr.bf16.mxu1 %v8037_v62  ;;  %6317 = vmatprep.subr.bf16.mxu0 %v8040_v63 }
 0x46d   :  { %v2813_v12 = vpop.f32.mrb[4].mxu1 }
 0x46e   :  { %v9239_v14 = vadd.f32 %v2813_v12, %v1273_v0  ;;  %v9241_v33 = vpop.f32.mrb[16].mxu0  ;;  %v2815_v58 = vpop.f32.mrb[5].mxu1 }
 0x46f   :  { %v9243_v15 = vadd.f32 %v2815_v58, %v1277_v1  ;;  %v2897_v16 = vpop.f32.mrb[17].mxu0  ;;  %v2817_v17 = vpop.f32.mrb[6].mxu1  ;;  %6154 = vmatpush1.bf16.msra.mxu1 %v8035_v2  ;;  %6318 = vmatpush1.bf16.msra.mxu0 %v8038_v3  ;;  %v8053_v3 = vld [vmem:[#allocation18 + $0x888] ss:$28 sps:$4 sm:$0xff]  }
 0x470   :  { %v2928_v22 = vrot.slane %v9239_v14, 4  ;;  %v2964_v31 = vmul.f32 %v9239_v14, %v9239_v14  ;;  %v9248_v19 = vadd.f32 %v2897_v16, %v1285_v4  ;;  %v2899_v20 = vpop.f32.mrb[18].mxu0  ;;  %v2818_v24 = vpop.f32.mrb[7].mxu1  ;;  %6155 = vmatprep.subr.bf16.mxu1 %v8043_v57  ;;  %6319 = vmatprep.subr.bf16.mxu0 %v8046_v38  ;;  %v8056_v4 = vld [vmem:[#allocation18 + $0x890] ss:$28 sps:$4 sm:$0xff]  }
 0x471   :  { %v2934_v25 = vrot.slane %v9243_v15, 4  ;;  %v2965_v44 = vmul.f32 %v9243_v15, %v9243_v15  ;;  %v2900_v45 = vpop.f32.mrb[19].mxu0  ;;  %v8061_v38 = vld [vmem:[#allocation18 + $0x8c4] ss:$28 sps:$4 sm:$0xff]   ;;  %v8064_v58 = vld [vmem:[#allocation18 + $0x8cc] ss:$28 sps:$4 sm:$0xff]  }
 0x472   :  { %v2929_v59 = vadd.f32 %v9239_v14, %v2928_v22  ;;  %v2992_v49 = vrot.slane %v2964_v31, 4  ;;  %v2946_v50 = vrot.slane %v9248_v19, 4  ;;  %v2967_v13 = vmul.f32 %v9248_v19, %v9248_v19  ;;  %v8059_v45 = vld [vmem:[#allocation18 + $0x8c0] ss:$28 sps:$4 sm:$0xff]  }
 0x473   :  { %v2935_v27 = vadd.f32 %v9243_v15, %v2934_v25  ;;  %v2998_v28 = vrot.slane %v2965_v44, 4  ;;  %6156 = vmatpush1.bf16.msra.mxu1 %v8041_v18  ;;  %6320 = vmatpush1.bf16.msra.mxu0 %v8044_v39 }
 0x474   :  { %v2930_v30 = vrot.slane %v2929_v59, 2  ;;  %v2993_v32 = vadd.f32 %v2992_v49, %v2964_v31  ;;  %v2947_v34 = vadd.f32 %v9248_v19, %v2946_v50  ;;  %v3010_v36 = vrot.slane %v2967_v13, 4  ;;  %6157 = vmatprep.subr.bf16.mxu1 %v8049_v46  ;;  %6321 = vmatprep.subr.bf16.mxu0 %v8052_v48  ;;  %v8067_v49 = vld [vmem:[#allocation18 + $0x8fc] ss:$28 sps:$4 sm:$0xff]  }
 0x475   :  { %v2936_v9 = vrot.slane %v2935_v27, 2  ;;  %v2999_v41 = vadd.f32 %v2998_v28, %v2965_v44  ;;  %v8070_v28 = vld [vmem:[#allocation18 + $0x904] ss:$28 sps:$4 sm:$0xff]  }
 0x476   :  { %v2931_v43 = vadd.f32 %v2930_v30, %v2929_v59  ;;  %v2994_v47 = vrot.slane %v2993_v32, 2  ;;  %v2948_v51 = vrot.slane %v2947_v34, 2  ;;  %v3011_v55 = vadd.f32 %v3010_v36, %v2967_v13  ;;  %v8062_v59 = vld [vmem:[#allocation18 + $0x8c8] ss:$28 sps:$4 sm:$0xff]  }
 0x477   :  { %v2937_v56 = vadd.f32 %v2936_v9, %v2935_v27  ;;  %v3000_v62 = vrot.slane %v2999_v41, 2  ;;  %6158 = vmatpush1.bf16.msra.mxu1 %v8047_v37  ;;  %6322 = vmatpush1.bf16.msra.mxu0 %v8050_v40  ;;  %v8065_v37 = vld [vmem:[#allocation18 + $0x8f8] ss:$28 sps:$4 sm:$0xff]   ;;  %v8068_v9 = vld [vmem:[#allocation18 + $0x900] ss:$28 sps:$4 sm:$0xff]  }
 0x478   :  { %v2932_v63 = vrot.slane %v2931_v43, 1  ;;  %v2995_v0 = vadd.f32 %v2994_v47, %v2993_v32  ;;  %v2949_v1 = vadd.f32 %v2948_v51, %v2947_v34  ;;  %v3012_v2 = vrot.slane %v3011_v55, 2  ;;  %6159 = vmatprep.subr.bf16.mxu1 %v8055_v42  ;;  %6323 = vmatprep.subr.bf16.mxu0 %v8058_v60  ;;  %v8076_v47 = vld [vmem:[#allocation18 + $0x93c] ss:$28 sps:$4 sm:$0xff]  }
 0x479   :  { %v2938_v12 = vrot.slane %v2937_v56, 1  ;;  %v3001_v57 = vadd.f32 %v3000_v62, %v2999_v41  ;;  %v8073_v41 = vld [vmem:[#allocation18 + $0x934] ss:$28 sps:$4 sm:$0xff]  }
 0x47a   :  { %v2933_v16 = vadd.f32 %v2932_v63, %v2931_v43  ;;  %v2996_v17 = vrot.slane %v2995_v0, 1  ;;  %v2950_v18 = vrot.slane %v2949_v1, 1  ;;  %v3013_v22 = vadd.f32 %v3012_v2, %v3011_v55  ;;  %v8071_v63 = vld [vmem:[#allocation18 + $0x930] ss:$28 sps:$4 sm:$0xff]  }
 0x47b   :  { %v2939_v31 = vadd.f32 %v2938_v12, %v2937_v56  ;;  %v3002_v20 = vrot.slane %v3001_v57, 1  ;;  %6160 = vmatpush1.bf16.msra.mxu1 %v8053_v3  ;;  %6324 = vmatpush1.bf16.msra.mxu0 %v8056_v4  ;;  %v9272_v55 = vsub.s32 6, %v9022_v5  ;;  %v8082_v4 = vld [vmem:[#allocation18 + $0x974] ss:$28 sps:$4 sm:$0xff]   ;;  %v8077_v5 = vld [vmem:[#allocation18 + $0x968] ss:$28 sps:$4 sm:$0xff]  }
 0x47c   :  { %v9259_v24 = vmul.f32 0.125, %v2933_v16  ;;  %v2997_v39 = vadd.f32 %v2996_v17, %v2995_v0  ;;  %v2951_v25 = vadd.f32 %v2950_v18, %v2949_v1  ;;  %v3014_v44 = vrot.slane %v3013_v22, 1  ;;  %6161 = vmatprep.subr.bf16.mxu1 %v8061_v38  ;;  %6325 = vmatprep.subr.bf16.mxu0 %v8064_v58  ;;  %v8074_v0 = vld [vmem:[#allocation18 + $0x938] ss:$28 sps:$4 sm:$0xff]   ;;  %v8079_v1 = vld [vmem:[#allocation18 + $0x96c] ss:$28 sps:$4 sm:$0xff]  }
 0x47d   :  { %v9261_v46 = vmul.f32 0.125, %v2939_v31  ;;  %v3003_v48 = vadd.f32 %v3002_v20, %v3001_v57  ;;  %v1281_v12 = vrot.slane %v9142_v10, %v9272_v55  ;;  %v8080_v38 = vld [vmem:[#allocation18 + $0x970] ss:$28 sps:$4 sm:$0xff]   ;;  %v8085_v58 = vld [vmem:[#allocation18 + $0x9a4] ss:$28 sps:$4 sm:$0xff]  }
 0x47e   :  { %v3020_v50 = vmul.f32 0.125, %v2997_v39  ;;  %v3028_v13 = vmul.f32 %v9259_v24, %v9259_v24  ;;  %v9265_v27 = vmul.f32 0.125, %v2951_v25  ;;  %v3015_v36 = vadd.f32 %v3014_v44, %v3013_v22  ;;  %v8088_v16 = vld [vmem:[#allocation18 + $0x9ac] ss:$28 sps:$4 sm:$0xff]   ;;  %v8083_v18 = vld [vmem:[#allocation18 + $0x9a0] ss:$28 sps:$4 sm:$0xff]  }
 0x47f   :  { %v3021_v30 = vmul.f32 0.125, %v3003_v48  ;;  %v3029_v34 = vmul.f32 %v9261_v46, %v9261_v46  ;;  %6162 = vmatpush1.bf16.msra.mxu1 %v8059_v45  ;;  %6326 = vmatpush1.bf16.msra.mxu0 %v8062_v59  ;;  %v9277_v17 = vadd.f32 %v9241_v33, %v1281_v12  ;;  %v8086_v22 = vld [vmem:[#allocation18 + $0x9a8] ss:$28 sps:$4 sm:$0xff]   ;;  %v8091_v10 = vld [vmem:[#allocation18 + $0x9dc] ss:$28 sps:$4 sm:$0xff]   ;;  %v3052_v20 = vsub.f32 %v9239_v14, %v9259_v24 }
 0x480   :  { %v3036_v32 = vsub.f32 %v3020_v50, %v3028_v13  ;;  %v3031_v40 = vmul.f32 %v9265_v27, %v9265_v27  ;;  %6163 = vmatprep.subr.bf16.mxu1 %v8067_v49  ;;  %v3023_v43 = vmul.f32 0.125, %v3015_v36  ;;  %6327 = vmatprep.subr.bf16.mxu0 %v8070_v28  ;;  %v8094_v31 = vld [vmem:[#allocation18 + $0x9e4] ss:$28 sps:$4 sm:$0xff]   ;;  %v3100_v39 = vrot.slane %v9172_v21, %v9225_v53  ;;  %v8089_v45 = vld [vmem:[#allocation18 + $0x9d8] ss:$28 sps:$4 sm:$0xff]  }
 0x481   :  { %v3037_v60 = vsub.f32 %v3021_v30, %v3029_v34  ;;  %v2940_v44 = vrot.slane %v9277_v17, 4  ;;  %v3104_v33 = vrot.slane %v9172_v21, %v9228_v54  ;;  %v3149_v48 = vrot.slane %v9177_v23, %v9225_v53  ;;  %v8092_v24 = vld [vmem:[#allocation18 + $0x9e0] ss:$28 sps:$4 sm:$0xff]   ;;  %v8097_v50 = vld [vmem:[#allocation18 + $0xa14] ss:$28 sps:$4 sm:$0xff]  }
 0x482   :  { %v3044_v42 = vmax.f32 %v3036_v32, 0.0  ;;  %v3039_v62 = vsub.f32 %v3023_v43, %v3031_v40  ;;  %v2966_v49 = vmul.f32 %v9277_v17, %v9277_v17  ;;  %v3053_v14 = vsub.f32 %v9243_v15, %v9261_v46  ;;  %v8100_v30 = vld [vmem:[#allocation18 + $0xa1c] ss:$28 sps:$4 sm:$0xff]   ;;  %v8103_v43 = vld [vmem:[#allocation18 + $0xa4c] ss:$28 sps:$4 sm:$0xff]  }
 0x483   :  { %v3045_v56 = vmax.f32 %v3037_v60, 0.0  ;;  %6164 = vmatpush1.bf16.msra.mxu1 %v8065_v37  ;;  %6328 = vmatpush1.bf16.msra.mxu0 %v8068_v9  ;;  %v3112_v28 = vrot.slane %v9172_v21, %v9231_v52  ;;  %v3055_v36 = vsub.f32 %v9248_v19, %v9265_v27  ;;  %v3153_v37 = vrot.slane %v9177_v23, %v9228_v54  ;;  %v8095_v9 = vld [vmem:[#allocation18 + $0xa10] ss:$28 sps:$4 sm:$0xff]   ;;  %v8098_v60 = vld [vmem:[#allocation18 + $0xa18] ss:$28 sps:$4 sm:$0xff]  }
 0x484   :  { %v3060_v51 = vadd.f32 1e-05, %v3044_v42  ;;  %6165 = vmatprep.subr.bf16.mxu1 %v8073_v41  ;;  %v3047_v3 = vmax.f32 %v3039_v62, 0.0  ;;  %6329 = vmatprep.subr.bf16.mxu0 %v8076_v47  ;;  %v2941_v15 = vadd.f32 %v9277_v17, %v2940_v44  ;;  %v3161_v46 = vrot.slane %v9177_v23, %v9231_v52  ;;  %v8106_v19 = vld [vmem:[#allocation18 + $0xa54] ss:$28 sps:$4 sm:$0xff]  }
 0x485   :  { %v3061_v2 = vadd.f32 1e-05, %v3045_v56  ;;  %v3004_v41 = vrot.slane %v2966_v49, 4  ;;  %v8104_v23 = vld [vmem:[#allocation18 + $0xa50] ss:$28 sps:$4 sm:$0xff]  }
 0x486   :  { %8475 = vrsqrt.f32 %v3060_v51  ;;  %v3063_v57 = vadd.f32 1e-05, %v3047_v3  ;;  %v2942_v62 = vrot.slane %v2941_v15, 2  ;;  %v8112_v12 = vld [vmem:[#allocation18 + $0xa8c] ss:$28 sps:$4 sm:$0xff]  }
 0x487   :  { %8477 = vrsqrt.f32 %v3061_v2  ;;  %6166 = vmatpush1.bf16.msra.mxu1 %v8071_v63  ;;  %6330 = vmatpush1.bf16.msra.mxu0 %v8074_v0  ;;  %v8101_v63 = vld [vmem:[#allocation18 + $0xa48] ss:$28 sps:$4 sm:$0xff]   ;;  %v3005_v52 = vadd.f32 %v3004_v41, %v2966_v49  ;;  %v8119_v49 = vld [vmem:[#allocation18 + $0xaf0] ss:$28 sps:$4 sm:$0xff]  }
 0x488   :  { %6167 = vmatprep.subr.bf16.mxu1 %v8079_v1  ;;  %8479 = vrsqrt.f32 %v3063_v57  ;;  %6331 = vmatprep.subr.bf16.mxu0 %v8082_v4  ;;  %v8109_v1 = vld [vmem:[#allocation18 + $0xa84] ss:$28 sps:$4 sm:$0xff]  }
 0x489   :  { %v8134_v41 = vld [vmem:[#allocation18 + $0xb68] ss:$28 sps:$4 sm:$0xff]  }
 0x48b   :  { %6168 = vmatpush1.bf16.msra.mxu1 %v8077_v5  ;;  %6332 = vmatpush1.bf16.msra.mxu0 %v8080_v38  ;;  %v8107_v38 = vld [vmem:[#allocation18 + $0xa80] ss:$28 sps:$4 sm:$0xff]  }
 0x48c   :  { %6169 = vmatprep.subr.bf16.mxu1 %v8085_v58  ;;  %6333 = vmatprep.subr.bf16.mxu0 %v8088_v16  ;;  %v2943_v58 = vadd.f32 %v2942_v62, %v2941_v15  ;;  %v3006_v16 = vrot.slane %v3005_v52, 2  ;;  %v8131_v15 = vld [vmem:[#allocation18 + $0xb60] ss:$28 sps:$4 sm:$0xff]   ;;  %v8146_v62 = vld [vmem:[#allocation18 + $0xbd8] ss:$28 sps:$4 sm:$0xff]  }
 0x48e   :  { %v2944_v44 = vrot.slane %v2943_v58, 1 }
 0x48f   :  { %6170 = vmatpush1.bf16.msra.mxu1 %v8083_v18  ;;  %6334 = vmatpush1.bf16.msra.mxu0 %v8086_v22  ;;  %v8110_v18 = vld [vmem:[#allocation18 + $0xa88] ss:$28 sps:$4 sm:$0xff]  }
 0x490   :  { %v8476_v25 = vpop.eup %8475  ;;  %6171 = vmatprep.subr.bf16.mxu1 %v8091_v10  ;;  %6335 = vmatprep.subr.bf16.mxu0 %v8094_v31  ;;  %v8115_v31 = vld [vmem:[#allocation18 + $0xabc] ss:$28 sps:$4 sm:$0xff]  }
 0x491   :  { %v3076_v59 = vmul.f32 %v8476_v25, %v3052_v20  ;;  %v8478_v13 = vpop.eup %8477  ;;  %v8113_v25 = vld [vmem:[#allocation18 + $0xab8] ss:$28 sps:$4 sm:$0xff]  }
 0x492   :  { %v3077_v34 = vmul.f32 %v8478_v13, %v3053_v14  ;;  %v8480_v40 = vpop.eup %8479  ;;  %v2945_v14 = vadd.f32 %v2944_v44, %v2943_v58  ;;  %v8127_v13 = vld [vmem:[#allocation18 + $0xb2c] ss:$28 sps:$4 sm:$0xff]   ;;  %v8161_v58 = vld [vmem:[#allocation18 + $0xc78] ss:$28 sps:$4 sm:$0xff]  }
 0x493   :  { %v3125_v32 = vmul.f32 %v3100_v39, %v3076_v59  ;;  %6172 = vmatpush1.bf16.msra.mxu1 %v8089_v45  ;;  %v3079_v42 = vmul.f32 %v8480_v40, %v3055_v36  ;;  %6336 = vmatpush1.bf16.msra.mxu0 %v8092_v24  ;;  %v8118_v39 = vld [vmem:[#allocation18 + $0xac4] ss:$28 sps:$4 sm:$0xff]   ;;  %v8124_v59 = vld [vmem:[#allocation18 + $0xafc] ss:$28 sps:$4 sm:$0xff]   ;;  %v8128_v36 = vld [vmem:[#allocation18 + $0xb30] ss:$28 sps:$4 sm:$0xff]  }
 0x494   :  { %v3126_v21 = vmul.f32 %v3104_v33, %v3077_v34  ;;  %6173 = vmatprep.subr.bf16.mxu1 %v8097_v50  ;;  %6337 = vmatprep.subr.bf16.mxu0 %v8100_v30  ;;  %v3007_v33 = vadd.f32 %v3006_v16, %v3005_v52  ;;  %v8116_v45 = vld [vmem:[#allocation18 + $0xac0] ss:$28 sps:$4 sm:$0xff]   ;;  %v8122_v50 = vld [vmem:[#allocation18 + $0xaf8] ss:$28 sps:$4 sm:$0xff]   ;;  %v8125_v30 = vld [vmem:[#allocation18 + $0xb28] ss:$28 sps:$4 sm:$0xff]  }
 0x495   :  { %v3174_v47 = vadd.f32 %v3149_v48, %v3125_v32  ;;  %v3128_v27 = vmul.f32 %v3112_v28, %v3079_v42  ;;  %v8121_v48 = vld [vmem:[#allocation18 + $0xaf4] ss:$28 sps:$4 sm:$0xff]   ;;  %v9313_v32 = vmul.f32 0.125, %v2945_v14  ;;  %v8136_v40 = vld [vmem:[#allocation18 + $0xb6c] ss:$28 sps:$4 sm:$0xff]  }
 0x496   :  { %v3175_v51 = vadd.f32 %v3153_v37, %v3126_v21  ;;  %v3008_v24 = vrot.slane %v3007_v33, 1  ;;  %v8130_v28 = vld [vmem:[#allocation18 + $0xb34] ss:$28 sps:$4 sm:$0xff]   ;;  %v8133_v37 = vld [vmem:[#allocation18 + $0xb64] ss:$28 sps:$4 sm:$0xff]  }
 0x497   :  { %vm3182_vm10 = vcmp.ge.f32.partialorder %v3174_v47, 0.0  ;;  %v3190_v56 = vmul.f32 0.2, %v3174_v47  ;;  %6174 = vmatpush1.bf16.msra.mxu1 %v8095_v9  ;;  %6338 = vmatpush1.bf16.msra.mxu0 %v8098_v60  ;;  %v3177_v2 = vadd.f32 %v3161_v46, %v3128_v27  ;;  %v3030_v9 = vmul.f32 %v9313_v32, %v9313_v32  ;;  %v8139_v21 = vld [vmem:[#allocation18 + $0xb9c] ss:$28 sps:$4 sm:$0xff]  }
 0x498   :  { %6175 = vmatprep.subr.bf16.mxu1 %v8103_v43  ;;  %vm3183_vm11 = vcmp.ge.f32.partialorder %v3175_v51, 0.0  ;;  %v3191_v0 = vmul.f32 0.2, %v3175_v51  ;;  %6339 = vmatprep.subr.bf16.mxu0 %v8106_v19  ;;  %v3009_v34 = vadd.f32 %v3008_v24, %v3007_v33  ;;  %v8142_v42 = vld [vmem:[#allocation18 + $0xba4] ss:$28 sps:$4 sm:$0xff]   ;;  %v8497_v24 = vld [vmem:[#allocation15] sm:$0xff] }
 0x499   :  { %v3198_v3 = vsel %vm3182_vm10, %v3174_v47, %v3190_v56  ;;  %vm3185_vm12 = vcmp.ge.f32.partialorder %v3177_v2, 0.0  ;;  %v3193_v57 = vmul.f32 0.2, %v3177_v2  ;;  %v8137_v60 = vld [vmem:[#allocation18 + $0xb98] ss:$28 sps:$4 sm:$0xff]  }
 0x49a   :  { %v3199_v4 = vsel %vm3183_vm11, %v3175_v51, %v3191_v0  ;;  %v9303_v22 = vpack.c.bf16 %v3198_v3, %v3198_v3  ;;  %v3022_v46 = vmul.f32 0.125, %v3009_v34  ;;  %v8140_v47 = vld [vmem:[#allocation18 + $0xba0] ss:$28 sps:$4 sm:$0xff]   ;;  %v8145_v19 = vld [vmem:[#allocation18 + $0xbd4] ss:$28 sps:$4 sm:$0xff]  }
 0x49b   :  { %6176 = vmatpush1.bf16.msra.mxu1 %v8101_v63  ;;  %v9301_v5 = vpack.c.bf16 %v3199_v4, %v3199_v4  ;;  %6340 = vmatpush1.bf16.msra.mxu0 %v8104_v23  ;;  %v3201_v10 = vsel %vm3185_vm12, %v3177_v2, %v3193_v57  ;;  %v8148_v27 = vld [vmem:[#allocation18 + $0xbdc] ss:$28 sps:$4 sm:$0xff]   ;;  %v8143_v51 = vld [vmem:[#allocation18 + $0xbd0] ss:$28 sps:$4 sm:$0xff]   ;;  %v8149_v52 = vld [vmem:[#allocation18 + $0xc08] ss:$28 sps:$4 sm:$0xff]  }
 0x49c   :  { %6186 = vmatprep.subr.bf16.mxu1 %v8109_v1  ;;  %6350 = vmatprep.subr.bf16.mxu0 %v8112_v12  ;;  %v9308_v20 = vpack.c.bf16 %v3201_v10, %v3201_v10  ;;  %v3038_v43 = vsub.f32 %v3022_v46, %v3030_v9  ;;  %v8151_v63 = vld [vmem:[#allocation18 + $0xc0c] ss:$28 sps:$4 sm:$0xff]   ;;  %v8154_v23 = vld [vmem:[#allocation18 + $0xc14] ss:$28 sps:$4 sm:$0xff]   ;;  %v8157_v2 = vld [vmem:[#allocation18 + $0xc44] ss:$28 sps:$4 sm:$0xff]  }
 0x49d   :  { %6177 = vmatprep.mubr.bf16.mxu1 %v9301_v5  ;;  %6341 = vmatprep.mubr.bf16.mxu0 %v9301_v5  ;;  %v8152_v1 = vld [vmem:[#allocation18 + $0xc10] ss:$28 sps:$4 sm:$0xff]   ;;  %v8155_v4 = vld [vmem:[#allocation18 + $0xc40] ss:$28 sps:$4 sm:$0xff]   ;;  %v8158_v12 = vld [vmem:[#allocation18 + $0xc48] ss:$28 sps:$4 sm:$0xff]  }
 0x49e   :  { %6178 = vmatmul.mubr.bf16.vlgmr.msra.gmra.mrb[8].mxu1 %v9303_v22  ;;  %6342 = vmatmul.mubr.bf16.vlgmr.msra.gmra.mrb[20].mxu0 %v9303_v22  ;;  %v3046_v56 = vmax.f32 %v3038_v43, 0.0  ;;  %v8160_v3 = vld [vmem:[#allocation18 + $0xc4c] ss:$28 sps:$4 sm:$0xff]   ;;  %v8163_v57 = vld [vmem:[#allocation18 + $0xc7c] ss:$28 sps:$4 sm:$0xff]  }
 0x49f   :  { %6187 = vmatpush1.bf16.msra.mxu1 %v8107_v38  ;;  %6351 = vmatpush1.bf16.msra.mxu0 %v8110_v18  ;;  %v8166_v38 = vld [vmem:[#allocation18 + $0xc84] ss:$28 sps:$4 sm:$0xff]   ;;  %v8169_v18 = vld [vmem:[#allocation18 + $0xcb4] ss:$28 sps:$4 sm:$0xff]   ;;  %v8172_v10 = vld [vmem:[#allocation18 + $0xcbc] ss:$28 sps:$4 sm:$0xff]  }
 0x4a0   :  { %6218 = vmatprep.mubr.bf16.mxu1 %v9308_v20  ;;  %6382 = vmatprep.mubr.bf16.mxu0 %v9308_v20  ;;  %v3062_v0 = vadd.f32 1e-05, %v3046_v56  ;;  %v8164_v16 = vld [vmem:[#allocation18 + $0xc80] ss:$28 sps:$4 sm:$0xff]   ;;  %v8178_v44 = vld [vmem:[#allocation18 + $0xcf4] ss:$28 sps:$4 sm:$0xff]  }
 0x4a1   :  { %6188 = vmatprep.subr.bf16.mxu1 %v8115_v31  ;;  %6352 = vmatprep.subr.bf16.mxu0 %v8118_v39  ;;  %v8167_v31 = vld [vmem:[#allocation18 + $0xcb0] ss:$28 sps:$4 sm:$0xff]   ;;  %v8170_v39 = vld [vmem:[#allocation18 + $0xcb8] ss:$28 sps:$4 sm:$0xff]  }
 0x4a2   :  { %8481 = vrsqrt.f32 %v3062_v0  ;;  %v8187_v34 = vld [vmem:[#allocation18 + $0xd5c] ss:$28 sps:$4 sm:$0xff]   ;;  %v8193_v46 = vld [vmem:[#allocation18 + $0xd94] ss:$28 sps:$4 sm:$0xff]   ;;  %v8210_v0 = vld [vmem:[#allocation18 + $0x4c] ss:$28 sps:$4 sm:$0xff]  }
 0x4a3   :  { %6189 = vmatpush1.bf16.msra.mxu1 %v8113_v25  ;;  %6353 = vmatpush1.bf16.msra.mxu0 %v8116_v45  ;;  %v8175_v25 = vld [vmem:[#allocation18 + $0xcec] ss:$28 sps:$4 sm:$0xff]   ;;  %v3054_v45 = vsub.f32 %v9277_v17, %v9313_v32  ;;  %v8190_v17 = vld [vmem:[#allocation18 + $0xd64] ss:$28 sps:$4 sm:$0xff]   ;;  %v8498_v32 = vld [vmem:[#allocation16] sm:$0xff] }
 0x4a4   :  { %6190 = vmatprep.subr.bf16.mxu1 %v8121_v48  ;;  %6354 = vmatprep.subr.bf16.mxu0 %v8124_v59  ;;  %v8173_v48 = vld [vmem:[#allocation18 + $0xce8] ss:$28 sps:$4 sm:$0xff]   ;;  %v8176_v59 = vld [vmem:[#allocation18 + $0xcf0] ss:$28 sps:$4 sm:$0xff]   ;;  %v8196_v9 = vld [vmem:[#allocation18 + $0xd9c] ss:$28 sps:$4 sm:$0xff]  }
 0x4a5   :  { %v8202_v43 = vld [vmem:[#allocation18 + $0xdd4] ss:$28 sps:$4 sm:$0xff]  }
 0x4a7   :  { %6191 = vmatpush1.bf16.msra.mxu1 %v8119_v49  ;;  %6355 = vmatpush1.bf16.msra.mxu0 %v8122_v50  ;;  %v8181_v49 = vld [vmem:[#allocation18 + $0xd24] ss:$28 sps:$4 sm:$0xff]   ;;  %v3108_v50 = vrot.slane %v8497_v24, %v9272_v55 }
 0x4a8   :  { %6192 = vmatprep.subr.bf16.mxu1 %v8127_v13  ;;  %6356 = vmatprep.subr.bf16.mxu0 %v8130_v28  ;;  %v8184_v13 = vld [vmem:[#allocation18 + $0xd2c] ss:$28 sps:$4 sm:$0xff]   ;;  %v8179_v28 = vld [vmem:[#allocation18 + $0xd20] ss:$28 sps:$4 sm:$0xff]  }
 0x4a9   :  { %v8237_v24 = vld [vmem:[#allocation18 + $0x168] ss:$28 sps:$4 sm:$0xff]  }
 0x4ab   :  { %6193 = vmatpush1.bf16.msra.mxu1 %v8125_v30  ;;  %6357 = vmatpush1.bf16.msra.mxu0 %v8128_v36  ;;  %v8182_v30 = vld [vmem:[#allocation18 + $0xd28] ss:$28 sps:$4 sm:$0xff]  }
 0x4ac   :  { %6194 = vmatprep.subr.bf16.mxu1 %v8133_v37  ;;  %6358 = vmatprep.subr.bf16.mxu0 %v8136_v40  ;;  %v8482_v33 = vpop.eup %8481  ;;  %v3157_v37 = vrot.slane %v8498_v32, %v9272_v55  ;;  %v8185_v40 = vld [vmem:[#allocation18 + $0xd58] ss:$28 sps:$4 sm:$0xff]  }
 0x4ad   :  { %v3078_v14 = vmul.f32 %v8482_v33, %v3054_v45  ;;  %v8231_v33 = vld [vmem:[#allocation18 + $0x2f0] ss:$28 sps:$4 sm:$0xff]   ;;  %v8228_v45 = vld [vmem:[#allocation18 + $0x128] ss:$28 sps:$4 sm:$0xff]   ;;  %v8247_v32 = vld [vmem:[#allocation18 + $0x398] ss:$28 sps:$4 sm:$0xff]  }
 0x4af   :  { %6195 = vmatpush1.bf16.msra.mxu1 %v8131_v15  ;;  %6359 = vmatpush1.bf16.msra.mxu0 %v8134_v41  ;;  %v3127_v36 = vmul.f32 %v3108_v50, %v3078_v14  ;;  %v8188_v15 = vld [vmem:[#allocation18 + $0xd60] ss:$28 sps:$4 sm:$0xff]  }
 0x4b0   :  { %6196 = vmatprep.subr.bf16.mxu1 %v8139_v21  ;;  %6360 = vmatprep.subr.bf16.mxu0 %v8142_v42  ;;  %v8191_v21 = vld [vmem:[#allocation18 + $0xd90] ss:$28 sps:$4 sm:$0xff]   ;;  %v8194_v42 = vld [vmem:[#allocation18 + $0xd98] ss:$28 sps:$4 sm:$0xff]   ;;  %v8233_v14 = vld [vmem:[#allocation18 + $0x160] ss:$28 sps:$4 sm:$0xff]  }
 0x4b1   :  { %v3176_v41 = vadd.f32 %v3157_v37, %v3127_v36  ;;  %v8240_v50 = vld [vmem:[#allocation18 + $0x19c] ss:$28 sps:$4 sm:$0xff]   ;;  %v8250_v37 = vld [vmem:[#allocation18 + $0x20c] ss:$28 sps:$4 sm:$0xff]  }
 0x4b2   :  { %v8246_v36 = vld [vmem:[#allocation18 + $0x558] ss:$28 sps:$4 sm:$0xff]  }
 0x4b3   :  { %6197 = vmatpush1.bf16.msra.mxu1 %v8137_v60  ;;  %6361 = vmatpush1.bf16.msra.mxu0 %v8140_v47  ;;  %v8199_v60 = vld [vmem:[#allocation18 + $0xdcc] ss:$28 sps:$4 sm:$0xff]   ;;  %v3192_v47 = vmul.f32 0.2, %v3176_v41  ;;  %vm3184_vm13 = vcmp.ge.f32.partialorder %v3176_v41, 0.0 }
 0x4b4   :  { %6198 = vmatprep.subr.bf16.mxu1 %v8145_v19  ;;  %6362 = vmatprep.subr.bf16.mxu0 %v8148_v27  ;;  %v8197_v19 = vld [vmem:[#allocation18 + $0xdc8] ss:$28 sps:$4 sm:$0xff]   ;;  %v8200_v27 = vld [vmem:[#allocation18 + $0xdd0] ss:$28 sps:$4 sm:$0xff]  }
 0x4b5   :  { %v3200_v56 = vsel %vm3184_vm13, %v3176_v41, %v3192_v47  ;;  %v8256_v41 = vld [vmem:[#allocation18 + $0x5c8] ss:$28 sps:$4 sm:$0xff]   ;;  %v8258_v47 = vld [vmem:[#allocation18 + $0x278] ss:$28 sps:$4 sm:$0xff]  }
 0x4b7   :  { %6199 = vmatpush1.bf16.msra.mxu1 %v8143_v51  ;;  %6363 = vmatpush1.bf16.msra.mxu0 %v8146_v62  ;;  %v8205_v51 = vld [vmem:[#allocation18 + $0x14] ss:$28 sps:$4 sm:$0xff]  }
 0x4b8   :  { %6200 = vmatprep.subr.bf16.mxu1 %v8151_v63  ;;  %6364 = vmatprep.subr.bf16.mxu0 %v8154_v23  ;;  %v8206_v62 = vld [vmem:[#allocation18 + $0x1d8] ss:$28 sps:$4 sm:$0xff]   ;;  %v8203_v63 = vld [vmem:[#allocation18 + $0x10] ss:$28 sps:$4 sm:$0xff]   ;;  %v9321_v23 = vpack.c.bf16 %v3200_v56, %v3200_v56 }
 0x4b9   :  { %v8263_v56 = vld [vmem:[#allocation18 + $0x2b0] ss:$28 sps:$4 sm:$0xff]  }
 0x4bb   :  { %6201 = vmatpush1.bf16.msra.mxu1 %v8149_v52  ;;  %6365 = vmatpush1.bf16.msra.mxu0 %v8152_v1  ;;  %v8207_v52 = vld [vmem:[#allocation18 + $0x18] ss:$28 sps:$4 sm:$0xff]   ;;  %v8211_v1 = vld [vmem:[#allocation18 + $0x210] ss:$28 sps:$4 sm:$0xff]  }
 0x4bc   :  { %6202 = vmatprep.subr.bf16.mxu1 %v8157_v2  ;;  %6366 = vmatprep.subr.bf16.mxu0 %v8160_v3  ;;  %v8208_v2 = vld [vmem:[#allocation18 + $0x48] ss:$28 sps:$4 sm:$0xff]   ;;  %v8212_v3 = vld [vmem:[#allocation18 + $0x50] ss:$28 sps:$4 sm:$0xff]  }
 0x4bf   :  { %6203 = vmatpush1.bf16.msra.mxu1 %v8155_v4  ;;  %6367 = vmatpush1.bf16.msra.mxu0 %v8158_v12  ;;  %v8215_v4 = vld [vmem:[#allocation18 + $0x84] ss:$28 sps:$4 sm:$0xff]  }
 0x4c0   :  { %6204 = vmatprep.subr.bf16.mxu1 %v8163_v57  ;;  %6368 = vmatprep.subr.bf16.mxu0 %v8166_v38  ;;  %v8216_v12 = vld [vmem:[#allocation18 + $0x248] ss:$28 sps:$4 sm:$0xff]   ;;  %v8213_v57 = vld [vmem:[#allocation18 + $0x80] ss:$28 sps:$4 sm:$0xff]  }
 0x4c1   :  { %v8217_v38 = vld [vmem:[#allocation18 + $0x88] ss:$28 sps:$4 sm:$0xff]  }
 0x4c3   :  { %6205 = vmatpush1.bf16.msra.mxu1 %v8161_v58  ;;  %6369 = vmatpush1.bf16.msra.mxu0 %v8164_v16  ;;  %v8220_v58 = vld [vmem:[#allocation18 + $0xbc] ss:$28 sps:$4 sm:$0xff]  }
 0x4c4   :  { %6206 = vmatprep.subr.bf16.mxu1 %v8169_v18  ;;  %6370 = vmatprep.subr.bf16.mxu0 %v8172_v10  ;;  %v8221_v16 = vld [vmem:[#allocation18 + $0x280] ss:$28 sps:$4 sm:$0xff]   ;;  %v8218_v18 = vld [vmem:[#allocation18 + $0xb8] ss:$28 sps:$4 sm:$0xff]  }
 0x4c5   :  { %v8222_v10 = vld [vmem:[#allocation18 + $0xc0] ss:$28 sps:$4 sm:$0xff]  }
 0x4c7   :  { %6207 = vmatpush1.bf16.msra.mxu1 %v8167_v31  ;;  %6371 = vmatpush1.bf16.msra.mxu0 %v8170_v39  ;;  %v8225_v31 = vld [vmem:[#allocation18 + $0xf4] ss:$28 sps:$4 sm:$0xff]  }
 0x4c8   :  { %6208 = vmatprep.subr.bf16.mxu1 %v8175_v25  ;;  %6372 = vmatprep.subr.bf16.mxu0 %v8178_v44  ;;  %v8226_v39 = vld [vmem:[#allocation18 + $0x2b8] ss:$28 sps:$4 sm:$0xff]   ;;  %v8230_v44 = vld [vmem:[#allocation18 + $0x12c] ss:$28 sps:$4 sm:$0xff]  }
 0x4c9   :  { %v8227_v25 = vld [vmem:[#allocation18 + $0xf8] ss:$28 sps:$4 sm:$0xff]  }
 0x4cb   :  { %6209 = vmatpush1.bf16.msra.mxu1 %v8173_v48  ;;  %6373 = vmatpush1.bf16.msra.mxu0 %v8176_v59  ;;  %v8232_v48 = vld [vmem:[#allocation18 + $0x130] ss:$28 sps:$4 sm:$0xff]   ;;  %v8235_v59 = vld [vmem:[#allocation18 + $0x164] ss:$28 sps:$4 sm:$0xff]  }
 0x4cc   :  { %6210 = vmatprep.subr.bf16.mxu1 %v8181_v49  ;;  %6374 = vmatprep.subr.bf16.mxu0 %v8184_v13  ;;  %v8236_v49 = vld [vmem:[#allocation18 + $0x328] ss:$28 sps:$4 sm:$0xff]   ;;  %v8241_v13 = vld [vmem:[#allocation18 + $0x360] ss:$28 sps:$4 sm:$0xff]  }
 0x4cf   :  { %6211 = vmatpush1.bf16.msra.mxu1 %v8179_v28  ;;  %6375 = vmatpush1.bf16.msra.mxu0 %v8182_v30  ;;  %v8238_v28 = vld [vmem:[#allocation18 + $0x198] ss:$28 sps:$4 sm:$0xff]   ;;  %v8242_v30 = vld [vmem:[#allocation18 + $0x1a0] ss:$28 sps:$4 sm:$0xff]  }
 0x4d0   :  { %6212 = vmatprep.subr.bf16.mxu1 %v8187_v34  ;;  %6376 = vmatprep.subr.bf16.mxu0 %v8190_v17  ;;  %v8245_v34 = vld [vmem:[#allocation18 + $0x1d4] ss:$28 sps:$4 sm:$0xff]  }
 0x4d1   :  { %v8243_v17 = vld [vmem:[#allocation18 + $0x1d0] ss:$28 sps:$4 sm:$0xff]  }
 0x4d3   :  { %6213 = vmatpush1.bf16.msra.mxu1 %v8185_v40  ;;  %6377 = vmatpush1.bf16.msra.mxu0 %v8188_v15  ;;  %v8251_v40 = vld [vmem:[#allocation18 + $0x590] ss:$28 sps:$4 sm:$0xff]   ;;  %v8248_v15 = vld [vmem:[#allocation18 + $0x208] ss:$28 sps:$4 sm:$0xff]  }
 0x4d4   :  { %6214 = vmatprep.subr.bf16.mxu1 %v8193_v46  ;;  %6378 = vmatprep.subr.bf16.mxu0 %v8196_v9  ;;  %v8252_v46 = vld [vmem:[#allocation18 + $0x3d0] ss:$28 sps:$4 sm:$0xff]   ;;  %v8255_v9 = vld [vmem:[#allocation18 + $0x244] ss:$28 sps:$4 sm:$0xff]  }
 0x4d7   :  { %6215 = vmatpush1.bf16.msra.mxu1 %v8191_v21  ;;  %6379 = vmatpush1.bf16.msra.mxu0 %v8194_v42  ;;  %v8253_v21 = vld [vmem:[#allocation18 + $0x240] ss:$28 sps:$4 sm:$0xff]   ;;  %v8257_v42 = vld [vmem:[#allocation18 + $0x408] ss:$28 sps:$4 sm:$0xff]  }
 0x4d8   :  { %6216 = vmatprep.subr.bf16.mxu1 %v8199_v60  ;;  %6380 = vmatprep.subr.bf16.mxu0 %v8202_v43  ;;  %v8260_v60 = vld [vmem:[#allocation18 + $0x27c] ss:$28 sps:$4 sm:$0xff]  }
 0x4d9   :  { %v8261_v43 = vld [vmem:[#allocation18 + $0x600] ss:$28 sps:$4 sm:$0xff]  }
 0x4db   :  { %6217 = vmatpush1.bf16.msra.mxu1 %v8197_v19  ;;  %6381 = vmatpush1.bf16.msra.mxu0 %v8200_v27  ;;  %v8262_v19 = vld [vmem:[#allocation18 + $0x440] ss:$28 sps:$4 sm:$0xff]   ;;  %v8265_v27 = vld [vmem:[#allocation18 + $0x2b4] ss:$28 sps:$4 sm:$0xff]  }
 0x4dc   :  { %6391 = vmatprep.subr.bf16.mxu1 %v8205_v51  ;;  %7524 = vmatprep.subr.bf16.mxu0 %v8206_v62  ;;  %v8266_v51 = vld [vmem:[#allocation18 + $0x638] ss:$28 sps:$4 sm:$0xff]  }
 0x4dd   :  { %v8267_v62 = vld [vmem:[#allocation18 + $0x478] ss:$28 sps:$4 sm:$0xff]  }
 0x4de   :  { %6219 = vmatmul.mubr.bf16.vlgmr.msra.gmra.mrb[8].mxu1 %v9321_v23  ;;  %6383 = vmatmul.mubr.bf16.vlgmr.msra.gmra.mrb[20].mxu0 %v9321_v23 }
 0x4df   :  { %6392 = vmatpush1.bf16.msra.mxu1 %v8203_v63  ;;  %6423 = vmatprep.mubr.bf16.mxu1 %v9198_v61  ;;  %v8270_v63 = vld [vmem:[#allocation18 + $0x2ec] ss:$28 sps:$4 sm:$0xff]  }
 0x4e0   :  { %7525 = vmatpush3.bf16.msra.mxu0 %v8207_v52  ;;  %6587 = vmatprep.mubr.bf16.mxu0 %v9198_v61  ;;  %v8223_v61 = vld [vmem:[#allocation18 + $0xf0] ss:$28 sps:$4 sm:$0xff]  }
 0x4e1   :  { %6393 = vmatprep.subr.bf16.mxu1 %v8210_v0  ;;  %7526 = vmatprep.subr.bf16.mxu0 %v8211_v1  ;;  %v8271_v52 = vld [vmem:[#allocation18 + $0x670] ss:$28 sps:$4 sm:$0xff]   ;;  %v8268_v0 = vld [vmem:[#allocation18 + $0x2e8] ss:$28 sps:$4 sm:$0xff]  }
 0x4e2   :  { %v8272_v1 = vld [vmem:[#allocation18 + $0x4b0] ss:$28 sps:$4 sm:$0xff]  }
 0x4e3   :  { %6394 = vmatpush1.bf16.msra.mxu1 %v8208_v2  ;;  %v8275_v2 = vld [vmem:[#allocation18 + $0x324] ss:$28 sps:$4 sm:$0xff]  }
 0x4e4   :  { %7527 = vmatpush3.bf16.msra.mxu0 %v8212_v3  ;;  %6395 = vmatprep.subr.bf16.mxu1 %v8215_v4  ;;  %v8276_v3 = vld [vmem:[#allocation18 + $0x6a8] ss:$28 sps:$4 sm:$0xff]   ;;  %v8273_v4 = vld [vmem:[#allocation18 + $0x320] ss:$28 sps:$4 sm:$0xff]  }
 0x4e5   :  { %7528 = vmatprep.subr.bf16.mxu0 %v8216_v12  ;;  %v8277_v12 = vld [vmem:[#allocation18 + $0x4e8] ss:$28 sps:$4 sm:$0xff]  }
 0x4e7   :  { %6396 = vmatpush1.bf16.msra.mxu1 %v8213_v57  ;;  %v8280_v57 = vld [vmem:[#allocation18 + $0x35c] ss:$28 sps:$4 sm:$0xff]  }
 0x4e8   :  { %7529 = vmatpush3.bf16.msra.mxu0 %v8217_v38  ;;  %6397 = vmatprep.subr.bf16.mxu1 %v8220_v58  ;;  %v8281_v38 = vld [vmem:[#allocation18 + $0x6e0] ss:$28 sps:$4 sm:$0xff]   ;;  %v8278_v58 = vld [vmem:[#allocation18 + $0x358] ss:$28 sps:$4 sm:$0xff]  }
 0x4e9   :  { %7530 = vmatprep.subr.bf16.mxu0 %v8221_v16  ;;  %v8282_v16 = vld [vmem:[#allocation18 + $0x520] ss:$28 sps:$4 sm:$0xff]  }
 0x4eb   :  { %6398 = vmatpush1.bf16.msra.mxu1 %v8218_v18  ;;  %v8285_v18 = vld [vmem:[#allocation18 + $0x394] ss:$28 sps:$4 sm:$0xff]  }
 0x4ec   :  { %7531 = vmatpush3.bf16.msra.mxu0 %v8222_v10  ;;  %6399 = vmatprep.subr.bf16.mxu1 %v8225_v31  ;;  %v8286_v10 = vld [vmem:[#allocation18 + $0x8d8] ss:$28 sps:$4 sm:$0xff]   ;;  %v8283_v31 = vld [vmem:[#allocation18 + $0x390] ss:$28 sps:$4 sm:$0xff]  }
 0x4ed   :  { %7532 = vmatprep.subr.bf16.mxu0 %v8226_v39  ;;  %v8287_v39 = vld [vmem:[#allocation18 + $0x718] ss:$28 sps:$4 sm:$0xff]  }
 0x4ef   :  { %6400 = vmatpush1.bf16.msra.mxu1 %v8223_v61  ;;  %v8290_v61 = vld [vmem:[#allocation18 + $0x3cc] ss:$28 sps:$4 sm:$0xff]  }
 0x4f0   :  { %7533 = vmatpush3.bf16.msra.mxu0 %v8227_v25  ;;  %6401 = vmatprep.subr.bf16.mxu1 %v8230_v44  ;;  %v8291_v25 = vld [vmem:[#allocation18 + $0x910] ss:$28 sps:$4 sm:$0xff]   ;;  %v8288_v44 = vld [vmem:[#allocation18 + $0x3c8] ss:$28 sps:$4 sm:$0xff]  }
 0x4f1   :  { %7534 = vmatprep.subr.bf16.mxu0 %v8231_v33  ;;  %v8292_v33 = vld [vmem:[#allocation18 + $0x750] ss:$28 sps:$4 sm:$0xff]  }
 0x4f3   :  { %6402 = vmatpush1.bf16.msra.mxu1 %v8228_v45  ;;  %v8295_v45 = vld [vmem:[#allocation18 + $0x404] ss:$28 sps:$4 sm:$0xff]  }
 0x4f4   :  { %7535 = vmatpush3.bf16.msra.mxu0 %v8232_v48  ;;  %6403 = vmatprep.subr.bf16.mxu1 %v8235_v59  ;;  %v8296_v48 = vld [vmem:[#allocation18 + $0x948] ss:$28 sps:$4 sm:$0xff]   ;;  %v8293_v59 = vld [vmem:[#allocation18 + $0x400] ss:$28 sps:$4 sm:$0xff]  }
 0x4f5   :  { %7536 = vmatprep.subr.bf16.mxu0 %v8236_v49  ;;  %v8300_v49 = vld [vmem:[#allocation18 + $0x43c] ss:$28 sps:$4 sm:$0xff]  }
 0x4f7   :  { %6404 = vmatpush1.bf16.msra.mxu1 %v8233_v14  ;;  %v8301_v14 = vld [vmem:[#allocation18 + $0x980] ss:$28 sps:$4 sm:$0xff]  }
 0x4f8   :  { %7537 = vmatpush3.bf16.msra.mxu0 %v8237_v24  ;;  %6405 = vmatprep.subr.bf16.mxu1 %v8240_v50  ;;  %v8298_v24 = vld [vmem:[#allocation18 + $0x438] ss:$28 sps:$4 sm:$0xff]  }
 0x4f9   :  { %7538 = vmatprep.subr.bf16.mxu0 %v8241_v13  ;;  %v8305_v50 = vld [vmem:[#allocation18 + $0x474] ss:$28 sps:$4 sm:$0xff]  }
 0x4fa   :  { %v8306_v13 = vld [vmem:[#allocation18 + $0x9b8] ss:$28 sps:$4 sm:$0xff]  }
 0x4fb   :  { %6406 = vmatpush1.bf16.msra.mxu1 %v8238_v28  ;;  %v8303_v28 = vld [vmem:[#allocation18 + $0x470] ss:$28 sps:$4 sm:$0xff]  }
 0x4fc   :  { %7539 = vmatpush3.bf16.msra.mxu0 %v8242_v30  ;;  %6407 = vmatprep.subr.bf16.mxu1 %v8245_v34  ;;  %v8307_v30 = vld [vmem:[#allocation18 + $0x7f8] ss:$28 sps:$4 sm:$0xff]   ;;  %v8310_v34 = vld [vmem:[#allocation18 + $0x4ac] ss:$28 sps:$4 sm:$0xff]  }
 0x4fd   :  { %7546 = vmatprep.subr.bf16.mxu0 %v8246_v36  ;;  %v8311_v36 = vld [vmem:[#allocation18 + $0x9f0] ss:$28 sps:$4 sm:$0xff]  }
 0x4ff   :  { %6588 = vmatmul.mubr.bf16.vlgmr.msra.gmra.mrb[24].mxu0 %v9200_v7  ;;  %6408 = vmatpush1.bf16.msra.mxu1 %v8243_v17  ;;  %v8308_v17 = vld [vmem:[#allocation18 + $0x4a8] ss:$28 sps:$4 sm:$0xff]  }
 0x500   :  { %7547 = vmatpush3.bf16.msra.mxu0 %v8247_v32  ;;  %6627 = vmatprep.mubr.bf16.mxu0 %v9206_v11  ;;  %v8312_v32 = vld [vmem:[#allocation18 + $0x830] ss:$28 sps:$4 sm:$0xff]  }
 0x501   :  { %6409 = vmatprep.subr.bf16.mxu1 %v8250_v37  ;;  %7548 = vmatprep.subr.bf16.mxu0 %v8251_v40  ;;  %v8315_v37 = vld [vmem:[#allocation18 + $0x4e4] ss:$28 sps:$4 sm:$0xff]  }
 0x502   :  { %v8316_v40 = vld [vmem:[#allocation18 + $0xa28] ss:$28 sps:$4 sm:$0xff]  }
 0x503   :  { %6410 = vmatpush1.bf16.msra.mxu1 %v8248_v15  ;;  %v8313_v15 = vld [vmem:[#allocation18 + $0x4e0] ss:$28 sps:$4 sm:$0xff]  }
 0x504   :  { %7549 = vmatpush3.bf16.msra.mxu0 %v8252_v46  ;;  %6411 = vmatprep.subr.bf16.mxu1 %v8255_v9  ;;  %v8317_v46 = vld [vmem:[#allocation18 + $0x868] ss:$28 sps:$4 sm:$0xff]   ;;  %v8320_v9 = vld [vmem:[#allocation18 + $0x51c] ss:$28 sps:$4 sm:$0xff]  }
 0x505   :  { %7550 = vmatprep.subr.bf16.mxu0 %v8256_v41  ;;  %v8321_v41 = vld [vmem:[#allocation18 + $0xa60] ss:$28 sps:$4 sm:$0xff]  }
 0x507   :  { %6412 = vmatpush1.bf16.msra.mxu1 %v8253_v21  ;;  %v8318_v21 = vld [vmem:[#allocation18 + $0x518] ss:$28 sps:$4 sm:$0xff]  }
 0x508   :  { %7551 = vmatpush3.bf16.msra.mxu0 %v8257_v42  ;;  %6413 = vmatprep.subr.bf16.mxu1 %v8260_v60  ;;  %v8322_v42 = vld [vmem:[#allocation18 + $0x8a0] ss:$28 sps:$4 sm:$0xff]   ;;  %v8325_v60 = vld [vmem:[#allocation18 + $0x554] ss:$28 sps:$4 sm:$0xff]  }
 0x509   :  { %7552 = vmatprep.subr.bf16.mxu0 %v8261_v43  ;;  %v8326_v43 = vld [vmem:[#allocation18 + $0xc58] ss:$28 sps:$4 sm:$0xff]  }
 0x50b   :  { %6414 = vmatpush1.bf16.msra.mxu1 %v8258_v47  ;;  %v8323_v47 = vld [vmem:[#allocation18 + $0x550] ss:$28 sps:$4 sm:$0xff]  }
 0x50c   :  { %7553 = vmatpush3.bf16.msra.mxu0 %v8262_v19  ;;  %6415 = vmatprep.subr.bf16.mxu1 %v8265_v27  ;;  %v8327_v19 = vld [vmem:[#allocation18 + $0xa98] ss:$28 sps:$4 sm:$0xff]   ;;  %v8330_v27 = vld [vmem:[#allocation18 + $0x58c] ss:$28 sps:$4 sm:$0xff]  }
 0x50d   :  { %7554 = vmatprep.subr.bf16.mxu0 %v8266_v51  ;;  %v8331_v51 = vld [vmem:[#allocation18 + $0xc90] ss:$28 sps:$4 sm:$0xff]  }
 0x50f   :  { %6416 = vmatpush1.bf16.msra.mxu1 %v8263_v56  ;;  %v8328_v56 = vld [vmem:[#allocation18 + $0x588] ss:$28 sps:$4 sm:$0xff]  }
 0x510   :  { %7555 = vmatpush3.bf16.msra.mxu0 %v8267_v62  ;;  %6417 = vmatprep.subr.bf16.mxu1 %v8270_v63  ;;  %v8332_v62 = vld [vmem:[#allocation18 + $0xad0] ss:$28 sps:$4 sm:$0xff]   ;;  %v8335_v63 = vld [vmem:[#allocation18 + $0x5c4] ss:$28 sps:$4 sm:$0xff]  }
 0x511   :  { %7556 = vmatprep.subr.bf16.mxu0 %v8271_v52  ;;  %v8336_v52 = vld [vmem:[#allocation18 + $0xcc8] ss:$28 sps:$4 sm:$0xff]  }
 0x513   :  { %6418 = vmatpush1.bf16.msra.mxu1 %v8268_v0  ;;  %v8333_v0 = vld [vmem:[#allocation18 + $0x5c0] ss:$28 sps:$4 sm:$0xff]  }
 0x514   :  { %7557 = vmatpush3.bf16.msra.mxu0 %v8272_v1  ;;  %6419 = vmatprep.subr.bf16.mxu1 %v8275_v2  ;;  %v8337_v1 = vld [vmem:[#allocation18 + $0xb08] ss:$28 sps:$4 sm:$0xff]   ;;  %v8340_v2 = vld [vmem:[#allocation18 + $0x5fc] ss:$28 sps:$4 sm:$0xff]  }
 0x515   :  { %7558 = vmatprep.subr.bf16.mxu0 %v8276_v3  ;;  %v8341_v3 = vld [vmem:[#allocation18 + $0xd00] ss:$28 sps:$4 sm:$0xff]  }
 0x517   :  { %6420 = vmatpush1.bf16.msra.mxu1 %v8273_v4  ;;  %v8338_v4 = vld [vmem:[#allocation18 + $0x5f8] ss:$28 sps:$4 sm:$0xff]  }
 0x518   :  { %7559 = vmatpush3.bf16.msra.mxu0 %v8277_v12  ;;  %6421 = vmatprep.subr.bf16.mxu1 %v8280_v57  ;;  %v8342_v12 = vld [vmem:[#allocation18 + $0xb40] ss:$28 sps:$4 sm:$0xff]   ;;  %v8345_v57 = vld [vmem:[#allocation18 + $0x634] ss:$28 sps:$4 sm:$0xff]  }
 0x519   :  { %7560 = vmatprep.subr.bf16.mxu0 %v8281_v38  ;;  %v8346_v38 = vld [vmem:[#allocation18 + $0xd38] ss:$28 sps:$4 sm:$0xff]  }
 0x51b   :  { %6422 = vmatpush1.bf16.msra.mxu1 %v8278_v58  ;;  %v8343_v58 = vld [vmem:[#allocation18 + $0x630] ss:$28 sps:$4 sm:$0xff]  }
 0x51c   :  { %7561 = vmatpush3.bf16.msra.mxu0 %v8282_v16  ;;  %6432 = vmatprep.subr.bf16.mxu1 %v8285_v18  ;;  %v8347_v16 = vld [vmem:[#allocation18 + $0xb78] ss:$28 sps:$4 sm:$0xff]   ;;  %v8350_v18 = vld [vmem:[#allocation18 + $0x66c] ss:$28 sps:$4 sm:$0xff]  }
 0x51d   :  { %7568 = vmatprep.subr.bf16.mxu0 %v8286_v10  ;;  %v8351_v10 = vld [vmem:[#allocation18 + $0xd70] ss:$28 sps:$4 sm:$0xff]  }
 0x51e   :  { %6424 = vmatmul.mubr.bf16.vlgmr.msra.gmra.mrb[12].mxu1 %v9200_v7  ;;  %v8297_v7 = vld [vmem:[#allocation18 + $0x788] ss:$28 sps:$4 sm:$0xff]  }
 0x51f   :  { %6628 = vmatmul.mubr.bf16.vlgmr.msra.gmra.mrb[28].mxu0 %v9220_v35  ;;  %6433 = vmatpush1.bf16.msra.mxu1 %v8283_v31  ;;  %v8348_v31 = vld [vmem:[#allocation18 + $0x668] ss:$28 sps:$4 sm:$0xff]  }
 0x520   :  { %6464 = vmatprep.mubr.bf16.mxu1 %v9206_v11  ;;  %7569 = vmatpush3.bf16.msra.mxu0 %v8287_v39  ;;  %v8302_v11 = vld [vmem:[#allocation18 + $0x7c0] ss:$28 sps:$4 sm:$0xff]   ;;  %v8352_v39 = vld [vmem:[#allocation18 + $0xbb0] ss:$28 sps:$4 sm:$0xff]  }
 0x521   :  { %6667 = vmatprep.mubr.bf16.mxu0 %v9301_v5  ;;  %6434 = vmatprep.subr.bf16.mxu1 %v8290_v61  ;;  %v8355_v61 = vld [vmem:[#allocation18 + $0x6a4] ss:$28 sps:$4 sm:$0xff]  }
 0x522   :  { %7570 = vmatprep.subr.bf16.mxu0 %v8291_v25  ;;  %v8356_v25 = vld [vmem:[#allocation18 + $0xda8] ss:$28 sps:$4 sm:$0xff]  }
 0x523   :  { %6435 = vmatpush1.bf16.msra.mxu1 %v8288_v44  ;;  %v8353_v44 = vld [vmem:[#allocation18 + $0x6a0] ss:$28 sps:$4 sm:$0xff]  }
 0x524   :  { %7571 = vmatpush3.bf16.msra.mxu0 %v8292_v33  ;;  %6436 = vmatprep.subr.bf16.mxu1 %v8295_v45  ;;  %v8357_v33 = vld [vmem:[#allocation18 + $0xbe8] ss:$28 sps:$4 sm:$0xff]   ;;  %v8360_v45 = vld [vmem:[#allocation18 + $0x6dc] ss:$28 sps:$4 sm:$0xff]  }
 0x525   :  { %7572 = vmatprep.subr.bf16.mxu0 %v8296_v48  ;;  %v8361_v48 = vld [vmem:[#allocation18 + $0xde0] ss:$28 sps:$4 sm:$0xff]  }
 0x527   :  { %6437 = vmatpush1.bf16.msra.mxu1 %v8293_v59  ;;  %v8358_v59 = vld [vmem:[#allocation18 + $0x6d8] ss:$28 sps:$4 sm:$0xff]  }
 0x528   :  { %7573 = vmatpush3.bf16.msra.mxu0 %v8297_v7  ;;  %6438 = vmatprep.subr.bf16.mxu1 %v8300_v49  ;;  %v8362_v7 = vld [vmem:[#allocation18 + $0xc20] ss:$28 sps:$4 sm:$0xff]   ;;  %v8365_v49 = vld [vmem:[#allocation18 + $0x714] ss:$28 sps:$4 sm:$0xff]  }
 0x529   :  { %7574 = vmatprep.subr.bf16.mxu0 %v8301_v14  ;;  %v8363_v14 = vld [vmem:[#allocation18 + $0x710] ss:$28 sps:$4 sm:$0xff]  }
 0x52b   :  { %6439 = vmatpush1.bf16.msra.mxu1 %v8298_v24  ;;  %v8368_v24 = vld [vmem:[#allocation18 + $0x74c] ss:$28 sps:$4 sm:$0xff]  }
 0x52c   :  { %7575 = vmatpush3.bf16.msra.mxu0 %v8302_v11  ;;  %6440 = vmatprep.subr.bf16.mxu1 %v8305_v50  ;;  %v8366_v11 = vld [vmem:[#allocation18 + $0x748] ss:$28 sps:$4 sm:$0xff]  }
 0x52d   :  { %7576 = vmatprep.subr.bf16.mxu0 %v8306_v13  ;;  %v8371_v50 = vld [vmem:[#allocation18 + $0x784] ss:$28 sps:$4 sm:$0xff]  }
 0x52e   :  { %v8369_v13 = vld [vmem:[#allocation18 + $0x780] ss:$28 sps:$4 sm:$0xff]  }
 0x52f   :  { %6441 = vmatpush1.bf16.msra.mxu1 %v8303_v28  ;;  %v8374_v28 = vld [vmem:[#allocation18 + $0x7bc] ss:$28 sps:$4 sm:$0xff]  }
 0x530   :  { %7577 = vmatpush3.bf16.msra.mxu0 %v8307_v30  ;;  %6442 = vmatprep.subr.bf16.mxu1 %v8310_v34  ;;  %v8372_v30 = vld [vmem:[#allocation18 + $0x7b8] ss:$28 sps:$4 sm:$0xff]  }
 0x531   :  { %7578 = vmatprep.subr.bf16.mxu0 %v8311_v36  ;;  %v8377_v34 = vld [vmem:[#allocation18 + $0x7f4] ss:$28 sps:$4 sm:$0xff]  }
 0x532   :  { %v8375_v36 = vld [vmem:[#allocation18 + $0x7f0] ss:$28 sps:$4 sm:$0xff]  }
 0x533   :  { %6443 = vmatpush1.bf16.msra.mxu1 %v8308_v17  ;;  %v8378_v17 = vld [vmem:[#allocation18 + $0x828] ss:$28 sps:$4 sm:$0xff]  }
 0x534   :  { %7579 = vmatpush3.bf16.msra.mxu0 %v8312_v32  ;;  %6444 = vmatprep.subr.bf16.mxu1 %v8315_v37  ;;  %v8383_v32 = vld [vmem:[#allocation18 + $0x864] ss:$28 sps:$4 sm:$0xff]   ;;  %v8386_v37 = vld [vmem:[#allocation18 + $0x89c] ss:$28 sps:$4 sm:$0xff]  }
 0x535   :  { %7580 = vmatprep.subr.bf16.mxu0 %v8316_v40  ;;  %v8384_v40 = vld [vmem:[#allocation18 + $0x898] ss:$28 sps:$4 sm:$0xff]  }
 0x537   :  { %6445 = vmatpush1.bf16.msra.mxu1 %v8313_v15  ;;  %v8389_v15 = vld [vmem:[#allocation18 + $0x8d4] ss:$28 sps:$4 sm:$0xff]  }
 0x538   :  { %7581 = vmatpush3.bf16.msra.mxu0 %v8317_v46  ;;  %6446 = vmatprep.subr.bf16.mxu1 %v8320_v9  ;;  %v8387_v46 = vld [vmem:[#allocation18 + $0x8d0] ss:$28 sps:$4 sm:$0xff]  }
 0x539   :  { %7582 = vmatprep.subr.bf16.mxu0 %v8321_v41  ;;  %v8392_v9 = vld [vmem:[#allocation18 + $0x90c] ss:$28 sps:$4 sm:$0xff]  }
 0x53a   :  { %v8390_v41 = vld [vmem:[#allocation18 + $0x908] ss:$28 sps:$4 sm:$0xff]  }
 0x53b   :  { %6447 = vmatpush1.bf16.msra.mxu1 %v8318_v21  ;;  %v8395_v21 = vld [vmem:[#allocation18 + $0x944] ss:$28 sps:$4 sm:$0xff]  }
 0x53c   :  { %7583 = vmatpush3.bf16.msra.mxu0 %v8322_v42  ;;  %6448 = vmatprep.subr.bf16.mxu1 %v8325_v60  ;;  %v8393_v42 = vld [vmem:[#allocation18 + $0x940] ss:$28 sps:$4 sm:$0xff]  }
 0x53d   :  { %7590 = vmatprep.subr.bf16.mxu0 %v8326_v43  ;;  %v8398_v60 = vld [vmem:[#allocation18 + $0x97c] ss:$28 sps:$4 sm:$0xff]  }
 0x53e   :  { %v8396_v43 = vld [vmem:[#allocation18 + $0x978] ss:$28 sps:$4 sm:$0xff]  }
 0x53f   :  { %6668 = vmatmul.mubr.bf16.vlgmr.msra.gmra.mrb[32].mxu0 %v9303_v22  ;;  %6449 = vmatpush1.bf16.msra.mxu1 %v8323_v47  ;;  %v8401_v47 = vld [vmem:[#allocation18 + $0x9b4] ss:$28 sps:$4 sm:$0xff]  }
 0x540   :  { %7591 = vmatpush3.bf16.msra.mxu0 %v8327_v19  ;;  %6707 = vmatprep.mubr.bf16.mxu0 %v9308_v20  ;;  %v8399_v19 = vld [vmem:[#allocation18 + $0x9b0] ss:$28 sps:$4 sm:$0xff]  }
 0x541   :  { %6450 = vmatprep.subr.bf16.mxu1 %v8330_v27  ;;  %7592 = vmatprep.subr.bf16.mxu0 %v8331_v51  ;;  %v8404_v27 = vld [vmem:[#allocation18 + $0x9ec] ss:$28 sps:$4 sm:$0xff]  }
 0x542   :  { %v8402_v51 = vld [vmem:[#allocation18 + $0x9e8] ss:$28 sps:$4 sm:$0xff]  }
 0x543   :  { %6451 = vmatpush1.bf16.msra.mxu1 %v8328_v56  ;;  %v8407_v56 = vld [vmem:[#allocation18 + $0xa24] ss:$28 sps:$4 sm:$0xff]  }
 0x544   :  { %7593 = vmatpush3.bf16.msra.mxu0 %v8332_v62  ;;  %6452 = vmatprep.subr.bf16.mxu1 %v8335_v63  ;;  %v8405_v62 = vld [vmem:[#allocation18 + $0xa20] ss:$28 sps:$4 sm:$0xff]  }
 0x545   :  { %7594 = vmatprep.subr.bf16.mxu0 %v8336_v52  ;;  %v8410_v63 = vld [vmem:[#allocation18 + $0xa5c] ss:$28 sps:$4 sm:$0xff]  }
 0x546   :  { %v8408_v52 = vld [vmem:[#allocation18 + $0xa58] ss:$28 sps:$4 sm:$0xff]  }
 0x547   :  { %6453 = vmatpush1.bf16.msra.mxu1 %v8333_v0  ;;  %v8413_v0 = vld [vmem:[#allocation18 + $0xa94] ss:$28 sps:$4 sm:$0xff]  }
 0x548   :  { %7595 = vmatpush3.bf16.msra.mxu0 %v8337_v1  ;;  %6454 = vmatprep.subr.bf16.mxu1 %v8340_v2  ;;  %v8411_v1 = vld [vmem:[#allocation18 + $0xa90] ss:$28 sps:$4 sm:$0xff]  }
 0x549   :  { %7596 = vmatprep.subr.bf16.mxu0 %v8341_v3  ;;  %v8416_v2 = vld [vmem:[#allocation18 + $0xacc] ss:$28 sps:$4 sm:$0xff]  }
 0x54a   :  { %v8414_v3 = vld [vmem:[#allocation18 + $0xac8] ss:$28 sps:$4 sm:$0xff]  }
 0x54b   :  { %6455 = vmatpush1.bf16.msra.mxu1 %v8338_v4  ;;  %v8419_v4 = vld [vmem:[#allocation18 + $0xb04] ss:$28 sps:$4 sm:$0xff]  }
 0x54c   :  { %7597 = vmatpush3.bf16.msra.mxu0 %v8342_v12  ;;  %6456 = vmatprep.subr.bf16.mxu1 %v8345_v57  ;;  %v8417_v12 = vld [vmem:[#allocation18 + $0xb00] ss:$28 sps:$4 sm:$0xff]  }
 0x54d   :  { %7598 = vmatprep.subr.bf16.mxu0 %v8346_v38  ;;  %v8422_v57 = vld [vmem:[#allocation18 + $0xb3c] ss:$28 sps:$4 sm:$0xff]  }
 0x54e   :  { %v8420_v38 = vld [vmem:[#allocation18 + $0xb38] ss:$28 sps:$4 sm:$0xff]  }
 0x54f   :  { %6457 = vmatpush1.bf16.msra.mxu1 %v8343_v58  ;;  %v8425_v58 = vld [vmem:[#allocation18 + $0xb74] ss:$28 sps:$4 sm:$0xff]  }
 0x550   :  { %7599 = vmatpush3.bf16.msra.mxu0 %v8347_v16  ;;  %6458 = vmatprep.subr.bf16.mxu1 %v8350_v18  ;;  %v8423_v16 = vld [vmem:[#allocation18 + $0xb70] ss:$28 sps:$4 sm:$0xff]   ;;  %v9340_v18 = vld [vmem:[#allocation19] sm:$0xff] }
 0x551   :  { %7600 = vmatprep.subr.bf16.mxu0 %v8351_v10  ;;  %v3735_v10 = vrot.slane %v9340_v18, %v9085_v26 }
 0x553   :  { %6459 = vmatpush1.bf16.msra.mxu1 %v8348_v31  ;;  %v3731_v31 = vrot.slane %v9340_v18, %v9028_v8 }
 0x554   :  { %7601 = vmatpush3.bf16.msra.mxu0 %v8352_v39  ;;  %6460 = vmatprep.subr.bf16.mxu1 %v8355_v61  ;;  %v8426_v39 = vld [vmem:[#allocation18 + $0xba8] ss:$28 sps:$4 sm:$0xff]   ;;  %v3739_v61 = vrot.slane %v9340_v18, %v9088_v29 }
 0x555   :  { %7602 = vmatprep.subr.bf16.mxu0 %v8356_v25  ;;  %v8431_v25 = vld [vmem:[#allocation18 + $0xbe4] ss:$28 sps:$4 sm:$0xff]  }
 0x557   :  { %6461 = vmatpush1.bf16.msra.mxu1 %v8353_v44 }
 0x558   :  { %7603 = vmatpush3.bf16.msra.mxu0 %v8357_v33  ;;  %6462 = vmatprep.subr.bf16.mxu1 %v8360_v45 }
 0x559   :  { %7604 = vmatprep.subr.bf16.mxu0 %v8361_v48 }
 0x55b   :  { %6463 = vmatpush1.bf16.msra.mxu1 %v8358_v59 }
 0x55c   :  { %7605 = vmatpush3.bf16.msra.mxu0 %v8362_v7  ;;  %6473 = vmatprep.subr.bf16.mxu1 %v8365_v49 }
 0x55e   :  { %6465 = vmatmul.mubr.bf16.vlgmr.msra.gmra.mrb[12].mxu1 %v9220_v35  ;;  %v8380_v35 = vld [vmem:[#allocation18 + $0x82c] ss:$28 sps:$4 sm:$0xff]  }
 0x55f   :  { %6708 = vmatmul.mubr.bf16.vlgmr.msra.gmra.mrb[36].mxu0 %v9321_v23  ;;  %6474 = vmatpush1.bf16.msra.mxu1 %v8363_v14  ;;  %v8429_v14 = vld [vmem:[#allocation18 + $0xbe0] ss:$28 sps:$4 sm:$0xff]  }
 0x560   :  { %6505 = vmatprep.mubr.bf16.mxu1 %v9301_v5  ;;  %6475 = vmatprep.subr.bf16.mxu1 %v8368_v24  ;;  %v8381_v5 = vld [vmem:[#allocation18 + $0x860] ss:$28 sps:$4 sm:$0xff]  }
 0x563   :  { %6476 = vmatpush1.bf16.msra.mxu1 %v8366_v11  ;;  %v8434_v11 = vld [vmem:[#allocation18 + $0xc1c] ss:$28 sps:$4 sm:$0xff]  }
 0x564   :  { %6477 = vmatprep.subr.bf16.mxu1 %v8371_v50  ;;  %v8432_v50 = vld [vmem:[#allocation18 + $0xc18] ss:$28 sps:$4 sm:$0xff]  }
 0x567   :  { %6478 = vmatpush1.bf16.msra.mxu1 %v8369_v13  ;;  %v8437_v13 = vld [vmem:[#allocation18 + $0xc54] ss:$28 sps:$4 sm:$0xff]  }
 0x568   :  { %6479 = vmatprep.subr.bf16.mxu1 %v8374_v28  ;;  %v8435_v28 = vld [vmem:[#allocation18 + $0xc50] ss:$28 sps:$4 sm:$0xff]  }
 0x56b   :  { %6480 = vmatpush1.bf16.msra.mxu1 %v8372_v30  ;;  %v8440_v30 = vld [vmem:[#allocation18 + $0xc8c] ss:$28 sps:$4 sm:$0xff]  }
 0x56c   :  { %6481 = vmatprep.subr.bf16.mxu1 %v8377_v34 }
 0x56f   :  { %6482 = vmatpush1.bf16.msra.mxu1 %v8375_v36 }
 0x570   :  { %6483 = vmatprep.subr.bf16.mxu1 %v8380_v35  ;;  %v8438_v35 = vld [vmem:[#allocation18 + $0xc88] ss:$28 sps:$4 sm:$0xff]  }
 0x573   :  { %6484 = vmatpush1.bf16.msra.mxu1 %v8378_v17 }
 0x574   :  { %6485 = vmatprep.subr.bf16.mxu1 %v8383_v32  ;;  %v8443_v32 = vld [vmem:[#allocation18 + $0xcc4] ss:$28 sps:$4 sm:$0xff]  }
 0x577   :  { %6486 = vmatpush1.bf16.msra.mxu1 %v8381_v5 }
 0x578   :  { %6487 = vmatprep.subr.bf16.mxu1 %v8386_v37  ;;  %v8441_v37 = vld [vmem:[#allocation18 + $0xcc0] ss:$28 sps:$4 sm:$0xff]  }
 0x57b   :  { %6488 = vmatpush1.bf16.msra.mxu1 %v8384_v40  ;;  %v8446_v40 = vld [vmem:[#allocation18 + $0xcfc] ss:$28 sps:$4 sm:$0xff]  }
 0x57c   :  { %6489 = vmatprep.subr.bf16.mxu1 %v8389_v15  ;;  %v8444_v15 = vld [vmem:[#allocation18 + $0xcf8] ss:$28 sps:$4 sm:$0xff]  }
 0x57f   :  { %6490 = vmatpush1.bf16.msra.mxu1 %v8387_v46  ;;  %v8449_v46 = vld [vmem:[#allocation18 + $0xd34] ss:$28 sps:$4 sm:$0xff]  }
 0x580   :  { %6491 = vmatprep.subr.bf16.mxu1 %v8392_v9  ;;  %v8447_v9 = vld [vmem:[#allocation18 + $0xd30] ss:$28 sps:$4 sm:$0xff]  }
 0x583   :  { %6492 = vmatpush1.bf16.msra.mxu1 %v8390_v41  ;;  %v8452_v41 = vld [vmem:[#allocation18 + $0xd6c] ss:$28 sps:$4 sm:$0xff]  }
 0x584   :  { %6493 = vmatprep.subr.bf16.mxu1 %v8395_v21  ;;  %v8450_v21 = vld [vmem:[#allocation18 + $0xd68] ss:$28 sps:$4 sm:$0xff]  }
 0x587   :  { %6494 = vmatpush1.bf16.msra.mxu1 %v8393_v42  ;;  %v8455_v42 = vld [vmem:[#allocation18 + $0xda4] ss:$28 sps:$4 sm:$0xff]  }
 0x588   :  { %6495 = vmatprep.subr.bf16.mxu1 %v8398_v60 }
 0x58b   :  { %6496 = vmatpush1.bf16.msra.mxu1 %v8396_v43 }
 0x58c   :  { %6497 = vmatprep.subr.bf16.mxu1 %v8401_v47  ;;  %v8453_v47 = vld [vmem:[#allocation18 + $0xda0] ss:$28 sps:$4 sm:$0xff]  }
 0x58f   :  { %6498 = vmatpush1.bf16.msra.mxu1 %v8399_v19 }
 0x590   :  { %6499 = vmatprep.subr.bf16.mxu1 %v8404_v27 }
 0x593   :  { %6500 = vmatpush1.bf16.msra.mxu1 %v8402_v51  ;;  %v8458_v51 = vld [vmem:[#allocation18 + $0xddc] ss:$28 sps:$4 sm:$0xff]  }
 0x594   :  { %6501 = vmatprep.subr.bf16.mxu1 %v8407_v56 }
 0x597   :  { %6502 = vmatpush1.bf16.msra.mxu1 %v8405_v62  ;;  %v8456_v62 = vld [vmem:[#allocation18 + $0xdd8] ss:$28 sps:$4 sm:$0xff]  }
 0x598   :  { %6503 = vmatprep.subr.bf16.mxu1 %v8410_v63  ;;  %v3751_v63 = vrot.slane %v9340_v18, %v9272_v55 }
 0x59b   :  { %6504 = vmatpush1.bf16.msra.mxu1 %v8408_v52 }
 0x59c   :  { %6514 = vmatprep.subr.bf16.mxu1 %v8413_v0 }
 0x59e   :  { %6506 = vmatmul.mubr.bf16.vlgmr.msra.gmra.mrb[12].mxu1 %v9303_v22  ;;  %v8428_v22 = vld [vmem:[#allocation18 + $0xbac] ss:$28 sps:$4 sm:$0xff]  }
 0x59f   :  { %6515 = vmatpush1.bf16.msra.mxu1 %v8411_v1  ;;  %6546 = vmatprep.mubr.bf16.mxu1 %v9308_v20  ;;  %v3727_v20 = vrot.slane %v9340_v18, %v9025_v6 }
 0x5a0   :  { %6516 = vmatprep.subr.bf16.mxu1 %v8416_v2 }
 0x5a3   :  { %6517 = vmatpush1.bf16.msra.mxu1 %v8414_v3 }
 0x5a4   :  { %6518 = vmatprep.subr.bf16.mxu1 %v8419_v4 }
 0x5a7   :  { %6519 = vmatpush1.bf16.msra.mxu1 %v8417_v12 }
 0x5a8   :  { %6520 = vmatprep.subr.bf16.mxu1 %v8422_v57 }
 0x5ab   :  { %6521 = vmatpush1.bf16.msra.mxu1 %v8420_v38 }
 0x5ac   :  { %6522 = vmatprep.subr.bf16.mxu1 %v8425_v58 }
 0x5af   :  { %6523 = vmatpush1.bf16.msra.mxu1 %v8423_v16 }
 0x5b0   :  { %6524 = vmatprep.subr.bf16.mxu1 %v8428_v22 }
 0x5b1   :  { %v6220_v44 = vpop.f32.mrb[8].mxu1  ;;  %v6384_v45 = vpop.f32.mrb[20].mxu0 }
 0x5b2   :  { %v7620_v33 = vadd.f32 %v6220_v44, %v3727_v20  ;;  %v6222_v48 = vpop.f32.mrb[9].mxu1  ;;  %v7622_v59 = vadd.f32 %v6384_v45, %v3735_v10  ;;  %v6386_v6 = vpop.f32.mrb[21].mxu0  ;;  %v3743_v44 = vrot.slane %v9340_v18, %v9225_v53 }
 0x5b3   :  { %v7621_v7 = vadd.f32 %v6222_v48, %v3731_v31  ;;  %v6224_v49 = vpop.f32.mrb[10].mxu1  ;;  %6525 = vmatpush1.bf16.msra.mxu1 %v8426_v39  ;;  %v7623_v26 = vadd.f32 %v6386_v6, %v3739_v61  ;;  %v6388_v24 = vpop.f32.mrb[22].mxu0 }
 0x5b4   :  { %8483 = vtanh.f32 %v7620_v33  ;;  %v6225_v8 = vpop.f32.mrb[11].mxu1  ;;  %6526 = vmatprep.subr.bf16.mxu1 %v8431_v25  ;;  %v6389_v29 = vpop.f32.mrb[23].mxu0  ;;  %v3747_v33 = vrot.slane %v9340_v18, %v9228_v54 }
 0x5b5   :  { %8485 = vtanh.f32 %v7622_v59 }
 0x5b6   :  { %8487 = vtanh.f32 %v7621_v7 }
 0x5b7   :  { %8489 = vtanh.f32 %v7623_v26  ;;  %6527 = vmatpush1.bf16.msra.mxu1 %v8429_v14 }
 0x5b8   :  { %6528 = vmatprep.subr.bf16.mxu1 %v8434_v11 }
 0x5bb   :  { %6529 = vmatpush1.bf16.msra.mxu1 %v8432_v50 }
 0x5bc   :  { %6530 = vmatprep.subr.bf16.mxu1 %v8437_v13 }
 0x5be   :  { %v8484_v34 = vpop.eup %8483 }
 0x5bf   :  { %v8486_v36 = vpop.eup %8485  ;;  %6722 = vst [vmem:[%s9391_s13] sm:$0xff] %v8484_v34  ;;  %6531 = vmatpush1.bf16.msra.mxu1 %v8435_v28 }
 0x5c0   :  { %v8488_v17 = vpop.eup %8487  ;;  %6724 = vst [vmem:[%s9391_s13 + $0x10] sm:$0xff] %v8486_v36  ;;  %6532 = vmatprep.subr.bf16.mxu1 %v8440_v30 }
 0x5c1   :  { %v8490_v5 = vpop.eup %8489  ;;  %6723 = vst [vmem:[%s9391_s13 + $0x8] sm:$0xff] %v8488_v17 }
 0x5c2   :  { %6725 = vst [vmem:[%s9391_s13 + $0x18] sm:$0xff] %v8490_v5 }
 0x5c3   :  { %6533 = vmatpush1.bf16.msra.mxu1 %v8438_v35 }
 0x5c4   :  { %6534 = vmatprep.subr.bf16.mxu1 %v8443_v32 }
 0x5c7   :  { %6535 = vmatpush1.bf16.msra.mxu1 %v8441_v37 }
 0x5c8   :  { %6536 = vmatprep.subr.bf16.mxu1 %v8446_v40 }
 0x5cb   :  { %6537 = vmatpush1.bf16.msra.mxu1 %v8444_v15 }
 0x5cc   :  { %6538 = vmatprep.subr.bf16.mxu1 %v8449_v46 }
 0x5cf   :  { %6539 = vmatpush1.bf16.msra.mxu1 %v8447_v9 }
 0x5d0   :  { %6540 = vmatprep.subr.bf16.mxu1 %v8452_v41 }
 0x5d2   :  { %v7540_v60 = vpop.f32.mrb[24].mxu0 }
 0x5d3   :  { %v7541_v43 = vpop.f32.mrb[25].mxu0  ;;  %6541 = vmatpush1.bf16.msra.mxu1 %v8450_v21 }
 0x5d4   :  { %v7542_v19 = vadd.f32 %v7541_v43, %v7540_v60  ;;  %v7543_v27 = vpop.f32.mrb[26].mxu0  ;;  %6542 = vmatprep.subr.bf16.mxu1 %v8455_v42 }
 0x5d5   :  { %v7544_v56 = vpop.f32.mrb[27].mxu0 }
 0x5d6   :  { %v6590_v1 = vadd.f32 %v7542_v19, %v3751_v63 }
 0x5d7   :  { %6543 = vmatpush1.bf16.msra.mxu1 %v8453_v47 }
 0x5d8   :  { %6544 = vmatprep.subr.bf16.mxu1 %v8458_v51 }
 0x5db   :  { %6545 = vmatpush1.bf16.msra.mxu1 %v8456_v62 }
 0x5de   :  { %6547 = vmatmul.mubr.bf16.vlgmr.msra.gmra.mrb[12].mxu1 %v9321_v23 }
 0x5f2   :  { %v7562_v52 = vpop.f32.mrb[28].mxu0 }
 0x5f3   :  { %v7563_v0 = vpop.f32.mrb[29].mxu0 }
 0x5f4   :  { %v7564_v2 = vadd.f32 %v7563_v0, %v7562_v52  ;;  %v7565_v3 = vpop.f32.mrb[30].mxu0 }
 0x5f5   :  { %v7566_v4 = vpop.f32.mrb[31].mxu0 }
 0x5f6   :  { %v6630_v12 = vadd.f32 %v7564_v2, %v6590_v1 }
 0x612   :  { %v7584_v57 = vpop.f32.mrb[32].mxu0 }
 0x613   :  { %v7585_v38 = vpop.f32.mrb[33].mxu0 }
 0x614   :  { %v7586_v58 = vadd.f32 %v7585_v38, %v7584_v57  ;;  %v7587_v16 = vpop.f32.mrb[34].mxu0 }
 0x615   :  { %v7588_v22 = vpop.f32.mrb[35].mxu0 }
 0x616   :  { %v6670_v20 = vadd.f32 %v7586_v58, %v6630_v12 }
 0x632   :  { %v7606_v10 = vpop.f32.mrb[36].mxu0 }
 0x633   :  { %v7607_v31 = vpop.f32.mrb[37].mxu0 }
 0x634   :  { %v7608_v39 = vadd.f32 %v7607_v31, %v7606_v10  ;;  %v7609_v23 = vpop.f32.mrb[38].mxu0 }
 0x635   :  { %v7610_v61 = vpop.f32.mrb[39].mxu0 }
 0x636   :  { %v6710_v25 = vadd.f32 %v7608_v39, %v6670_v20 }
 0x638   :  { %8491 = vtanh.f32 %v6710_v25 }
 0x642   :  { %v8492_v55 = vpop.eup %8491 }
 0x643   :  { %6728 = vst [vmem:[%s9391_s13 + $0x30] sm:$0xff] %v8492_v55 }
 0x6b1   :  { %v6548_v45 = vpop.f32.mrb[12].mxu1 }
 0x6b2   :  { %v7624_v48 = vadd.f32 %v6548_v45, %v3743_v44  ;;  %v6550_v59 = vpop.f32.mrb[13].mxu1 }
 0x6b3   :  { %v7625_v7 = vadd.f32 %v6550_v59, %v3747_v33  ;;  %v6552_v6 = vpop.f32.mrb[14].mxu1 }
 0x6b4   :  { %8493 = vtanh.f32 %v7624_v48  ;;  %v6553_v49 = vpop.f32.mrb[15].mxu1 }
 0x6b5   :  { %8495 = vtanh.f32 %v7625_v7 }
 0x6be   :  { %v8494_v14 = vpop.eup %8493 }
 0x6bf   :  { %v8496_v26 = vpop.eup %8495  ;;  %6726 = vst [vmem:[%s9391_s13 + $0x20] sm:$0xff] %v8494_v14 }
 0x6c0   :  { %6727 = vst [vmem:[%s9391_s13 + $0x28] sm:$0xff] %v8496_v26 }
 0x6c1   :  { %6733 = vsyncpa [#allocation3], 1 }
 0x6c2   :  { %6734 = vsyncpa [#allocation5], 1 }
 0x6c3   :  { %6735 = vsyncpa [#allocation8], 1 }
 0x6c4   :  { %6736 = vsyncpa [#allocation11], 1 }
 0x6c5   :  { %6737 = vsyncpa [#allocation14], 1 }
 0x6c6   :  { %6738 = vsyncpa [#allocation17], 1 }
 0x6c7   :  { %6739 = vsyncpa [#allocation20], 1 }

</bundles_post_ra>
